<compile_context>
chip_gen: v7x
topology: tpu7x:2x2x1
jax: 0.10.0
libtpu: 0.0.40
codegen_flags: <defaults>
</compile_context>

<pallas_src>
import functools

import jax
import jax.numpy as jnp
from jax.experimental import pallas as pl
from jax.experimental.pallas import tpu as pltpu

BN_EPS = 1e-5
LEAKY_SLOPE = 0.2

# Tile sizes: sized so double-buffered bf16 operands + f32 accumulator stay
# well under v7x's 64 MiB VMEM (~6 MiB at N=512); still big enough to amortize
# per-grid-step overhead (~0.35 us/step) on v5e/v6e.
TM = 512            # im2col rows per grid step
TK = 1024           # contraction (kh*kw*cin) chunk per grid step
VMEM_LIMIT = 48 * 1024 * 1024

# (cin, cout, kernel, stride, pad, use_bias, has_bn, activation)
LAYER_CFG = (
    (3,   64,  4, 2, 1, True,  False, "leaky"),    # Conv + LeakyReLU
    (64,  128, 4, 2, 1, False, True,  "leaky"),    # Conv + BN + LeakyReLU
    (128, 256, 4, 2, 1, False, True,  "leaky"),    # Conv + BN + LeakyReLU
    (256, 512, 4, 1, 1, False, True,  "leaky"),    # Conv + BN + LeakyReLU
    (512, 1,   2, 1, 1, True,  False, "sigmoid"),  # Conv + Sigmoid
)


def _round_up(x, m):
    return (x + m - 1) // m * m


def _pad_k(k_real):
    """Contraction-dim padding: at least 128, and a multiple of TK if > TK."""
    kp = _round_up(max(k_real, 128), 128)
    if kp > TK:
        kp = _round_up(kp, TK)
    return kp


def _pad_n(n):
    """Lane-pad output channels to a multiple of 128 (dense vst path)."""
    return _round_up(max(n, 128), 128)


# ---------------------------------------------------------------------------
# Pallas kernels
# ---------------------------------------------------------------------------
def _conv_act_kernel(x_ref, w_ref, b_ref, o_ref, acc_ref, *, activation):
    """Tiled matmul with f32 accumulator; bias + activation in K-finalize."""
    k = pl.program_id(1)

    @pl.when(k == 0)
    def _():
        acc_ref[...] = jnp.zeros_like(acc_ref)

    acc_ref[...] += jnp.dot(x_ref[...], w_ref[...],
                            preferred_element_type=jnp.float32)

    @pl.when(k == pl.num_programs(1) - 1)
    def _():
        y = acc_ref[...] + b_ref[...]
        if activation == "leaky":
            y = jnp.where(y >= 0, y, LEAKY_SLOPE * y)
        elif activation == "sigmoid":
            y = jax.nn.sigmoid(y)
        o_ref[...] = y.astype(o_ref.dtype)


def _conv_bn_stats_kernel(x_ref, w_ref, o_ref, sum_ref, sq_ref, acc_ref):
    """Tiled matmul (bias-free) that also emits per-M-tile channel sums /
    sums-of-squares in the K-finalize branch (fused BN statistics).  The
    un-normalized conv output is stored in bf16; stats use the f32 acc."""
    k = pl.program_id(1)

    @pl.when(k == 0)
    def _():
        acc_ref[...] = jnp.zeros_like(acc_ref)

    acc_ref[...] += jnp.dot(x_ref[...], w_ref[...],
                            preferred_element_type=jnp.float32)

    @pl.when(k == pl.num_programs(1) - 1)
    def _():
        y = acc_ref[...]
        o_ref[...] = y.astype(o_ref.dtype)
        # Cross-sublane reductions go to the XLU slot (free next to the MXU).
        sum_ref[...] = jnp.sum(y, axis=0, keepdims=True)[None]
        sq_ref[...] = jnp.sum(y * y, axis=0, keepdims=True)[None]


def _affine_leaky_kernel(x_ref, scale_ref, shift_ref, o_ref):
    y = x_ref[...].astype(jnp.float32) * scale_ref[...] + shift_ref[...]
    y = jnp.where(y >= 0, y, LEAKY_SLOPE * y)
    o_ref[...] = y.astype(o_ref.dtype)


# ---------------------------------------------------------------------------
# Pallas call wrappers
# ---------------------------------------------------------------------------
def _tiles(M, K):
    tm = TM if M > TM else M          # M pre-padded to a multiple of TM if > TM
    tk = TK if K > TK else K          # K pre-padded to a multiple of TK if > TK
    return tm, tk, M // tm, K // tk


def conv_matmul_act(cols, w, b, activation, out_dtype):
    M, K = cols.shape
    _, N = w.shape
    tm, tk, num_m, num_k = _tiles(M, K)
    kern = functools.partial(_conv_act_kernel, activation=activation)
    return pl.pallas_call(
        kern,
        out_shape=jax.ShapeDtypeStruct((M, N), out_dtype),
        grid=(num_m, num_k),
        in_specs=[
            pl.BlockSpec((tm, tk), lambda i, k: (i, k)),
            pl.BlockSpec((tk, N), lambda i, k: (k, 0)),
            pl.BlockSpec((1, N), lambda i, k: (0, 0)),
        ],
        out_specs=pl.BlockSpec((tm, N), lambda i, k: (i, 0)),
        scratch_shapes=[pltpu.VMEM((tm, N), jnp.float32)],
        compiler_params=pltpu.CompilerParams(
            dimension_semantics=("parallel", "arbitrary"),
            vmem_limit_bytes=VMEM_LIMIT),
    )(cols, w, b)


def conv_matmul_bn(cols, w):
    M, K = cols.shape
    _, N = w.shape
    tm, tk, num_m, num_k = _tiles(M, K)
    y, psum, psq = pl.pallas_call(
        _conv_bn_stats_kernel,
        out_shape=(jax.ShapeDtypeStruct((M, N), jnp.bfloat16),
                   jax.ShapeDtypeStruct((num_m, 1, N), jnp.float32),
                   jax.ShapeDtypeStruct((num_m, 1, N), jnp.float32)),
        grid=(num_m, num_k),
        in_specs=[
            pl.BlockSpec((tm, tk), lambda i, k: (i, k)),
            pl.BlockSpec((tk, N), lambda i, k: (k, 0)),
        ],
        out_specs=(
            pl.BlockSpec((tm, N), lambda i, k: (i, 0)),
            pl.BlockSpec((1, 1, N), lambda i, k: (i, 0, 0)),
            pl.BlockSpec((1, 1, N), lambda i, k: (i, 0, 0)),
        ),
        scratch_shapes=[pltpu.VMEM((tm, N), jnp.float32)],
        compiler_params=pltpu.CompilerParams(
            dimension_semantics=("parallel", "arbitrary"),
            vmem_limit_bytes=VMEM_LIMIT),
    )(cols, w)
    return y, psum[:, 0, :], psq[:, 0, :]


def affine_leaky(y2d, scale, shift, out_dtype):
    M, C = y2d.shape
    tm = TM if (M > TM and M % TM == 0) else M
    num_m = M // tm
    return pl.pallas_call(
        _affine_leaky_kernel,
        out_shape=jax.ShapeDtypeStruct((M, C), out_dtype),
        grid=(num_m,),
        in_specs=[
            pl.BlockSpec((tm, C), lambda i: (i, 0)),
            pl.BlockSpec((1, C), lambda i: (0, 0)),
            pl.BlockSpec((1, C), lambda i: (0, 0)),
        ],
        out_specs=pl.BlockSpec((tm, C), lambda i: (i, 0)),
        compiler_params=pltpu.CompilerParams(
            dimension_semantics=("parallel",),
            vmem_limit_bytes=VMEM_LIMIT),
    )(y2d, scale, shift)


# ---------------------------------------------------------------------------
# Plain-JAX glue
# ---------------------------------------------------------------------------
def im2col(x_nhwc, kh, kw, stride, pad):
    """Extract conv patches; column order = (kh, kw, cin)."""
    N, H, W, C = x_nhwc.shape
    xp = jnp.pad(x_nhwc, ((0, 0), (pad, pad), (pad, pad), (0, 0)))
    OH = (H + 2 * pad - kh) // stride + 1
    OW = (W + 2 * pad - kw) // stride + 1
    patches = []
    for i in range(kh):
        for j in range(kw):
            patches.append(
                xp[:, i:i + stride * OH:stride, j:j + stride * OW:stride, :])
    cols = jnp.concatenate(patches, axis=-1)          # (N, OH, OW, kh*kw*C)
    return cols.reshape(N * OH * OW, kh * kw * C), OH, OW


def init_params(key):
    params = {}
    for idx, (cin, cout, k, _s, _p, use_bias, has_bn, _act) in enumerate(LAYER_CFG):
        key, k_w, k_b = jax.random.split(key, 3)
        k_real = k * k * cin
        k_pad = _pad_k(k_real)
        n_pad = _pad_n(cout)
        w = jnp.zeros((k_pad, n_pad), jnp.float32)
        w = w.at[:k_real, :cout].set(
            0.02 * jax.random.normal(k_w, (k_real, cout), jnp.float32))
        b = jnp.zeros((1, n_pad), jnp.float32)
        if use_bias:
            b = b.at[:, :cout].set(
                0.02 * jax.random.normal(k_b, (1, cout), jnp.float32))
        params[f"w{idx}"] = w
        params[f"b{idx}"] = b
        if has_bn:
            # PyTorch BatchNorm2d default init: weight=1, bias=0 (padded lanes
            # stay identity so they remain zero through the affine pass).
            params[f"gamma{idx}"] = jnp.ones((1, n_pad), jnp.float32)
            params[f"beta{idx}"] = jnp.zeros((1, n_pad), jnp.float32)
    return params


def discriminator_forward(x_nchw, params):
    # NCHW -> NHWC once; keep activations in bf16 between layers.
    x = jnp.transpose(x_nchw, (0, 2, 3, 1)).astype(jnp.bfloat16)
    n_batch = x.shape[0]
    n_layers = len(LAYER_CFG)
    for idx, (cin, cout, k, stride, pad, _ub, has_bn, act) in enumerate(LAYER_CFG):
        cols, OH, OW = im2col(x, k, k, stride, pad)
        M, K_real = cols.shape
        K_pad = _pad_k(K_real)
        M_pad = M if M <= TM else _round_up(M, TM)
        if K_pad != K_real or M_pad != M:
            cols = jnp.pad(cols, ((0, M_pad - M), (0, K_pad - K_real)))
        cols = cols.astype(jnp.bfloat16)
        w = params[f"w{idx}"].astype(jnp.bfloat16)

        if has_bn:
            # Conv (no bias) with fused per-tile BN statistics (training-mode
            # batch stats, as in a freshly constructed PyTorch module).
            y, psum, psq = conv_matmul_bn(cols, w)
            total = jnp.sum(psum, axis=0, keepdims=True)        # (1, N)
            total_sq = jnp.sum(psq, axis=0, keepdims=True)      # (1, N)
            mean = total / M                                    # real row count
            var = jnp.maximum(total_sq / M - mean * mean, 0.0)  # biased variance
            inv = jax.lax.rsqrt(var + BN_EPS)
            scale = params[f"gamma{idx}"] * inv
            shift = params[f"beta{idx}"] - mean * scale
            y = affine_leaky(y, scale, shift, out_dtype=jnp.bfloat16)
        else:
            out_dtype = jnp.float32 if idx == n_layers - 1 else jnp.bfloat16
            y = conv_matmul_act(cols, w, params[f"b{idx}"], act, out_dtype)

        x = y[:M, :cout].reshape(n_batch, OH, OW, cout)
    return jnp.transpose(x, (0, 3, 1, 2)).astype(jnp.float32)  # back to NCHW


if __name__ == "__main__":
    key = jax.random.PRNGKey(0)
    key, k_x = jax.random.split(key)
    x = jax.random.normal(k_x, (2, 3, 16, 16), jnp.float32)  # NCHW input
    params = init_params(key)

    out = jax.jit(discriminator_forward)(x, params)
    out = jax.block_until_ready(out)

    assert out.shape == (2, 1, 2, 2), out.shape
    assert bool(jnp.all(jnp.isfinite(out)))
    assert bool(jnp.all((out >= 0.0) & (out <= 1.0)))  # sigmoid output
    print("KERNEL_OK")
</pallas_src>

<mosaic_0001>
module attributes {stable_mosaic.version = 11 : i64} {
  func.func @_conv_act_kernel(%arg0: i32, %arg1: i32, %arg2: memref<128x128xbf16, #tpu.memory_space<vmem>>, %arg3: memref<128x128xbf16, #tpu.memory_space<vmem>>, %arg4: memref<1x128xf32, #tpu.memory_space<vmem>>, %arg5: memref<128x128xbf16, #tpu.memory_space<vmem>>, %arg6: memref<128x128xf32, #tpu.memory_space<vmem>>) attributes {dimension_semantics = [#tpu.dimension_semantics<parallel>, #tpu.dimension_semantics<arbitrary>], iteration_bounds = array<i64: 1, 1>, scalar_prefetch = 0 : i64, scratch_operands = 1 : i64, tpu.core_type = #tpu.core_type<tc>, window_params = [{transform_indices = @transform_0, window_bounds = array<i64: 128, 128>}, {transform_indices = @transform_1, window_bounds = array<i64: 128, 128>}, {pipeline_mode = #tpu.pipeline_mode<synchronous>, transform_indices = @transform_2, window_bounds = array<i64: 1, 128>}, {transform_indices = @transform_3, window_bounds = array<i64: 128, 128>}]} {
    %c0_i32 = arith.constant 0 : i32
    %0 = arith.cmpi eq, %arg1, %c0_i32 : i32
    %1 = arith.extui %0 : i1 to i32
    %c0_i32_0 = arith.constant 0 : i32
    %2 = arith.cmpi ne, %1, %c0_i32_0 : i32
    scf.if %2 {
      %cst_10 = arith.constant 0.000000e+00 : f32
      %12 = vector.broadcast %cst_10 : f32 to vector<128x128xf32>
      %c0_11 = arith.constant 0 : index
      %c0_12 = arith.constant 0 : index
      %13 = vector.load %arg6[%c0_11, %c0_12] : memref<128x128xf32, #tpu.memory_space<vmem>>, vector<128x128xf32>
      tpu.vector_store %arg6[%c0_11, %c0_12], %12 {strides = array<i32>} : memref<128x128xf32, #tpu.memory_space<vmem>>, vector<128x128xf32>,
    } else {
    }
    %c0 = arith.constant 0 : index
    %c0_1 = arith.constant 0 : index
    %3 = vector.load %arg6[%c0, %c0_1] : memref<128x128xf32, #tpu.memory_space<vmem>>, vector<128x128xf32>
    %c0_2 = arith.constant 0 : index
    %c0_3 = arith.constant 0 : index
    %4 = vector.load %arg2[%c0_2, %c0_3] : memref<128x128xbf16, #tpu.memory_space<vmem>>, vector<128x128xbf16>
    %c0_4 = arith.constant 0 : index
    %c0_5 = arith.constant 0 : index
    %5 = vector.load %arg3[%c0_4, %c0_5] : memref<128x128xbf16, #tpu.memory_space<vmem>>, vector<128x128xbf16>
    %cst = arith.constant dense<0.000000e+00> : vector<128x128xf32>
    %6 = tpu.matmul %4, %5, %cst {dimension_numbers = #tpu.dot_dimension_numbers<[1], [0], [0], [1], [0, 0, 1, 1], [], []>} : vector<128x128xbf16>, vector<128x128xbf16>, vector<128x128xf32> -> vector<128x128xf32>
    %7 = arith.addf %3, %6 : vector<128x128xf32>
    %c0_6 = arith.constant 0 : index
    %c0_7 = arith.constant 0 : index
    %8 = vector.load %arg6[%c0_6, %c0_7] : memref<128x128xf32, #tpu.memory_space<vmem>>, vector<128x128xf32>
    tpu.vector_store %arg6[%c0_6, %c0_7], %7 {strides = array<i32>} : memref<128x128xf32, #tpu.memory_space<vmem>>, vector<128x128xf32>,
    %c0_i32_8 = arith.constant 0 : i32
    %9 = arith.cmpi eq, %arg1, %c0_i32_8 : i32
    %10 = arith.extui %9 : i1 to i32
    %c0_i32_9 = arith.constant 0 : i32
    %11 = arith.cmpi ne, %10, %c0_i32_9 : i32
    scf.if %11 {
      %c0_10 = arith.constant 0 : index
      %c0_11 = arith.constant 0 : index
      %12 = vector.load %arg6[%c0_10, %c0_11] : memref<128x128xf32, #tpu.memory_space<vmem>>, vector<128x128xf32>
      %c0_12 = arith.constant 0 : index
      %c0_13 = arith.constant 0 : index
      %13 = vector.load %arg4[%c0_12, %c0_13] : memref<1x128xf32, #tpu.memory_space<vmem>>, vector<1x128xf32>
      %14 = vector.broadcast %13 : vector<1x128xf32> to vector<128x128xf32>
      %15 = arith.addf %12, %14 : vector<128x128xf32>
      %cst_14 = arith.constant 0.000000e+00 : f32
      %16 = vector.broadcast %cst_14 : f32 to vector<128x128xf32>
      %17 = arith.cmpf oge, %15, %16 : vector<128x128xf32>
      %cst_15 = arith.constant 2.000000e-01 : f32
      %18 = vector.broadcast %cst_15 : f32 to vector<128x128xf32>
      %19 = arith.mulf %18, %15 : vector<128x128xf32>
      %20 = arith.select %17, %15, %19 : vector<128x128xi1>, vector<128x128xf32>
      %21 = arith.truncf %20 : vector<128x128xf32> to vector<128x128xbf16>
      %c0_16 = arith.constant 0 : index
      %c0_17 = arith.constant 0 : index
      %22 = vector.load %arg5[%c0_16, %c0_17] : memref<128x128xbf16, #tpu.memory_space<vmem>>, vector<128x128xbf16>
      tpu.vector_store %arg5[%c0_16, %c0_17], %21 {strides = array<i32>} : memref<128x128xbf16, #tpu.memory_space<vmem>>, vector<128x128xbf16>,
    } else {
    }
    return
  }
  func.func @transform_0(%arg0: i32, %arg1: i32) -> (i32, i32) {
    %c0_i32 = arith.constant 0 : i32
    return %arg0, %arg1 : i32, i32
  }
  func.func @transform_1(%arg0: i32, %arg1: i32) -> (i32, i32) {
    %c0_i32 = arith.constant 0 : i32
    %c0_i32_0 = arith.constant 0 : i32
    return %arg1, %c0_i32 : i32, i32
  }
  func.func @transform_2(%arg0: i32, %arg1: i32) -> (i32, i32) {
    %c0_i32 = arith.constant 0 : i32
    %c0_i32_0 = arith.constant 0 : i32
    %c0_i32_1 = arith.constant 0 : i32
    return %c0_i32, %c0_i32_0 : i32, i32
  }
  func.func @transform_3(%arg0: i32, %arg1: i32) -> (i32, i32) {
    %c0_i32 = arith.constant 0 : i32
    %c0_i32_0 = arith.constant 0 : i32
    return %arg0, %c0_i32 : i32, i32
  }
}

module attributes {stable_mosaic.version = 11 : i64} {
  func.func @_conv_bn_stats_kernel(%arg0: i32, %arg1: i32, %arg2: memref<32x1024xbf16, #tpu.memory_space<vmem>>, %arg3: memref<1024x128xbf16, #tpu.memory_space<vmem>>, %arg4: memref<32x128xbf16, #tpu.memory_space<vmem>>, %arg5: memref<1x1x128xf32, #tpu.memory_space<vmem>>, %arg6: memref<1x1x128xf32, #tpu.memory_space<vmem>>, %arg7: memref<32x128xf32, #tpu.memory_space<vmem>>) attributes {dimension_semantics = [#tpu.dimension_semantics<parallel>, #tpu.dimension_semantics<arbitrary>], iteration_bounds = array<i64: 1, 1>, scalar_prefetch = 0 : i64, scratch_operands = 1 : i64, tpu.core_type = #tpu.core_type<tc>, window_params = [{transform_indices = @transform_0, window_bounds = array<i64: 32, 1024>}, {transform_indices = @transform_1, window_bounds = array<i64: 1024, 128>}, {transform_indices = @transform_2, window_bounds = array<i64: 32, 128>}, {transform_indices = @transform_3, window_bounds = array<i64: 1, 1, 128>}, {transform_indices = @transform_4, window_bounds = array<i64: 1, 1, 128>}]} {
    %c0_i32 = arith.constant 0 : i32
    %0 = arith.cmpi eq, %arg1, %c0_i32 : i32
    %1 = arith.extui %0 : i1 to i32
    %c0_i32_0 = arith.constant 0 : i32
    %2 = arith.cmpi ne, %1, %c0_i32_0 : i32
    scf.if %2 {
      %cst_10 = arith.constant 0.000000e+00 : f32
      %12 = vector.broadcast %cst_10 : f32 to vector<32x128xf32>
      %c0_11 = arith.constant 0 : index
      %c0_12 = arith.constant 0 : index
      %13 = vector.load %arg7[%c0_11, %c0_12] : memref<32x128xf32, #tpu.memory_space<vmem>>, vector<32x128xf32>
      tpu.vector_store %arg7[%c0_11, %c0_12], %12 {strides = array<i32>} : memref<32x128xf32, #tpu.memory_space<vmem>>, vector<32x128xf32>,
    } else {
    }
    %c0 = arith.constant 0 : index
    %c0_1 = arith.constant 0 : index
    %3 = vector.load %arg7[%c0, %c0_1] : memref<32x128xf32, #tpu.memory_space<vmem>>, vector<32x128xf32>
    %c0_2 = arith.constant 0 : index
    %c0_3 = arith.constant 0 : index
    %4 = vector.load %arg2[%c0_2, %c0_3] : memref<32x1024xbf16, #tpu.memory_space<vmem>>, vector<32x1024xbf16>
    %c0_4 = arith.constant 0 : index
    %c0_5 = arith.constant 0 : index
    %5 = vector.load %arg3[%c0_4, %c0_5] : memref<1024x128xbf16, #tpu.memory_space<vmem>>, vector<1024x128xbf16>
    %cst = arith.constant dense<0.000000e+00> : vector<32x128xf32>
    %6 = tpu.matmul %4, %5, %cst {dimension_numbers = #tpu.dot_dimension_numbers<[1], [0], [0], [1], [0, 0, 1, 1], [], []>} : vector<32x1024xbf16>, vector<1024x128xbf16>, vector<32x128xf32> -> vector<32x128xf32>
    %7 = arith.addf %3, %6 : vector<32x128xf32>
    %c0_6 = arith.constant 0 : index
    %c0_7 = arith.constant 0 : index
    %8 = vector.load %arg7[%c0_6, %c0_7] : memref<32x128xf32, #tpu.memory_space<vmem>>, vector<32x128xf32>
    tpu.vector_store %arg7[%c0_6, %c0_7], %7 {strides = array<i32>} : memref<32x128xf32, #tpu.memory_space<vmem>>, vector<32x128xf32>,
    %c0_i32_8 = arith.constant 0 : i32
    %9 = arith.cmpi eq, %arg1, %c0_i32_8 : i32
    %10 = arith.extui %9 : i1 to i32
    %c0_i32_9 = arith.constant 0 : i32
    %11 = arith.cmpi ne, %10, %c0_i32_9 : i32
    scf.if %11 {
      %c0_10 = arith.constant 0 : index
      %c0_11 = arith.constant 0 : index
      %12 = vector.load %arg7[%c0_10, %c0_11] : memref<32x128xf32, #tpu.memory_space<vmem>>, vector<32x128xf32>
      %13 = arith.truncf %12 : vector<32x128xf32> to vector<32x128xbf16>
      %c0_12 = arith.constant 0 : index
      %c0_13 = arith.constant 0 : index
      %14 = vector.load %arg4[%c0_12, %c0_13] : memref<32x128xbf16, #tpu.memory_space<vmem>>, vector<32x128xbf16>
      tpu.vector_store %arg4[%c0_12, %c0_13], %13 {strides = array<i32>} : memref<32x128xbf16, #tpu.memory_space<vmem>>, vector<32x128xbf16>,
      %cst_14 = arith.constant dense<0.000000e+00> : vector<128xf32>
      %15 = vector.multi_reduction <add>, %12, %cst_14 [0] : vector<32x128xf32> to vector<128xf32>
      %16 = vector.shape_cast %15 : vector<128xf32> to vector<1x128xf32>
      %17 = vector.shape_cast %16 : vector<1x128xf32> to vector<1x1x128xf32>
      %c0_15 = arith.constant 0 : index
      %c0_16 = arith.constant 0 : index
      %c0_17 = arith.constant 0 : index
      %18 = vector.load %arg5[%c0_15, %c0_16, %c0_17] : memref<1x1x128xf32, #tpu.memory_space<vmem>>, vector<1x1x128xf32>
      tpu.vector_store %arg5[%c0_15, %c0_16, %c0_17], %17 {strides = array<i32>} : memref<1x1x128xf32, #tpu.memory_space<vmem>>, vector<1x1x128xf32>,
      %19 = arith.mulf %12, %12 : vector<32x128xf32>
      %cst_18 = arith.constant dense<0.000000e+00> : vector<128xf32>
      %20 = vector.multi_reduction <add>, %19, %cst_18 [0] : vector<32x128xf32> to vector<128xf32>
      %21 = vector.shape_cast %20 : vector<128xf32> to vector<1x128xf32>
      %22 = vector.shape_cast %21 : vector<1x128xf32> to vector<1x1x128xf32>
      %c0_19 = arith.constant 0 : index
      %c0_20 = arith.constant 0 : index
      %c0_21 = arith.constant 0 : index
      %23 = vector.load %arg6[%c0_19, %c0_20, %c0_21] : memref<1x1x128xf32, #tpu.memory_space<vmem>>, vector<1x1x128xf32>
      tpu.vector_store %arg6[%c0_19, %c0_20, %c0_21], %22 {strides = array<i32>} : memref<1x1x128xf32, #tpu.memory_space<vmem>>, vector<1x1x128xf32>,
    } else {
    }
    return
  }
  func.func @transform_0(%arg0: i32, %arg1: i32) -> (i32, i32) {
    %c0_i32 = arith.constant 0 : i32
    return %arg0, %arg1 : i32, i32
  }
  func.func @transform_1(%arg0: i32, %arg1: i32) -> (i32, i32) {
    %c0_i32 = arith.constant 0 : i32
    %c0_i32_0 = arith.constant 0 : i32
    return %arg1, %c0_i32 : i32, i32
  }
  func.func @transform_2(%arg0: i32, %arg1: i32) -> (i32, i32) {
    %c0_i32 = arith.constant 0 : i32
    %c0_i32_0 = arith.constant 0 : i32
    return %arg0, %c0_i32 : i32, i32
  }
  func.func @transform_3(%arg0: i32, %arg1: i32) -> (i32, i32, i32) {
    %c0_i32 = arith.constant 0 : i32
    %c0_i32_0 = arith.constant 0 : i32
    %c0_i32_1 = arith.constant 0 : i32
    return %arg0, %c0_i32, %c0_i32_0 : i32, i32, i32
  }
  func.func @transform_4(%arg0: i32, %arg1: i32) -> (i32, i32, i32) {
    %c0_i32 = arith.constant 0 : i32
    %c0_i32_0 = arith.constant 0 : i32
    %c0_i32_1 = arith.constant 0 : i32
    return %arg0, %c0_i32, %c0_i32_0 : i32, i32, i32
  }
}

module attributes {stable_mosaic.version = 11 : i64} {
  func.func @_affine_leaky_kernel(%arg0: i32, %arg1: memref<32x128xbf16, #tpu.memory_space<vmem>>, %arg2: memref<1x128xf32, #tpu.memory_space<vmem>>, %arg3: memref<1x128xf32, #tpu.memory_space<vmem>>, %arg4: memref<32x128xbf16, #tpu.memory_space<vmem>>) attributes {dimension_semantics = [#tpu.dimension_semantics<parallel>], iteration_bounds = array<i64: 1>, scalar_prefetch = 0 : i64, scratch_operands = 0 : i64, tpu.core_type = #tpu.core_type<tc>, window_params = [{transform_indices = @transform_0, window_bounds = array<i64: 32, 128>}, {pipeline_mode = #tpu.pipeline_mode<synchronous>, transform_indices = @transform_1, window_bounds = array<i64: 1, 128>}, {pipeline_mode = #tpu.pipeline_mode<synchronous>, transform_indices = @transform_2, window_bounds = array<i64: 1, 128>}, {transform_indices = @transform_3, window_bounds = array<i64: 32, 128>}]} {
    %c0 = arith.constant 0 : index
    %c0_0 = arith.constant 0 : index
    %0 = vector.load %arg1[%c0, %c0_0] : memref<32x128xbf16, #tpu.memory_space<vmem>>, vector<32x128xbf16>
    %1 = arith.extf %0 : vector<32x128xbf16> to vector<32x128xf32>
    %c0_1 = arith.constant 0 : index
    %c0_2 = arith.constant 0 : index
    %2 = vector.load %arg2[%c0_1, %c0_2] : memref<1x128xf32, #tpu.memory_space<vmem>>, vector<1x128xf32>
    %3 = vector.broadcast %2 : vector<1x128xf32> to vector<32x128xf32>
    %4 = arith.mulf %1, %3 : vector<32x128xf32>
    %c0_3 = arith.constant 0 : index
    %c0_4 = arith.constant 0 : index
    %5 = vector.load %arg3[%c0_3, %c0_4] : memref<1x128xf32, #tpu.memory_space<vmem>>, vector<1x128xf32>
    %6 = vector.broadcast %5 : vector<1x128xf32> to vector<32x128xf32>
    %7 = arith.addf %4, %6 : vector<32x128xf32>
    %cst = arith.constant 0.000000e+00 : f32
    %8 = vector.broadcast %cst : f32 to vector<32x128xf32>
    %9 = arith.cmpf oge, %7, %8 : vector<32x128xf32>
    %cst_5 = arith.constant 2.000000e-01 : f32
    %10 = vector.broadcast %cst_5 : f32 to vector<32x128xf32>
    %11 = arith.mulf %10, %7 : vector<32x128xf32>
    %12 = arith.select %9, %7, %11 : vector<32x128xi1>, vector<32x128xf32>
    %13 = arith.truncf %12 : vector<32x128xf32> to vector<32x128xbf16>
    %c0_6 = arith.constant 0 : index
    %c0_7 = arith.constant 0 : index
    %14 = vector.load %arg4[%c0_6, %c0_7] : memref<32x128xbf16, #tpu.memory_space<vmem>>, vector<32x128xbf16>
    tpu.vector_store %arg4[%c0_6, %c0_7], %13 {strides = array<i32>} : memref<32x128xbf16, #tpu.memory_space<vmem>>, vector<32x128xbf16>,
    return
  }
  func.func @transform_0(%arg0: i32) -> (i32, i32) {
    %c0_i32 = arith.constant 0 : i32
    %c0_i32_0 = arith.constant 0 : i32
    return %arg0, %c0_i32 : i32, i32
  }
  func.func @transform_1(%arg0: i32) -> (i32, i32) {
    %c0_i32 = arith.constant 0 : i32
    %c0_i32_0 = arith.constant 0 : i32
    %c0_i32_1 = arith.constant 0 : i32
    return %c0_i32, %c0_i32_0 : i32, i32
  }
  func.func @transform_2(%arg0: i32) -> (i32, i32) {
    %c0_i32 = arith.constant 0 : i32
    %c0_i32_0 = arith.constant 0 : i32
    %c0_i32_1 = arith.constant 0 : i32
    return %c0_i32, %c0_i32_0 : i32, i32
  }
  func.func @transform_3(%arg0: i32) -> (i32, i32) {
    %c0_i32 = arith.constant 0 : i32
    %c0_i32_0 = arith.constant 0 : i32
    return %arg0, %c0_i32 : i32, i32
  }
}

module attributes {stable_mosaic.version = 11 : i64} {
  func.func @_affine_leaky_kernel(%arg0: i32, %arg1: memref<8x256xbf16, #tpu.memory_space<vmem>>, %arg2: memref<1x256xf32, #tpu.memory_space<vmem>>, %arg3: memref<1x256xf32, #tpu.memory_space<vmem>>, %arg4: memref<8x256xbf16, #tpu.memory_space<vmem>>) attributes {dimension_semantics = [#tpu.dimension_semantics<parallel>], iteration_bounds = array<i64: 1>, scalar_prefetch = 0 : i64, scratch_operands = 0 : i64, tpu.core_type = #tpu.core_type<tc>, window_params = [{transform_indices = @transform_0, window_bounds = array<i64: 8, 256>}, {pipeline_mode = #tpu.pipeline_mode<synchronous>, transform_indices = @transform_1, window_bounds = array<i64: 1, 256>}, {pipeline_mode = #tpu.pipeline_mode<synchronous>, transform_indices = @transform_2, window_bounds = array<i64: 1, 256>}, {transform_indices = @transform_3, window_bounds = array<i64: 8, 256>}]} {
    %c0 = arith.constant 0 : index
    %c0_0 = arith.constant 0 : index
    %0 = vector.load %arg1[%c0, %c0_0] : memref<8x256xbf16, #tpu.memory_space<vmem>>, vector<8x256xbf16>
    %1 = arith.extf %0 : vector<8x256xbf16> to vector<8x256xf32>
    %c0_1 = arith.constant 0 : index
    %c0_2 = arith.constant 0 : index
    %2 = vector.load %arg2[%c0_1, %c0_2] : memref<1x256xf32, #tpu.memory_space<vmem>>, vector<1x256xf32>
    %3 = vector.broadcast %2 : vector<1x256xf32> to vector<8x256xf32>
    %4 = arith.mulf %1, %3 : vector<8x256xf32>
    %c0_3 = arith.constant 0 : index
    %c0_4 = arith.constant 0 : index
    %5 = vector.load %arg3[%c0_3, %c0_4] : memref<1x256xf32, #tpu.memory_space<vmem>>, vector<1x256xf32>
    %6 = vector.broadcast %5 : vector<1x256xf32> to vector<8x256xf32>
    %7 = arith.addf %4, %6 : vector<8x256xf32>
    %cst = arith.constant 0.000000e+00 : f32
    %8 = vector.broadcast %cst : f32 to vector<8x256xf32>
    %9 = arith.cmpf oge, %7, %8 : vector<8x256xf32>
    %cst_5 = arith.constant 2.000000e-01 : f32
    %10 = vector.broadcast %cst_5 : f32 to vector<8x256xf32>
    %11 = arith.mulf %10, %7 : vector<8x256xf32>
    %12 = arith.select %9, %7, %11 : vector<8x256xi1>, vector<8x256xf32>
    %13 = arith.truncf %12 : vector<8x256xf32> to vector<8x256xbf16>
    %c0_6 = arith.constant 0 : index
    %c0_7 = arith.constant 0 : index
    %14 = vector.load %arg4[%c0_6, %c0_7] : memref<8x256xbf16, #tpu.memory_space<vmem>>, vector<8x256xbf16>
    tpu.vector_store %arg4[%c0_6, %c0_7], %13 {strides = array<i32>} : memref<8x256xbf16, #tpu.memory_space<vmem>>, vector<8x256xbf16>,
    return
  }
  func.func @transform_0(%arg0: i32) -> (i32, i32) {
    %c0_i32 = arith.constant 0 : i32
    %c0_i32_0 = arith.constant 0 : i32
    return %arg0, %c0_i32 : i32, i32
  }
  func.func @transform_1(%arg0: i32) -> (i32, i32) {
    %c0_i32 = arith.constant 0 : i32
    %c0_i32_0 = arith.constant 0 : i32
    %c0_i32_1 = arith.constant 0 : i32
    return %c0_i32, %c0_i32_0 : i32, i32
  }
  func.func @transform_2(%arg0: i32) -> (i32, i32) {
    %c0_i32 = arith.constant 0 : i32
    %c0_i32_0 = arith.constant 0 : i32
    %c0_i32_1 = arith.constant 0 : i32
    return %c0_i32, %c0_i32_0 : i32, i32
  }
  func.func @transform_3(%arg0: i32) -> (i32, i32) {
    %c0_i32 = arith.constant 0 : i32
    %c0_i32_0 = arith.constant 0 : i32
    return %arg0, %c0_i32 : i32, i32
  }
}

module attributes {stable_mosaic.version = 11 : i64} {
  func.func @_conv_bn_stats_kernel(%arg0: i32, %arg1: i32, %arg2: memref<8x1024xbf16, #tpu.memory_space<vmem>>, %arg3: memref<1024x256xbf16, #tpu.memory_space<vmem>>, %arg4: memref<8x256xbf16, #tpu.memory_space<vmem>>, %arg5: memref<1x1x256xf32, #tpu.memory_space<vmem>>, %arg6: memref<1x1x256xf32, #tpu.memory_space<vmem>>, %arg7: memref<8x256xf32, #tpu.memory_space<vmem>>) attributes {dimension_semantics = [#tpu.dimension_semantics<parallel>, #tpu.dimension_semantics<arbitrary>], iteration_bounds = array<i64: 1, 2>, scalar_prefetch = 0 : i64, scratch_operands = 1 : i64, tpu.core_type = #tpu.core_type<tc>, window_params = [{transform_indices = @transform_0, window_bounds = array<i64: 8, 1024>}, {transform_indices = @transform_1, window_bounds = array<i64: 1024, 256>}, {transform_indices = @transform_2, window_bounds = array<i64: 8, 256>}, {transform_indices = @transform_3, window_bounds = array<i64: 1, 1, 256>}, {transform_indices = @transform_4, window_bounds = array<i64: 1, 1, 256>}]} {
    %c0_i32 = arith.constant 0 : i32
    %0 = arith.cmpi eq, %arg1, %c0_i32 : i32
    %1 = arith.extui %0 : i1 to i32
    %c0_i32_0 = arith.constant 0 : i32
    %2 = arith.cmpi ne, %1, %c0_i32_0 : i32
    scf.if %2 {
      %cst_9 = arith.constant 0.000000e+00 : f32
      %12 = vector.broadcast %cst_9 : f32 to vector<8x256xf32>
      %c0_10 = arith.constant 0 : index
      %c0_11 = arith.constant 0 : index
      %13 = vector.load %arg7[%c0_10, %c0_11] : memref<8x256xf32, #tpu.memory_space<vmem>>, vector<8x256xf32>
      tpu.vector_store %arg7[%c0_10, %c0_11], %12 {strides = array<i32>} : memref<8x256xf32, #tpu.memory_space<vmem>>, vector<8x256xf32>,
    } else {
    }
    %c0 = arith.constant 0 : index
    %c0_1 = arith.constant 0 : index
    %3 = vector.load %arg7[%c0, %c0_1] : memref<8x256xf32, #tpu.memory_space<vmem>>, vector<8x256xf32>
    %c0_2 = arith.constant 0 : index
    %c0_3 = arith.constant 0 : index
    %4 = vector.load %arg2[%c0_2, %c0_3] : memref<8x1024xbf16, #tpu.memory_space<vmem>>, vector<8x1024xbf16>
    %c0_4 = arith.constant 0 : index
    %c0_5 = arith.constant 0 : index
    %5 = vector.load %arg3[%c0_4, %c0_5] : memref<1024x256xbf16, #tpu.memory_space<vmem>>, vector<1024x256xbf16>
    %cst = arith.constant dense<0.000000e+00> : vector<8x256xf32>
    %6 = tpu.matmul %4, %5, %cst {dimension_numbers = #tpu.dot_dimension_numbers<[1], [0], [0], [1], [0, 0, 1, 1], [], []>} : vector<8x1024xbf16>, vector<1024x256xbf16>, vector<8x256xf32> -> vector<8x256xf32>
    %7 = arith.addf %3, %6 : vector<8x256xf32>
    %c0_6 = arith.constant 0 : index
    %c0_7 = arith.constant 0 : index
    %8 = vector.load %arg7[%c0_6, %c0_7] : memref<8x256xf32, #tpu.memory_space<vmem>>, vector<8x256xf32>
    tpu.vector_store %arg7[%c0_6, %c0_7], %7 {strides = array<i32>} : memref<8x256xf32, #tpu.memory_space<vmem>>, vector<8x256xf32>,
    %c1_i32 = arith.constant 1 : i32
    %9 = arith.cmpi eq, %arg1, %c1_i32 : i32
    %10 = arith.extui %9 : i1 to i32
    %c0_i32_8 = arith.constant 0 : i32
    %11 = arith.cmpi ne, %10, %c0_i32_8 : i32
    scf.if %11 {
      %c0_9 = arith.constant 0 : index
      %c0_10 = arith.constant 0 : index
      %12 = vector.load %arg7[%c0_9, %c0_10] : memref<8x256xf32, #tpu.memory_space<vmem>>, vector<8x256xf32>
      %13 = arith.truncf %12 : vector<8x256xf32> to vector<8x256xbf16>
      %c0_11 = arith.constant 0 : index
      %c0_12 = arith.constant 0 : index
      %14 = vector.load %arg4[%c0_11, %c0_12] : memref<8x256xbf16, #tpu.memory_space<vmem>>, vector<8x256xbf16>
      tpu.vector_store %arg4[%c0_11, %c0_12], %13 {strides = array<i32>} : memref<8x256xbf16, #tpu.memory_space<vmem>>, vector<8x256xbf16>,
      %cst_13 = arith.constant dense<0.000000e+00> : vector<256xf32>
      %15 = vector.multi_reduction <add>, %12, %cst_13 [0] : vector<8x256xf32> to vector<256xf32>
      %16 = vector.shape_cast %15 : vector<256xf32> to vector<1x256xf32>
      %17 = vector.shape_cast %16 : vector<1x256xf32> to vector<1x1x256xf32>
      %c0_14 = arith.constant 0 : index
      %c0_15 = arith.constant 0 : index
      %c0_16 = arith.constant 0 : index
      %18 = vector.load %arg5[%c0_14, %c0_15, %c0_16] : memref<1x1x256xf32, #tpu.memory_space<vmem>>, vector<1x1x256xf32>
      tpu.vector_store %arg5[%c0_14, %c0_15, %c0_16], %17 {strides = array<i32>} : memref<1x1x256xf32, #tpu.memory_space<vmem>>, vector<1x1x256xf32>,
      %19 = arith.mulf %12, %12 : vector<8x256xf32>
      %cst_17 = arith.constant dense<0.000000e+00> : vector<256xf32>
      %20 = vector.multi_reduction <add>, %19, %cst_17 [0] : vector<8x256xf32> to vector<256xf32>
      %21 = vector.shape_cast %20 : vector<256xf32> to vector<1x256xf32>
      %22 = vector.shape_cast %21 : vector<1x256xf32> to vector<1x1x256xf32>
      %c0_18 = arith.constant 0 : index
      %c0_19 = arith.constant 0 : index
      %c0_20 = arith.constant 0 : index
      %23 = vector.load %arg6[%c0_18, %c0_19, %c0_20] : memref<1x1x256xf32, #tpu.memory_space<vmem>>, vector<1x1x256xf32>
      tpu.vector_store %arg6[%c0_18, %c0_19, %c0_20], %22 {strides = array<i32>} : memref<1x1x256xf32, #tpu.memory_space<vmem>>, vector<1x1x256xf32>,
    } else {
    }
    return
  }
  func.func @transform_0(%arg0: i32, %arg1: i32) -> (i32, i32) {
    %c0_i32 = arith.constant 0 : i32
    return %arg0, %arg1 : i32, i32
  }
  func.func @transform_1(%arg0: i32, %arg1: i32) -> (i32, i32) {
    %c0_i32 = arith.constant 0 : i32
    %c0_i32_0 = arith.constant 0 : i32
    return %arg1, %c0_i32 : i32, i32
  }
  func.func @transform_2(%arg0: i32, %arg1: i32) -> (i32, i32) {
    %c0_i32 = arith.constant 0 : i32
    %c0_i32_0 = arith.constant 0 : i32
    return %arg0, %c0_i32 : i32, i32
  }
  func.func @transform_3(%arg0: i32, %arg1: i32) -> (i32, i32, i32) {
    %c0_i32 = arith.constant 0 : i32
    %c0_i32_0 = arith.constant 0 : i32
    %c0_i32_1 = arith.constant 0 : i32
    return %arg0, %c0_i32, %c0_i32_0 : i32, i32, i32
  }
  func.func @transform_4(%arg0: i32, %arg1: i32) -> (i32, i32, i32) {
    %c0_i32 = arith.constant 0 : i32
    %c0_i32_0 = arith.constant 0 : i32
    %c0_i32_1 = arith.constant 0 : i32
    return %arg0, %c0_i32, %c0_i32_0 : i32, i32, i32
  }
}

module attributes {stable_mosaic.version = 11 : i64} {
  func.func @_conv_bn_stats_kernel(%arg0: i32, %arg1: i32, %arg2: memref<2x1024xbf16, #tpu.memory_space<vmem>>, %arg3: memref<1024x512xbf16, #tpu.memory_space<vmem>>, %arg4: memref<2x512xbf16, #tpu.memory_space<vmem>>, %arg5: memref<1x1x512xf32, #tpu.memory_space<vmem>>, %arg6: memref<1x1x512xf32, #tpu.memory_space<vmem>>, %arg7: memref<2x512xf32, #tpu.memory_space<vmem>>) attributes {dimension_semantics = [#tpu.dimension_semantics<parallel>, #tpu.dimension_semantics<arbitrary>], iteration_bounds = array<i64: 1, 4>, scalar_prefetch = 0 : i64, scratch_operands = 1 : i64, tpu.core_type = #tpu.core_type<tc>, window_params = [{transform_indices = @transform_0, window_bounds = array<i64: 2, 1024>}, {transform_indices = @transform_1, window_bounds = array<i64: 1024, 512>}, {transform_indices = @transform_2, window_bounds = array<i64: 2, 512>}, {transform_indices = @transform_3, window_bounds = array<i64: 1, 1, 512>}, {transform_indices = @transform_4, window_bounds = array<i64: 1, 1, 512>}]} {
    %c0_i32 = arith.constant 0 : i32
    %0 = arith.cmpi eq, %arg1, %c0_i32 : i32
    %1 = arith.extui %0 : i1 to i32
    %c0_i32_0 = arith.constant 0 : i32
    %2 = arith.cmpi ne, %1, %c0_i32_0 : i32
    scf.if %2 {
      %cst_9 = arith.constant 0.000000e+00 : f32
      %12 = vector.broadcast %cst_9 : f32 to vector<2x512xf32>
      %c0_10 = arith.constant 0 : index
      %c0_11 = arith.constant 0 : index
      %13 = vector.load %arg7[%c0_10, %c0_11] : memref<2x512xf32, #tpu.memory_space<vmem>>, vector<2x512xf32>
      tpu.vector_store %arg7[%c0_10, %c0_11], %12 {strides = array<i32>} : memref<2x512xf32, #tpu.memory_space<vmem>>, vector<2x512xf32>,
    } else {
    }
    %c0 = arith.constant 0 : index
    %c0_1 = arith.constant 0 : index
    %3 = vector.load %arg7[%c0, %c0_1] : memref<2x512xf32, #tpu.memory_space<vmem>>, vector<2x512xf32>
    %c0_2 = arith.constant 0 : index
    %c0_3 = arith.constant 0 : index
    %4 = vector.load %arg2[%c0_2, %c0_3] : memref<2x1024xbf16, #tpu.memory_space<vmem>>, vector<2x1024xbf16>
    %c0_4 = arith.constant 0 : index
    %c0_5 = arith.constant 0 : index
    %5 = vector.load %arg3[%c0_4, %c0_5] : memref<1024x512xbf16, #tpu.memory_space<vmem>>, vector<1024x512xbf16>
    %cst = arith.constant dense<0.000000e+00> : vector<2x512xf32>
    %6 = tpu.matmul %4, %5, %cst {dimension_numbers = #tpu.dot_dimension_numbers<[1], [0], [0], [1], [0, 0, 1, 1], [], []>} : vector<2x1024xbf16>, vector<1024x512xbf16>, vector<2x512xf32> -> vector<2x512xf32>
    %7 = arith.addf %3, %6 : vector<2x512xf32>
    %c0_6 = arith.constant 0 : index
    %c0_7 = arith.constant 0 : index
    %8 = vector.load %arg7[%c0_6, %c0_7] : memref<2x512xf32, #tpu.memory_space<vmem>>, vector<2x512xf32>
    tpu.vector_store %arg7[%c0_6, %c0_7], %7 {strides = array<i32>} : memref<2x512xf32, #tpu.memory_space<vmem>>, vector<2x512xf32>,
    %c3_i32 = arith.constant 3 : i32
    %9 = arith.cmpi eq, %arg1, %c3_i32 : i32
    %10 = arith.extui %9 : i1 to i32
    %c0_i32_8 = arith.constant 0 : i32
    %11 = arith.cmpi ne, %10, %c0_i32_8 : i32
    scf.if %11 {
      %c0_9 = arith.constant 0 : index
      %c0_10 = arith.constant 0 : index
      %12 = vector.load %arg7[%c0_9, %c0_10] : memref<2x512xf32, #tpu.memory_space<vmem>>, vector<2x512xf32>
      %13 = arith.truncf %12 : vector<2x512xf32> to vector<2x512xbf16>
      %c0_11 = arith.constant 0 : index
      %c0_12 = arith.constant 0 : index
      %14 = vector.load %arg4[%c0_11, %c0_12] : memref<2x512xbf16, #tpu.memory_space<vmem>>, vector<2x512xbf16>
      tpu.vector_store %arg4[%c0_11, %c0_12], %13 {strides = array<i32>} : memref<2x512xbf16, #tpu.memory_space<vmem>>, vector<2x512xbf16>,
      %cst_13 = arith.constant dense<0.000000e+00> : vector<512xf32>
      %15 = vector.multi_reduction <add>, %12, %cst_13 [0] : vector<2x512xf32> to vector<512xf32>
      %16 = vector.shape_cast %15 : vector<512xf32> to vector<1x512xf32>
      %17 = vector.shape_cast %16 : vector<1x512xf32> to vector<1x1x512xf32>
      %c0_14 = arith.constant 0 : index
      %c0_15 = arith.constant 0 : index
      %c0_16 = arith.constant 0 : index
      %18 = vector.load %arg5[%c0_14, %c0_15, %c0_16] : memref<1x1x512xf32, #tpu.memory_space<vmem>>, vector<1x1x512xf32>
      tpu.vector_store %arg5[%c0_14, %c0_15, %c0_16], %17 {strides = array<i32>} : memref<1x1x512xf32, #tpu.memory_space<vmem>>, vector<1x1x512xf32>,
      %19 = arith.mulf %12, %12 : vector<2x512xf32>
      %cst_17 = arith.constant dense<0.000000e+00> : vector<512xf32>
      %20 = vector.multi_reduction <add>, %19, %cst_17 [0] : vector<2x512xf32> to vector<512xf32>
      %21 = vector.shape_cast %20 : vector<512xf32> to vector<1x512xf32>
      %22 = vector.shape_cast %21 : vector<1x512xf32> to vector<1x1x512xf32>
      %c0_18 = arith.constant 0 : index
      %c0_19 = arith.constant 0 : index
      %c0_20 = arith.constant 0 : index
      %23 = vector.load %arg6[%c0_18, %c0_19, %c0_20] : memref<1x1x512xf32, #tpu.memory_space<vmem>>, vector<1x1x512xf32>
      tpu.vector_store %arg6[%c0_18, %c0_19, %c0_20], %22 {strides = array<i32>} : memref<1x1x512xf32, #tpu.memory_space<vmem>>, vector<1x1x512xf32>,
    } else {
    }
    return
  }
  func.func @transform_0(%arg0: i32, %arg1: i32) -> (i32, i32) {
    %c0_i32 = arith.constant 0 : i32
    return %arg0, %arg1 : i32, i32
  }
  func.func @transform_1(%arg0: i32, %arg1: i32) -> (i32, i32) {
    %c0_i32 = arith.constant 0 : i32
    %c0_i32_0 = arith.constant 0 : i32
    return %arg1, %c0_i32 : i32, i32
  }
  func.func @transform_2(%arg0: i32, %arg1: i32) -> (i32, i32) {
    %c0_i32 = arith.constant 0 : i32
    %c0_i32_0 = arith.constant 0 : i32
    return %arg0, %c0_i32 : i32, i32
  }
  func.func @transform_3(%arg0: i32, %arg1: i32) -> (i32, i32, i32) {
    %c0_i32 = arith.constant 0 : i32
    %c0_i32_0 = arith.constant 0 : i32
    %c0_i32_1 = arith.constant 0 : i32
    return %arg0, %c0_i32, %c0_i32_0 : i32, i32, i32
  }
  func.func @transform_4(%arg0: i32, %arg1: i32) -> (i32, i32, i32) {
    %c0_i32 = arith.constant 0 : i32
    %c0_i32_0 = arith.constant 0 : i32
    %c0_i32_1 = arith.constant 0 : i32
    return %arg0, %c0_i32, %c0_i32_0 : i32, i32, i32
  }
}

module attributes {stable_mosaic.version = 11 : i64} {
  func.func @_affine_leaky_kernel(%arg0: i32, %arg1: memref<2x512xbf16, #tpu.memory_space<vmem>>, %arg2: memref<1x512xf32, #tpu.memory_space<vmem>>, %arg3: memref<1x512xf32, #tpu.memory_space<vmem>>, %arg4: memref<2x512xbf16, #tpu.memory_space<vmem>>) attributes {dimension_semantics = [#tpu.dimension_semantics<parallel>], iteration_bounds = array<i64: 1>, scalar_prefetch = 0 : i64, scratch_operands = 0 : i64, tpu.core_type = #tpu.core_type<tc>, window_params = [{transform_indices = @transform_0, window_bounds = array<i64: 2, 512>}, {pipeline_mode = #tpu.pipeline_mode<synchronous>, transform_indices = @transform_1, window_bounds = array<i64: 1, 512>}, {pipeline_mode = #tpu.pipeline_mode<synchronous>, transform_indices = @transform_2, window_bounds = array<i64: 1, 512>}, {transform_indices = @transform_3, window_bounds = array<i64: 2, 512>}]} {
    %c0 = arith.constant 0 : index
    %c0_0 = arith.constant 0 : index
    %0 = vector.load %arg1[%c0, %c0_0] : memref<2x512xbf16, #tpu.memory_space<vmem>>, vector<2x512xbf16>
    %1 = arith.extf %0 : vector<2x512xbf16> to vector<2x512xf32>
    %c0_1 = arith.constant 0 : index
    %c0_2 = arith.constant 0 : index
    %2 = vector.load %arg2[%c0_1, %c0_2] : memref<1x512xf32, #tpu.memory_space<vmem>>, vector<1x512xf32>
    %3 = vector.broadcast %2 : vector<1x512xf32> to vector<2x512xf32>
    %4 = arith.mulf %1, %3 : vector<2x512xf32>
    %c0_3 = arith.constant 0 : index
    %c0_4 = arith.constant 0 : index
    %5 = vector.load %arg3[%c0_3, %c0_4] : memref<1x512xf32, #tpu.memory_space<vmem>>, vector<1x512xf32>
    %6 = vector.broadcast %5 : vector<1x512xf32> to vector<2x512xf32>
    %7 = arith.addf %4, %6 : vector<2x512xf32>
    %cst = arith.constant 0.000000e+00 : f32
    %8 = vector.broadcast %cst : f32 to vector<2x512xf32>
    %9 = arith.cmpf oge, %7, %8 : vector<2x512xf32>
    %cst_5 = arith.constant 2.000000e-01 : f32
    %10 = vector.broadcast %cst_5 : f32 to vector<2x512xf32>
    %11 = arith.mulf %10, %7 : vector<2x512xf32>
    %12 = arith.select %9, %7, %11 : vector<2x512xi1>, vector<2x512xf32>
    %13 = arith.truncf %12 : vector<2x512xf32> to vector<2x512xbf16>
    %c0_6 = arith.constant 0 : index
    %c0_7 = arith.constant 0 : index
    %14 = vector.load %arg4[%c0_6, %c0_7] : memref<2x512xbf16, #tpu.memory_space<vmem>>, vector<2x512xbf16>
    tpu.vector_store %arg4[%c0_6, %c0_7], %13 {strides = array<i32>} : memref<2x512xbf16, #tpu.memory_space<vmem>>, vector<2x512xbf16>,
    return
  }
  func.func @transform_0(%arg0: i32) -> (i32, i32) {
    %c0_i32 = arith.constant 0 : i32
    %c0_i32_0 = arith.constant 0 : i32
    return %arg0, %c0_i32 : i32, i32
  }
  func.func @transform_1(%arg0: i32) -> (i32, i32) {
    %c0_i32 = arith.constant 0 : i32
    %c0_i32_0 = arith.constant 0 : i32
    %c0_i32_1 = arith.constant 0 : i32
    return %c0_i32, %c0_i32_0 : i32, i32
  }
  func.func @transform_2(%arg0: i32) -> (i32, i32) {
    %c0_i32 = arith.constant 0 : i32
    %c0_i32_0 = arith.constant 0 : i32
    %c0_i32_1 = arith.constant 0 : i32
    return %c0_i32, %c0_i32_0 : i32, i32
  }
  func.func @transform_3(%arg0: i32) -> (i32, i32) {
    %c0_i32 = arith.constant 0 : i32
    %c0_i32_0 = arith.constant 0 : i32
    return %arg0, %c0_i32 : i32, i32
  }
}

module attributes {stable_mosaic.version = 11 : i64} {
  func.func @_conv_act_kernel(%arg0: i32, %arg1: i32, %arg2: memref<8x1024xbf16, #tpu.memory_space<vmem>>, %arg3: memref<1024x128xbf16, #tpu.memory_space<vmem>>, %arg4: memref<1x128xf32, #tpu.memory_space<vmem>>, %arg5: memref<8x128xf32, #tpu.memory_space<vmem>>, %arg6: memref<8x128xf32, #tpu.memory_space<vmem>>) attributes {dimension_semantics = [#tpu.dimension_semantics<parallel>, #tpu.dimension_semantics<arbitrary>], iteration_bounds = array<i64: 1, 2>, scalar_prefetch = 0 : i64, scratch_operands = 1 : i64, tpu.core_type = #tpu.core_type<tc>, window_params = [{transform_indices = @transform_0, window_bounds = array<i64: 8, 1024>}, {transform_indices = @transform_1, window_bounds = array<i64: 1024, 128>}, {pipeline_mode = #tpu.pipeline_mode<synchronous>, transform_indices = @transform_2, window_bounds = array<i64: 1, 128>}, {transform_indices = @transform_3, window_bounds = array<i64: 8, 128>}]} {
    %c0_i32 = arith.constant 0 : i32
    %0 = arith.cmpi eq, %arg1, %c0_i32 : i32
    %1 = arith.extui %0 : i1 to i32
    %c0_i32_0 = arith.constant 0 : i32
    %2 = arith.cmpi ne, %1, %c0_i32_0 : i32
    scf.if %2 {
      %cst_9 = arith.constant 0.000000e+00 : f32
      %12 = vector.broadcast %cst_9 : f32 to vector<8x128xf32>
      %c0_10 = arith.constant 0 : index
      %c0_11 = arith.constant 0 : index
      %13 = vector.load %arg6[%c0_10, %c0_11] : memref<8x128xf32, #tpu.memory_space<vmem>>, vector<8x128xf32>
      tpu.vector_store %arg6[%c0_10, %c0_11], %12 {strides = array<i32>} : memref<8x128xf32, #tpu.memory_space<vmem>>, vector<8x128xf32>,
    } else {
    }
    %c0 = arith.constant 0 : index
    %c0_1 = arith.constant 0 : index
    %3 = vector.load %arg6[%c0, %c0_1] : memref<8x128xf32, #tpu.memory_space<vmem>>, vector<8x128xf32>
    %c0_2 = arith.constant 0 : index
    %c0_3 = arith.constant 0 : index
    %4 = vector.load %arg2[%c0_2, %c0_3] : memref<8x1024xbf16, #tpu.memory_space<vmem>>, vector<8x1024xbf16>
    %c0_4 = arith.constant 0 : index
    %c0_5 = arith.constant 0 : index
    %5 = vector.load %arg3[%c0_4, %c0_5] : memref<1024x128xbf16, #tpu.memory_space<vmem>>, vector<1024x128xbf16>
    %cst = arith.constant dense<0.000000e+00> : vector<8x128xf32>
    %6 = tpu.matmul %4, %5, %cst {dimension_numbers = #tpu.dot_dimension_numbers<[1], [0], [0], [1], [0, 0, 1, 1], [], []>} : vector<8x1024xbf16>, vector<1024x128xbf16>, vector<8x128xf32> -> vector<8x128xf32>
    %7 = arith.addf %3, %6 : vector<8x128xf32>
    %c0_6 = arith.constant 0 : index
    %c0_7 = arith.constant 0 : index
    %8 = vector.load %arg6[%c0_6, %c0_7] : memref<8x128xf32, #tpu.memory_space<vmem>>, vector<8x128xf32>
    tpu.vector_store %arg6[%c0_6, %c0_7], %7 {strides = array<i32>} : memref<8x128xf32, #tpu.memory_space<vmem>>, vector<8x128xf32>,
    %c1_i32 = arith.constant 1 : i32
    %9 = arith.cmpi eq, %arg1, %c1_i32 : i32
    %10 = arith.extui %9 : i1 to i32
    %c0_i32_8 = arith.constant 0 : i32
    %11 = arith.cmpi ne, %10, %c0_i32_8 : i32
    scf.if %11 {
      %c0_9 = arith.constant 0 : index
      %c0_10 = arith.constant 0 : index
      %12 = vector.load %arg6[%c0_9, %c0_10] : memref<8x128xf32, #tpu.memory_space<vmem>>, vector<8x128xf32>
      %c0_11 = arith.constant 0 : index
      %c0_12 = arith.constant 0 : index
      %13 = vector.load %arg4[%c0_11, %c0_12] : memref<1x128xf32, #tpu.memory_space<vmem>>, vector<1x128xf32>
      %14 = vector.broadcast %13 : vector<1x128xf32> to vector<8x128xf32>
      %15 = arith.addf %12, %14 : vector<8x128xf32>
      %16 = arith.negf %15 : vector<8x128xf32>
      %17 = math.exp %16 : vector<8x128xf32>
      %cst_13 = arith.constant 1.000000e+00 : f32
      %18 = vector.broadcast %cst_13 : f32 to vector<8x128xf32>
      %19 = arith.addf %18, %17 : vector<8x128xf32>
      %20 = arith.divf %18, %19 : vector<8x128xf32>
      %c0_14 = arith.constant 0 : index
      %c0_15 = arith.constant 0 : index
      %21 = vector.load %arg5[%c0_14, %c0_15] : memref<8x128xf32, #tpu.memory_space<vmem>>, vector<8x128xf32>
      tpu.vector_store %arg5[%c0_14, %c0_15], %20 {strides = array<i32>} : memref<8x128xf32, #tpu.memory_space<vmem>>, vector<8x128xf32>,
    } else {
    }
    return
  }
  func.func @transform_0(%arg0: i32, %arg1: i32) -> (i32, i32) {
    %c0_i32 = arith.constant 0 : i32
    return %arg0, %arg1 : i32, i32
  }
  func.func @transform_1(%arg0: i32, %arg1: i32) -> (i32, i32) {
    %c0_i32 = arith.constant 0 : i32
    %c0_i32_0 = arith.constant 0 : i32
    return %arg1, %c0_i32 : i32, i32
  }
  func.func @transform_2(%arg0: i32, %arg1: i32) -> (i32, i32) {
    %c0_i32 = arith.constant 0 : i32
    %c0_i32_0 = arith.constant 0 : i32
    %c0_i32_1 = arith.constant 0 : i32
    return %c0_i32, %c0_i32_0 : i32, i32
  }
  func.func @transform_3(%arg0: i32, %arg1: i32) -> (i32, i32) {
    %c0_i32 = arith.constant 0 : i32
    %c0_i32_0 = arith.constant 0 : i32
    return %arg0, %c0_i32 : i32, i32
  }
}

</mosaic_0001>

<bundles_post_ra>
// kernel: discriminator_forward.8
= control target key start
LH: loop header
LB: loop body
LE: loop exit
PB: predicated region body
PF: predicated region fallthrough
CT: control target
= control target key end

     0   :  { %8 = vsyncpa [#allocation4], 0  ;;  %s696_s12 = smov [#allocation3]   ;;  %s823_s0 = inlined_call_operand.vmem [shape: bf16[128,128], index: 0, kind: input, shape index: {}]   ;;  %s824_s1 = inlined_call_operand.vmem [shape: bf16[128,128], index: 1, kind: input, shape index: {}]   ;;  %s825_s2 = inlined_call_operand.hbm [shape: f32[1,128], index: 2, kind: input, shape index: {}]   ;;  %s826_s3 = inlined_call_operand.vmem [shape: bf16[128,128], index: 3, kind: output, shape index: {}]  }
   0x1   :  { %s19_s13 = sshll.u32 %s696_s12, 4  ;;  %s672_s16 = scalar_lea.hbm %s825_s2, 16  ;;  %s20_s13 = int_to_ptr.vmem [resolvable:$true] %s19_s13 }
   0x2   :  { %p673_p0 = scmp.ne.s32.totalorder %s825_s2, %s672_s16  ;;  %p676_p1 = scmp.lt.u32.totalorder %s672_s16, %s825_s2 }
   0x4   :  { %p678_p2 = pnand %p676_p1, %p673_p0 }
   0x6   :  { %681 = shalt.err (!%p678_p2)
}
   0x7   :  { %s682_s21 = scalar_lea.vmem %s20_s13, 16  ;;  %s686_s22 = scalar_lea.vmem %s20_s13, 32 }
   0x8   :  { %p683_p3 = scmp.ne.s32.totalorder %s20_s13, %s682_s21  ;;  %p687_p4 = scmp.lt.s32.totalorder %s20_s13, %s20_s13 }
   0x9   :  { %p688_p5 = scmp.lt.s32.totalorder %s686_s22, %s682_s21 }
   0xb   :  { %p689_p6 = por %p688_p5, %p687_p4 }
   0xd   :  { %p690_p7 = pnand %p689_p6, %p683_p3 }
   0xf   :  { %693 = shalt.err (!%p690_p7)
}
  0x10   :  { %22 = dma.hbm_to_vmem [thread:$0]  %s825_s2, 16, %s20_s13, [#allocation4]  }
  0x11   :  { %694 = dma.done.wait [#allocation4], 16  }
  0x12   :  { %695 = vsyncadd [#allocation4], 4294967280  ;;  %v656_v0 = vld [vmem:[%s824_s1] sm:$0xff]   ;;  %v657_v1 = vld [vmem:[%s824_s1 + $0x8] sm:$0xff]  }
  0x13   :  { %607 = vmatprep.subr.bf16.mxu0 %v656_v0  ;;  %639 = vmatprep.subr.bf16.mxu1 %v656_v0  ;;  %v658_v2 = vld [vmem:[%s824_s1 + $0x10] sm:$0xff]   ;;  %v659_v3 = vld [vmem:[%s824_s1 + $0x18] sm:$0xff]   ;;  %v664_v4 = vld [vmem:[%s823_s0] sm:$0xff]  }
  0x14   :  { %608 = vmatpush3.bf16.msra.mxu0 %v656_v0  ;;  %647 = vmatpush3.bf16.msra.mxu1 %v656_v0  ;;  %v665_v5 = vld [vmem:[%s823_s0 + $0x20] sm:$0xff]   ;;  %v661_v7 = vld [vmem:[%s824_s1 + $0x28] sm:$0xff]   ;;  %v662_v8 = vld [vmem:[%s824_s1 + $0x30] sm:$0xff]  }
  0x15   :  { %609 = vmatprep.subr.bf16.mxu0 %v657_v1  ;;  %640 = vmatprep.subr.bf16.mxu1 %v657_v1  ;;  %v660_v6 = vld [vmem:[%s824_s1 + $0x20] sm:$0xff]   ;;  %v663_v9 = vld [vmem:[%s824_s1 + $0x38] sm:$0xff]   ;;  %v666_v10 = vld [vmem:[%s823_s0 + $0x8] sm:$0xff]  }
  0x16   :  { %623 = vmatprep.mubr.bf16.mxu0 %v664_v4  ;;  %631 = vmatprep.mubr.bf16.mxu1 %v665_v5  ;;  %v667_v11 = vld [vmem:[%s823_s0 + $0x28] sm:$0xff]   ;;  %v668_v12 = vld [vmem:[%s823_s0 + $0x10] sm:$0xff]   ;;  %v670_v14 = vld [vmem:[%s823_s0 + $0x18] sm:$0xff]  }
  0x17   :  { %v669_v13 = vld [vmem:[%s823_s0 + $0x30] sm:$0xff]   ;;  %v671_v15 = vld [vmem:[%s823_s0 + $0x38] sm:$0xff]   ;;  %v777_v16 = vld [vmem:[#allocation3] ss:$0 sm:$0xff] }
  0x18   :  { %610 = vmatpush3.bf16.msra.mxu0 %v657_v1  ;;  %648 = vmatpush3.bf16.msra.mxu1 %v657_v1 }
  0x19   :  { %611 = vmatprep.subr.bf16.mxu0 %v658_v2  ;;  %641 = vmatprep.subr.bf16.mxu1 %v658_v2 }
  0x1c   :  { %612 = vmatpush3.bf16.msra.mxu0 %v658_v2  ;;  %649 = vmatpush3.bf16.msra.mxu1 %v658_v2 }
  0x1d   :  { %613 = vmatprep.subr.bf16.mxu0 %v659_v3  ;;  %642 = vmatprep.subr.bf16.mxu1 %v659_v3 }
  0x20   :  { %614 = vmatpush3.bf16.msra.mxu0 %v659_v3  ;;  %650 = vmatpush3.bf16.msra.mxu1 %v659_v3 }
  0x21   :  { %615 = vmatprep.subr.bf16.mxu0 %v660_v6  ;;  %643 = vmatprep.subr.bf16.mxu1 %v660_v6 }
  0x24   :  { %616 = vmatpush3.bf16.msra.mxu0 %v660_v6  ;;  %651 = vmatpush3.bf16.msra.mxu1 %v660_v6 }
  0x25   :  { %617 = vmatprep.subr.bf16.mxu0 %v661_v7  ;;  %644 = vmatprep.subr.bf16.mxu1 %v661_v7 }
  0x28   :  { %618 = vmatpush3.bf16.msra.mxu0 %v661_v7  ;;  %652 = vmatpush3.bf16.msra.mxu1 %v661_v7 }
  0x29   :  { %619 = vmatprep.subr.bf16.mxu0 %v662_v8  ;;  %645 = vmatprep.subr.bf16.mxu1 %v662_v8 }
  0x2c   :  { %620 = vmatpush3.bf16.msra.mxu0 %v662_v8  ;;  %653 = vmatpush3.bf16.msra.mxu1 %v662_v8 }
  0x2d   :  { %621 = vmatprep.subr.bf16.mxu0 %v663_v9  ;;  %646 = vmatprep.subr.bf16.mxu1 %v663_v9 }
  0x30   :  { %622 = vmatpush3.bf16.msra.mxu0 %v663_v9  ;;  %654 = vmatpush3.bf16.msra.mxu1 %v663_v9 }
  0x33   :  { %624 = vmatmul.mubr.bf16.vlgmr.msra.gmra.mrb[0].mxu0 %v666_v10  ;;  %632 = vmatmul.mubr.bf16.vlgmr.msra.gmra.mrb[0].mxu1 %v667_v11 }
  0x34   :  { %627 = vmatprep.mubr.bf16.mxu0 %v668_v12  ;;  %635 = vmatprep.mubr.bf16.mxu1 %v669_v13 }
  0x3b   :  { %628 = vmatmul.mubr.bf16.gmra.mrb[4].mxu0 %v670_v14  ;;  %636 = vmatmul.mubr.bf16.gmra.mrb[4].mxu1 %v671_v15 }
 0x106   :  { %v625_v17 = vpop.f32.mrb[0].mxu0  ;;  %v633_v18 = vpop.f32.mrb[0].mxu1 }
 0x107   :  { %v348_v19 = vadd.f32 %v625_v17, %v777_v16  ;;  %v356_v20 = vadd.f32 %v633_v18, %v777_v16  ;;  %v225_v21 = vpop.f32.mrb[1].mxu0  ;;  %v257_v22 = vpop.f32.mrb[1].mxu1 }
 0x108   :  { %v346_v23 = vadd.f32 %v777_v16, %v225_v21  ;;  %v354_v24 = vadd.f32 %v777_v16, %v257_v22  ;;  %v626_v25 = vpop.f32.mrb[2].mxu0  ;;  %v634_v26 = vpop.f32.mrb[2].mxu1 }
 0x109   :  { %vm364_vm0 = vcmp.ge.f32.partialorder %v348_v19, 0.0  ;;  %v380_v27 = vmul.f32 0.2, %v348_v19  ;;  %vm372_vm1 = vcmp.ge.f32.partialorder %v356_v20, 0.0  ;;  %v388_v28 = vmul.f32 0.2, %v356_v20 }
 0x10a   :  { %vm362_vm2 = vcmp.ge.f32.partialorder %v346_v23, 0.0  ;;  %v378_v29 = vmul.f32 0.2, %v346_v23  ;;  %vm370_vm3 = vcmp.ge.f32.partialorder %v354_v24, 0.0  ;;  %v386_v30 = vmul.f32 0.2, %v354_v24 }
 0x10b   :  { %v349_v31 = vadd.f32 %v626_v25, %v777_v16  ;;  %v357_v32 = vadd.f32 %v634_v26, %v777_v16  ;;  %v228_v33 = vpop.f32.mrb[3].mxu0  ;;  %v260_v34 = vpop.f32.mrb[3].mxu1  ;;  %v396_v35 = vsel %vm364_vm0, %v348_v19, %v380_v27  ;;  %v404_v36 = vsel %vm372_vm1, %v356_v20, %v388_v28 }
 0x10c   :  { %v347_v37 = vadd.f32 %v777_v16, %v228_v33  ;;  %v355_v38 = vadd.f32 %v777_v16, %v260_v34  ;;  %v394_v43 = vsel %vm362_vm2, %v346_v23, %v378_v29  ;;  %v402_v44 = vsel %vm370_vm3, %v354_v24, %v386_v30 }
 0x10d   :  { %vm365_vm4 = vcmp.ge.f32.partialorder %v349_v31, 0.0  ;;  %v381_v39 = vmul.f32 0.2, %v349_v31  ;;  %vm373_vm5 = vcmp.ge.f32.partialorder %v357_v32, 0.0  ;;  %v389_v40 = vmul.f32 0.2, %v357_v32 }
 0x10e   :  { %vm363_vm6 = vcmp.ge.f32.partialorder %v347_v37, 0.0  ;;  %v379_v41 = vmul.f32 0.2, %v347_v37  ;;  %vm371_vm7 = vcmp.ge.f32.partialorder %v355_v38, 0.0  ;;  %v387_v42 = vmul.f32 0.2, %v355_v38 }
 0x10f   :  { %v397_v45 = vsel %vm365_vm4, %v349_v31, %v381_v39  ;;  %v405_v46 = vsel %vm373_vm5, %v357_v32, %v389_v40  ;;  %v629_v47 = vpop.f32.mrb[4].mxu0  ;;  %v637_v48 = vpop.f32.mrb[4].mxu1 }
 0x110   :  { %v552_v49 = vpack.c.bf16 %v397_v45, %v396_v35  ;;  %v572_v50 = vpack.c.bf16 %v405_v46, %v404_v36  ;;  %v395_v51 = vsel %vm363_vm6, %v347_v37, %v379_v41  ;;  %v403_v52 = vsel %vm371_vm7, %v355_v38, %v387_v42  ;;  %v241_v53 = vpop.f32.mrb[5].mxu0  ;;  %v273_v54 = vpop.f32.mrb[5].mxu1 }
 0x111   :  { %v547_v55 = vpack.c.bf16 %v395_v51, %v394_v43  ;;  %v567_v56 = vpack.c.bf16 %v403_v52, %v402_v44  ;;  %v352_v57 = vadd.f32 %v629_v47, %v777_v16  ;;  %v360_v58 = vadd.f32 %v637_v48, %v777_v16  ;;  %v630_v59 = vpop.f32.mrb[6].mxu0  ;;  %v638_v60 = vpop.f32.mrb[6].mxu1 }
 0x112   :  { %584 = vst [vmem:[%s826_s3 + $0x8] sm:$0xff] %v552_v49   ;;  %588 = vst [vmem:[%s826_s3 + $0x28] sm:$0xff] %v572_v50   ;;  %v350_v61 = vadd.f32 %v777_v16, %v241_v53  ;;  %v358_v62 = vadd.f32 %v777_v16, %v273_v54  ;;  %v353_v63 = vadd.f32 %v630_v59, %v777_v16  ;;  %v244_v1 = vpop.f32.mrb[7].mxu0  ;;  %v276_v2 = vpop.f32.mrb[7].mxu1 }
 0x113   :  { %v361_v0 = vadd.f32 %v638_v60, %v777_v16  ;;  %548 = vst [vmem:[%s826_s3] sm:$0xff] %v547_v55   ;;  %587 = vst [vmem:[%s826_s3 + $0x20] sm:$0xff] %v567_v56   ;;  %v384_v3 = vmul.f32 0.2, %v352_v57  ;;  %vm368_vm8 = vcmp.ge.f32.partialorder %v352_v57, 0.0  ;;  %v392_v4 = vmul.f32 0.2, %v360_v58 }
 0x114   :  { %vm376_vm9 = vcmp.ge.f32.partialorder %v360_v58, 0.0  ;;  %vm366_vm10 = vcmp.ge.f32.partialorder %v350_v61, 0.0  ;;  %vm369_vm11 = vcmp.ge.f32.partialorder %v353_v63, 0.0  ;;  %v385_v5 = vmul.f32 0.2, %v353_v63 }
 0x115   :  { %v382_v6 = vmul.f32 0.2, %v350_v61  ;;  %vm374_vm12 = vcmp.ge.f32.partialorder %v358_v62, 0.0  ;;  %vm377_vm13 = vcmp.ge.f32.partialorder %v361_v0, 0.0  ;;  %v393_v7 = vmul.f32 0.2, %v361_v0 }
 0x116   :  { %v400_v8 = vsel %vm368_vm8, %v352_v57, %v384_v3  ;;  %v401_v9 = vsel %vm369_vm11, %v353_v63, %v385_v5  ;;  %v351_v10 = vadd.f32 %v777_v16, %v244_v1  ;;  %v359_v11 = vadd.f32 %v777_v16, %v276_v2 }
 0x117   :  { %v408_v12 = vsel %vm376_vm9, %v360_v58, %v392_v4  ;;  %v390_v13 = vmul.f32 0.2, %v358_v62  ;;  %v562_v14 = vpack.c.bf16 %v401_v9, %v400_v8  ;;  %v409_v15 = vsel %vm377_vm13, %v361_v0, %v393_v7 }
 0x118   :  { %v582_v17 = vpack.c.bf16 %v409_v15, %v408_v12  ;;  %vm367_vm14 = vcmp.ge.f32.partialorder %v351_v10, 0.0  ;;  %v383_v18 = vmul.f32 0.2, %v351_v10  ;;  %vm375_vm15 = vcmp.ge.f32.partialorder %v359_v11, 0.0 }
 0x119   :  { %586 = vst [vmem:[%s826_s3 + $0x18] sm:$0xff] %v562_v14   ;;  %v391_v19 = vmul.f32 0.2, %v359_v11  ;;  %v398_v20 = vsel %vm366_vm10, %v350_v61, %v382_v6  ;;  %v406_v21 = vsel %vm374_vm12, %v358_v62, %v390_v13 }
 0x11a   :  { %590 = vst [vmem:[%s826_s3 + $0x38] sm:$0xff] %v582_v17   ;;  %v399_v16 = vsel %vm367_vm14, %v351_v10, %v383_v18 }
 0x11b   :  { %v557_v22 = vpack.c.bf16 %v399_v16, %v398_v20  ;;  %v407_v23 = vsel %vm375_vm15, %v359_v11, %v391_v19 }
 0x11c   :  { %v577_v24 = vpack.c.bf16 %v407_v23, %v406_v21 }
 0x11d   :  { %585 = vst [vmem:[%s826_s3 + $0x10] sm:$0xff] %v557_v22  }
 0x11e   :  { %589 = vst [vmem:[%s826_s3 + $0x30] sm:$0xff] %v577_v24  }
 0x11f   :  { %494 = vsyncpa [#allocation4], 1 }

// kernel: discriminator_forward.10
= control target key start
LH: loop header
LB: loop body
LE: loop exit
PB: predicated region body
PF: predicated region fallthrough
CT: control target
= control target key end

     0   :  { %s148_s0 = inlined_call_operand.vmem [shape: bf16[32,128], index: 0, kind: input, shape index: {}]   ;;  %s149_s1 = inlined_call_operand.vmem [shape: f32[1,128], index: 1, kind: input, shape index: {}]   ;;  %s150_s2 = inlined_call_operand.vmem [shape: f32[1,128], index: 2, kind: input, shape index: {}]   ;;  %s151_s3 = inlined_call_operand.vmem [shape: bf16[32,128], index: 3, kind: output, shape index: {}]  }
   0x1   :  { %v91_v0 = vld [vmem:[%s148_s0] sm:$0xff]   ;;  %v108_v4 = vld [vmem:[%s148_s0 + $0x8] sm:$0xff]  }
   0x2   :  { %v80_v1 = vld [vmem:[%s149_s1] ss:$0 sm:$0xff]  ;;  %v92_v2 = vunpack.c.l.bf16 %v91_v0  ;;  %v93_v3 = vunpack.c.h.bf16 %v91_v0  ;;  %v96_v6 = vunpack.c.l.bf16 %v108_v4  ;;  %v97_v7 = vunpack.c.h.bf16 %v108_v4 }
   0x3   :  { %v81_v5 = vld [vmem:[%s150_s2] ss:$0 sm:$0xff] }
   0x4   :  { %v29_v8 = vmul.f32 %v92_v2, %v80_v1  ;;  %v30_v9 = vmul.f32 %v93_v3, %v80_v1  ;;  %v31_v10 = vmul.f32 %v96_v6, %v80_v1  ;;  %v32_v11 = vmul.f32 %v97_v7, %v80_v1 }
   0x6   :  { %v40_v12 = vadd.f32 %v81_v5, %v29_v8  ;;  %v41_v13 = vadd.f32 %v81_v5, %v30_v9  ;;  %v42_v14 = vadd.f32 %v81_v5, %v31_v10  ;;  %v43_v15 = vadd.f32 %v81_v5, %v32_v11 }
   0x8   :  { %vm44_vm0 = vcmp.ge.f32.partialorder %v40_v12, 0.0  ;;  %vm45_vm1 = vcmp.ge.f32.partialorder %v41_v13, 0.0  ;;  %v48_v16 = vmul.f32 0.2, %v40_v12  ;;  %v49_v17 = vmul.f32 0.2, %v41_v13 }
   0x9   :  { %vm46_vm2 = vcmp.ge.f32.partialorder %v42_v14, 0.0  ;;  %vm47_vm3 = vcmp.ge.f32.partialorder %v43_v15, 0.0  ;;  %v50_v18 = vmul.f32 0.2, %v42_v14  ;;  %v51_v19 = vmul.f32 0.2, %v43_v15 }
   0xa   :  { %v52_v20 = vsel %vm44_vm0, %v40_v12, %v48_v16  ;;  %v53_v21 = vsel %vm45_vm1, %v41_v13, %v49_v17 }
   0xb   :  { %v101_v22 = vpack.c.bf16 %v53_v21, %v52_v20  ;;  %v54_v23 = vsel %vm46_vm2, %v42_v14, %v50_v18  ;;  %v55_v24 = vsel %vm47_vm3, %v43_v15, %v51_v19 }
   0xc   :  { %v106_v25 = vpack.c.bf16 %v55_v24, %v54_v23 }
   0xd   :  { %102 = vst [vmem:[%s151_s3] sm:$0xff] %v101_v22  }
   0xe   :  { %109 = vst [vmem:[%s151_s3 + $0x8] sm:$0xff] %v106_v25  }

// kernel: discriminator_forward.9
= control target key start
LH: loop header
LB: loop body
LE: loop exit
PB: predicated region body
PF: predicated region fallthrough
CT: control target
= control target key end

     0   :  { %s1454_s1 = inlined_call_operand.vmem [shape: bf16[1024,128], index: 1, kind: input, shape index: {}]   ;;  %s1455_s0 = inlined_call_operand.vmem [shape: bf16[32,1024], index: 0, kind: input, shape index: {}]   ;;  %s1456_s2 = inlined_call_operand.vmem [shape: bf16[32,128], index: 2, kind: output, shape index: {0}]   ;;  %s1457_s3 = inlined_call_operand.vmem [shape: f32[1,1,128], index: 3, kind: output, shape index: {1}]   ;;  %s1458_s4 = inlined_call_operand.vmem [shape: f32[1,1,128], index: 4, kind: output, shape index: {2}]  }
   0x1   :  { %v1113_v0 = vld [vmem:[%s1454_s1 + $0x40] sm:$0xff]   ;;  %v1117_v4 = vld [vmem:[%s1454_s1 + $0x48] sm:$0xff]   ;;  %v1121_v8 = vld [vmem:[%s1454_s1 + $0x50] sm:$0xff]  }
   0x2   :  { %v1114_v1 = vld [vmem:[%s1454_s1 + $0xc0] sm:$0xff]   ;;  %1001 = vmatprep.subr.bf16.mxu0 %v1113_v0  ;;  %v1118_v5 = vld [vmem:[%s1454_s1 + $0xc8] sm:$0xff]   ;;  %v1122_v9 = vld [vmem:[%s1454_s1 + $0xd0] sm:$0xff]  }
   0x3   :  { %v1115_v2 = vld [vmem:[%s1454_s1] sm:$0xff]   ;;  %1029 = vmatprep.subr.bf16.mxu1 %v1114_v1  ;;  %v1119_v6 = vld [vmem:[%s1454_s1 + $0x8] sm:$0xff]   ;;  %v1123_v10 = vld [vmem:[%s1454_s1 + $0x10] sm:$0xff]  }
   0x4   :  { %v1116_v3 = vld [vmem:[%s1454_s1 + $0x80] sm:$0xff]   ;;  %1002 = vmatpush3.bf16.msra.mxu0 %v1115_v2  ;;  %v1120_v7 = vld [vmem:[%s1454_s1 + $0x88] sm:$0xff]   ;;  %v1124_v11 = vld [vmem:[%s1454_s1 + $0x90] sm:$0xff]  }
   0x5   :  { %1030 = vmatpush3.bf16.msra.mxu1 %v1116_v3  ;;  %1003 = vmatprep.subr.bf16.mxu0 %v1117_v4  ;;  %v1125_v12 = vld [vmem:[%s1454_s1 + $0x58] sm:$0xff]   ;;  %v1129_v16 = vld [vmem:[%s1454_s1 + $0x60] sm:$0xff]   ;;  %v1133_v20 = vld [vmem:[%s1454_s1 + $0x68] sm:$0xff]  }
   0x6   :  { %1031 = vmatprep.subr.bf16.mxu1 %v1118_v5  ;;  %v1126_v13 = vld [vmem:[%s1454_s1 + $0xd8] sm:$0xff]   ;;  %v1130_v17 = vld [vmem:[%s1454_s1 + $0xe0] sm:$0xff]   ;;  %v1134_v21 = vld [vmem:[%s1454_s1 + $0xe8] sm:$0xff]  }
   0x7   :  { %v1127_v14 = vld [vmem:[%s1454_s1 + $0x18] sm:$0xff]   ;;  %v1131_v18 = vld [vmem:[%s1454_s1 + $0x20] sm:$0xff]   ;;  %v1135_v22 = vld [vmem:[%s1454_s1 + $0x28] sm:$0xff]  }
   0x8   :  { %1004 = vmatpush3.bf16.msra.mxu0 %v1119_v6  ;;  %v1128_v15 = vld [vmem:[%s1454_s1 + $0x98] sm:$0xff]   ;;  %v1132_v19 = vld [vmem:[%s1454_s1 + $0xa0] sm:$0xff]   ;;  %v1136_v23 = vld [vmem:[%s1454_s1 + $0xa8] sm:$0xff]  }
   0x9   :  { %1032 = vmatpush3.bf16.msra.mxu1 %v1120_v7  ;;  %1005 = vmatprep.subr.bf16.mxu0 %v1121_v8  ;;  %v1137_v24 = vld [vmem:[%s1454_s1 + $0x70] sm:$0xff]   ;;  %v1141_v28 = vld [vmem:[%s1454_s1 + $0x78] sm:$0xff]   ;;  %v27_v32 = vld [vmem:[%s1455_s0] sm:$0xff] }
   0xa   :  { %1033 = vmatprep.subr.bf16.mxu1 %v1122_v9  ;;  %v1138_v25 = vld [vmem:[%s1454_s1 + $0xf0] sm:$0xff]   ;;  %v1142_v29 = vld [vmem:[%s1454_s1 + $0xf8] sm:$0xff]   ;;  %v31_v33 = vld [vmem:[%s1455_s0 + $0x20] sm:$0xff] }
   0xb   :  { %v1139_v26 = vld [vmem:[%s1454_s1 + $0x30] sm:$0xff]   ;;  %v1143_v30 = vld [vmem:[%s1454_s1 + $0x38] sm:$0xff]   ;;  %v28_v34 = vld [vmem:[%s1455_s0 + $0x8] sm:$0xff]  ;;  %v902_v35 = vcombine.low %v27_v32, %v31_v33  ;;  %v903_v36 = vcombine.high %v27_v32, %v31_v33 }
   0xc   :  { %1006 = vmatpush3.bf16.msra.mxu0 %v1123_v10  ;;  %v1140_v27 = vld [vmem:[%s1454_s1 + $0xb0] sm:$0xff]   ;;  %v1144_v31 = vld [vmem:[%s1454_s1 + $0xb8] sm:$0xff]   ;;  %v32_v37 = vld [vmem:[%s1455_s0 + $0x28] sm:$0xff] }
   0xd   :  { %1034 = vmatpush3.bf16.msra.mxu1 %v1124_v11  ;;  %1007 = vmatprep.subr.bf16.mxu0 %v1125_v12  ;;  %v904_v38 = vcombine.low %v28_v34, %v32_v37  ;;  %v905_v39 = vcombine.high %v28_v34, %v32_v37  ;;  %v1145_v40 = vld [vmem:[%s1454_s1 + $0x140] sm:$0xff]   ;;  %v1149_v44 = vld [vmem:[%s1454_s1 + $0x148] sm:$0xff]   ;;  %v1153_v48 = vld [vmem:[%s1454_s1 + $0x150] sm:$0xff]  }
   0xe   :  { %1035 = vmatprep.subr.bf16.mxu1 %v1126_v13  ;;  %667 = vmatprep.mubr.bf16.mxu0 %v903_v36  ;;  %v1146_v41 = vld [vmem:[%s1454_s1 + $0x1c0] sm:$0xff]   ;;  %v1150_v45 = vld [vmem:[%s1454_s1 + $0x1c8] sm:$0xff]   ;;  %v1154_v49 = vld [vmem:[%s1454_s1 + $0x1d0] sm:$0xff]  }
   0xf   :  { %716 = vmatprep.mubr.bf16.mxu1 %v905_v39  ;;  %v1147_v42 = vld [vmem:[%s1454_s1 + $0x100] sm:$0xff]   ;;  %v1151_v46 = vld [vmem:[%s1454_s1 + $0x108] sm:$0xff]   ;;  %v1155_v50 = vld [vmem:[%s1454_s1 + $0x110] sm:$0xff]  }
  0x10   :  { %1008 = vmatpush3.bf16.msra.mxu0 %v1127_v14  ;;  %v1148_v43 = vld [vmem:[%s1454_s1 + $0x180] sm:$0xff]   ;;  %v1152_v47 = vld [vmem:[%s1454_s1 + $0x188] sm:$0xff]   ;;  %v1156_v51 = vld [vmem:[%s1454_s1 + $0x190] sm:$0xff]  }
  0x11   :  { %1036 = vmatpush3.bf16.msra.mxu1 %v1128_v15  ;;  %1009 = vmatprep.subr.bf16.mxu0 %v1129_v16  ;;  %v1157_v52 = vld [vmem:[%s1454_s1 + $0x158] sm:$0xff]   ;;  %v1161_v56 = vld [vmem:[%s1454_s1 + $0x160] sm:$0xff]   ;;  %v36_v63 = vld [vmem:[%s1455_s0 + $0x48] sm:$0xff] }
  0x12   :  { %1037 = vmatprep.subr.bf16.mxu1 %v1130_v17  ;;  %v1158_v53 = vld [vmem:[%s1454_s1 + $0x1d8] sm:$0xff]   ;;  %v1162_v57 = vld [vmem:[%s1454_s1 + $0x1e0] sm:$0xff]   ;;  %v40_v0 = vld [vmem:[%s1455_s0 + $0x68] sm:$0xff] }
  0x13   :  { %v1159_v54 = vld [vmem:[%s1454_s1 + $0x118] sm:$0xff]   ;;  %v1163_v58 = vld [vmem:[%s1454_s1 + $0x120] sm:$0xff]   ;;  %v913_v2 = vcombine.high %v36_v63, %v40_v0  ;;  %v1165_v3 = vld [vmem:[%s1454_s1 + $0x168] sm:$0xff]   ;;  %v912_v4 = vcombine.low %v36_v63, %v40_v0 }
  0x14   :  { %1010 = vmatpush3.bf16.msra.mxu0 %v1131_v18  ;;  %v1160_v55 = vld [vmem:[%s1454_s1 + $0x198] sm:$0xff]   ;;  %v1164_v59 = vld [vmem:[%s1454_s1 + $0x1a0] sm:$0xff]   ;;  %v1166_v5 = vld [vmem:[%s1454_s1 + $0x1e8] sm:$0xff]  }
  0x15   :  { %1038 = vmatpush3.bf16.msra.mxu1 %v1132_v19  ;;  %1011 = vmatprep.subr.bf16.mxu0 %v1133_v20  ;;  %v35_v60 = vld [vmem:[%s1455_s0 + $0x40] sm:$0xff]  ;;  %v1167_v6 = vld [vmem:[%s1454_s1 + $0x128] sm:$0xff]   ;;  %v1169_v8 = vld [vmem:[%s1454_s1 + $0x170] sm:$0xff]  }
  0x16   :  { %1039 = vmatprep.subr.bf16.mxu1 %v1134_v21  ;;  %v39_v61 = vld [vmem:[%s1455_s0 + $0x60] sm:$0xff]  ;;  %v1168_v7 = vld [vmem:[%s1454_s1 + $0x1a8] sm:$0xff]   ;;  %v1170_v9 = vld [vmem:[%s1454_s1 + $0x1f0] sm:$0xff]  }
  0x17   :  { %v911_v62 = vcombine.high %v35_v60, %v39_v61  ;;  %v910_v1 = vcombine.low %v35_v60, %v39_v61  ;;  %v1171_v10 = vld [vmem:[%s1454_s1 + $0x130] sm:$0xff]   ;;  %v1173_v12 = vld [vmem:[%s1454_s1 + $0x178] sm:$0xff]  }
  0x18   :  { %1012 = vmatpush3.bf16.msra.mxu0 %v1135_v22  ;;  %v1172_v11 = vld [vmem:[%s1454_s1 + $0x1b0] sm:$0xff]   ;;  %v1174_v13 = vld [vmem:[%s1454_s1 + $0x1f8] sm:$0xff]  }
  0x19   :  { %1040 = vmatpush3.bf16.msra.mxu1 %v1136_v23  ;;  %1013 = vmatprep.subr.bf16.mxu0 %v1137_v24  ;;  %v1175_v14 = vld [vmem:[%s1454_s1 + $0x138] sm:$0xff]   ;;  %v29_v16 = vld [vmem:[%s1455_s0 + $0x10] sm:$0xff] }
  0x1a   :  { %1041 = vmatprep.subr.bf16.mxu1 %v1138_v25  ;;  %v1176_v15 = vld [vmem:[%s1454_s1 + $0x1b8] sm:$0xff]   ;;  %v33_v17 = vld [vmem:[%s1455_s0 + $0x30] sm:$0xff] }
  0x1b   :  { %v30_v18 = vld [vmem:[%s1455_s0 + $0x18] sm:$0xff]  ;;  %v906_v20 = vcombine.low %v29_v16, %v33_v17  ;;  %v907_v21 = vcombine.high %v29_v16, %v33_v17  ;;  %v37_v24 = vld [vmem:[%s1455_s0 + $0x50] sm:$0xff] }
  0x1c   :  { %1014 = vmatpush3.bf16.msra.mxu0 %v1139_v26  ;;  %v34_v19 = vld [vmem:[%s1455_s0 + $0x38] sm:$0xff]  ;;  %v41_v25 = vld [vmem:[%s1455_s0 + $0x70] sm:$0xff] }
  0x1d   :  { %1042 = vmatpush3.bf16.msra.mxu1 %v1140_v27  ;;  %1015 = vmatprep.subr.bf16.mxu0 %v1141_v28  ;;  %v908_v22 = vcombine.low %v30_v18, %v34_v19  ;;  %v909_v23 = vcombine.high %v30_v18, %v34_v19  ;;  %v38_v26 = vld [vmem:[%s1455_s0 + $0x58] sm:$0xff]  ;;  %v915_v27 = vcombine.high %v37_v24, %v41_v25 }
  0x1e   :  { %1043 = vmatprep.subr.bf16.mxu1 %v1142_v29  ;;  %v42_v28 = vld [vmem:[%s1455_s0 + $0x78] sm:$0xff] }
  0x1f   :  { %v917_v29 = vcombine.high %v38_v26, %v42_v28 }
  0x20   :  { %1016 = vmatpush3.bf16.msra.mxu0 %v1143_v30  ;;  %v914_v30 = vcombine.low %v37_v24, %v41_v25 }
  0x21   :  { %1044 = vmatpush3.bf16.msra.mxu1 %v1144_v31  ;;  %1057 = vmatprep.subr.bf16.mxu0 %v1145_v40  ;;  %v916_v31 = vcombine.low %v38_v26, %v42_v28 }
  0x22   :  { %1085 = vmatprep.subr.bf16.mxu1 %v1146_v41 }
  0x23   :  { %668 = vmatmul.mubr.bf16.vlgmr.msra.gmra.mrb[0].mxu0 %v902_v35 }
  0x24   :  { %717 = vmatmul.mubr.bf16.vlgmr.msra.gmra.mrb[0].mxu1 %v904_v38  ;;  %1058 = vmatpush3.bf16.msra.mxu0 %v1147_v42 }
  0x25   :  { %1086 = vmatpush3.bf16.msra.mxu1 %v1148_v43  ;;  %1059 = vmatprep.subr.bf16.mxu0 %v1149_v44 }
  0x26   :  { %1087 = vmatprep.subr.bf16.mxu1 %v1150_v45  ;;  %675 = vmatprep.mubr.bf16.mxu0 %v911_v62 }
  0x27   :  { %724 = vmatprep.mubr.bf16.mxu1 %v913_v2 }
  0x28   :  { %1060 = vmatpush3.bf16.msra.mxu0 %v1151_v46 }
  0x29   :  { %1088 = vmatpush3.bf16.msra.mxu1 %v1152_v47  ;;  %1061 = vmatprep.subr.bf16.mxu0 %v1153_v48 }
  0x2a   :  { %1089 = vmatprep.subr.bf16.mxu1 %v1154_v49 }
  0x2b   :  { %676 = vmatmul.mubr.bf16.gmra.mrb[4].mxu0 %v910_v1 }
  0x2c   :  { %1062 = vmatpush3.bf16.msra.mxu0 %v1155_v50  ;;  %725 = vmatmul.mubr.bf16.gmra.mrb[4].mxu1 %v912_v4 }
  0x2d   :  { %1090 = vmatpush3.bf16.msra.mxu1 %v1156_v51  ;;  %1063 = vmatprep.subr.bf16.mxu0 %v1157_v52 }
  0x2e   :  { %1091 = vmatprep.subr.bf16.mxu1 %v1158_v53  ;;  %765 = vmatprep.mubr.bf16.mxu0 %v907_v21 }
  0x2f   :  { %814 = vmatprep.mubr.bf16.mxu1 %v909_v23 }
  0x30   :  { %1064 = vmatpush3.bf16.msra.mxu0 %v1159_v54 }
  0x31   :  { %1092 = vmatpush3.bf16.msra.mxu1 %v1160_v55  ;;  %1065 = vmatprep.subr.bf16.mxu0 %v1161_v56 }
  0x32   :  { %1093 = vmatprep.subr.bf16.mxu1 %v1162_v57 }
  0x34   :  { %1066 = vmatpush3.bf16.msra.mxu0 %v1163_v58 }
  0x35   :  { %1094 = vmatpush3.bf16.msra.mxu1 %v1164_v59  ;;  %1067 = vmatprep.subr.bf16.mxu0 %v1165_v3 }
  0x36   :  { %1095 = vmatprep.subr.bf16.mxu1 %v1166_v5 }
  0x38   :  { %1068 = vmatpush3.bf16.msra.mxu0 %v1167_v6 }
  0x39   :  { %1096 = vmatpush3.bf16.msra.mxu1 %v1168_v7  ;;  %1069 = vmatprep.subr.bf16.mxu0 %v1169_v8 }
  0x3a   :  { %1097 = vmatprep.subr.bf16.mxu1 %v1170_v9 }
  0x3c   :  { %1070 = vmatpush3.bf16.msra.mxu0 %v1171_v10 }
  0x3d   :  { %1098 = vmatpush3.bf16.msra.mxu1 %v1172_v11  ;;  %1071 = vmatprep.subr.bf16.mxu0 %v1173_v12 }
  0x3e   :  { %1099 = vmatprep.subr.bf16.mxu1 %v1174_v13 }
  0x40   :  { %1072 = vmatpush3.bf16.msra.mxu0 %v1175_v14 }
  0x41   :  { %1100 = vmatpush3.bf16.msra.mxu1 %v1176_v15 }
  0x43   :  { %766 = vmatmul.mubr.bf16.vlgmr.msra.gmra.mrb[8].mxu0 %v906_v20 }
  0x44   :  { %815 = vmatmul.mubr.bf16.vlgmr.msra.gmra.mrb[8].mxu1 %v908_v22  ;;  %773 = vmatprep.mubr.bf16.mxu0 %v915_v27 }
  0x45   :  { %822 = vmatprep.mubr.bf16.mxu1 %v917_v29 }
  0x4b   :  { %774 = vmatmul.mubr.bf16.gmra.mrb[12].mxu0 %v914_v30 }
  0x4c   :  { %823 = vmatmul.mubr.bf16.gmra.mrb[12].mxu1 %v916_v31 }
  0xf6   :  { %v1017_v32 = vpop.f32.mrb[0].mxu0 }
  0xf7   :  { %v1045_v33 = vpop.f32.mrb[0].mxu1  ;;  %v1018_v34 = vpop.f32.mrb[1].mxu0 }
  0xf8   :  { %v1019_v35 = vadd.f32 %v1018_v34, %v1017_v32  ;;  %v1046_v36 = vpop.f32.mrb[1].mxu1  ;;  %v1020_v37 = vpop.f32.mrb[2].mxu0 }
  0xf9   :  { %v1047_v38 = vadd.f32 %v1046_v36, %v1045_v33  ;;  %v1048_v39 = vpop.f32.mrb[2].mxu1  ;;  %v1021_v40 = vpop.f32.mrb[3].mxu0 }
  0xfa   :  { %v1022_v41 = vadd.f32 %v1021_v40, %v1020_v37  ;;  %v1049_v42 = vpop.f32.mrb[3].mxu1 }
  0xfb   :  { %v719_v43 = vadd.f32 %v1047_v38, %v1019_v35  ;;  %v1050_v44 = vadd.f32 %v1049_v42, %v1048_v39 }
  0xfd   :  { %v722_v45 = vadd.f32 %v1050_v44, %v1022_v41 }
  0xfe   :  { %v1023_v46 = vpop.f32.mrb[4].mxu0 }
  0xff   :  { %v1051_v47 = vpop.f32.mrb[4].mxu1  ;;  %v1024_v48 = vpop.f32.mrb[5].mxu0 }
 0x100   :  { %v1025_v49 = vadd.f32 %v1024_v48, %v1023_v46  ;;  %v1052_v50 = vpop.f32.mrb[5].mxu1  ;;  %v1026_v51 = vpop.f32.mrb[6].mxu0 }
 0x101   :  { %v1053_v52 = vadd.f32 %v1052_v50, %v1051_v47  ;;  %v1054_v53 = vpop.f32.mrb[6].mxu1  ;;  %v1027_v54 = vpop.f32.mrb[7].mxu0 }
 0x102   :  { %v1028_v55 = vadd.f32 %v1027_v54, %v1026_v51  ;;  %v1055_v56 = vpop.f32.mrb[7].mxu1 }
 0x103   :  { %v727_v57 = vadd.f32 %v1053_v52, %v1025_v49  ;;  %v1056_v58 = vadd.f32 %v1055_v56, %v1054_v53 }
 0x105   :  { %v730_v59 = vadd.f32 %v1056_v58, %v1028_v55 }
 0x116   :  { %v1073_v60 = vpop.f32.mrb[8].mxu0 }
 0x117   :  { %v1101_v61 = vpop.f32.mrb[8].mxu1  ;;  %v1074_v62 = vpop.f32.mrb[9].mxu0 }
 0x118   :  { %v1102_v63 = vpop.f32.mrb[9].mxu1  ;;  %v1075_v0 = vadd.f32 %v1074_v62, %v1073_v60  ;;  %v1076_v2 = vpop.f32.mrb[10].mxu0 }
 0x119   :  { %v1103_v1 = vadd.f32 %v1102_v63, %v1101_v61  ;;  %v1104_v3 = vpop.f32.mrb[10].mxu1  ;;  %v1077_v4 = vpop.f32.mrb[11].mxu0 }
 0x11a   :  { %v1105_v5 = vpop.f32.mrb[11].mxu1  ;;  %v768_v6 = vadd.f32 %v1075_v0, %v719_v43  ;;  %v1078_v7 = vadd.f32 %v1077_v4, %v1076_v2 }
 0x11b   :  { %v1106_v8 = vadd.f32 %v1105_v5, %v1104_v3 }
 0x11c   :  { %v817_v9 = vadd.f32 %v1103_v1, %v768_v6  ;;  %v771_v10 = vadd.f32 %v1078_v7, %v722_v45 }
 0x11e   :  { %v820_v11 = vadd.f32 %v1106_v8, %v771_v10  ;;  %v1079_v12 = vpop.f32.mrb[12].mxu0  ;;  %v876_v14 = vmul.f32 %v817_v9, %v817_v9 }
 0x11f   :  { %v1107_v13 = vpop.f32.mrb[12].mxu1  ;;  %v1080_v15 = vpop.f32.mrb[13].mxu0 }
 0x120   :  { %v1108_v16 = vpop.f32.mrb[13].mxu1  ;;  %v993_v17 = vpack.c.bf16 %v820_v11, %v817_v9  ;;  %v866_v18 = vadd.f32 %v820_v11, %v817_v9  ;;  %v877_v19 = vmul.f32 %v820_v11, %v820_v11  ;;  %v1081_v20 = vadd.f32 %v1080_v15, %v1079_v12  ;;  %v1082_v21 = vpop.f32.mrb[14].mxu0 }
 0x121   :  { %v1110_v22 = vpop.f32.mrb[14].mxu1  ;;  %v1109_v23 = vadd.f32 %v1108_v16, %v1107_v13  ;;  %v1083_v24 = vpop.f32.mrb[15].mxu0 }
 0x122   :  { %v1111_v25 = vpop.f32.mrb[15].mxu1  ;;  %994 = vst [vmem:[%s1456_s2] sm:$0xff] %v993_v17   ;;  %v880_v26 = vadd.f32 %v877_v19, %v876_v14  ;;  %v776_v27 = vadd.f32 %v1081_v20, %v727_v57  ;;  %v1084_v28 = vadd.f32 %v1083_v24, %v1082_v21 }
 0x123   :  { %v1112_v29 = vadd.f32 %v1111_v25, %v1110_v22 }
 0x124   :  { %v825_v30 = vadd.f32 %v1109_v23, %v776_v27  ;;  %v779_v31 = vadd.f32 %v1084_v28, %v730_v59 }
 0x126   :  { %v867_v32 = vadd.f32 %v866_v18, %v825_v30  ;;  %v878_v33 = vmul.f32 %v825_v30, %v825_v30  ;;  %v828_v34 = vadd.f32 %v1112_v29, %v779_v31 }
 0x128   :  { %v881_v35 = vadd.f32 %v880_v26, %v878_v33  ;;  %v998_v36 = vpack.c.bf16 %v828_v34, %v825_v30  ;;  %v868_v37 = vadd.f32 %v867_v32, %v828_v34  ;;  %v879_v38 = vmul.f32 %v828_v34, %v828_v34 }
 0x12a   :  { %1000 = vst [vmem:[%s1456_s2 + $0x8] sm:$0xff] %v998_v36   ;;  %v869_v39 = vrot.slane %v868_v37, 4  ;;  %v882_v40 = vadd.f32 %v881_v35, %v879_v38 }
 0x12c   :  { %v870_v41 = vadd.f32 %v869_v39, %v868_v37  ;;  %v883_v42 = vrot.slane %v882_v40, 4 }
 0x12e   :  { %v871_v43 = vrot.slane %v870_v41, 2  ;;  %v884_v44 = vadd.f32 %v883_v42, %v882_v40 }
 0x130   :  { %v872_v45 = vadd.f32 %v871_v43, %v870_v41  ;;  %v885_v46 = vrot.slane %v884_v44, 2 }
 0x132   :  { %v873_v47 = vrot.slane %v872_v45, 1  ;;  %v886_v48 = vadd.f32 %v885_v46, %v884_v44 }
 0x134   :  { %v874_v49 = vadd.f32 %v873_v47, %v872_v45  ;;  %v887_v50 = vrot.slane %v886_v48, 1 }
 0x136   :  { %875 = vst [vmem:[%s1457_s3] sm:$0x1] %v874_v49  ;;  %v888_v51 = vadd.f32 %v887_v50, %v886_v48 }
 0x138   :  { %889 = vst [vmem:[%s1458_s4] sm:$0x1] %v888_v51 }

// kernel: discriminator_forward.12
= control target key start
LH: loop header
LB: loop body
LE: loop exit
PB: predicated region body
PF: predicated region fallthrough
CT: control target
= control target key end

     0   :  { %v19_v0 = vlaneseq  ;;  %s98_s0 = inlined_call_operand.vmem [shape: bf16[8,256], index: 0, kind: input, shape index: {}]   ;;  %s99_s1 = inlined_call_operand.vmem [shape: f32[1,256], index: 1, kind: input, shape index: {}]   ;;  %s100_s2 = inlined_call_operand.vmem [shape: f32[1,256], index: 2, kind: input, shape index: {}]   ;;  %s101_s3 = inlined_call_operand.vmem [shape: bf16[8,256], index: 3, kind: output, shape index: {}]  }
   0x1   :  { %v14_v1 = vld [vmem:[%s98_s0] sm:$0xff] }
   0x2   :  { %v20_v2 = vshrl.u32 %v19_v0, 7  ;;  %v17_v3 = vld [vmem:[%s99_s1] sm:$0x3]  ;;  %v15_v5 = vunpack.c.l.bf16 %v14_v1  ;;  %v16_v6 = vunpack.c.h.bf16 %v14_v1 }
   0x3   :  { %v31_v4 = vld [vmem:[%s100_s2] sm:$0x3] }
   0x4   :  { %v21_v7 = vsub.s32 0, %v20_v2  ;;  %v25_v8 = vsub.s32 1, %v20_v2 }
   0x6   :  { %v22_v9 = vrot.slane %v17_v3, %v21_v7  ;;  %v26_v10 = vrot.slane %v17_v3, %v25_v8  ;;  %v36_v11 = vrot.slane %v31_v4, %v21_v7  ;;  %v40_v12 = vrot.slane %v31_v4, %v25_v8 }
   0x8   :  { %v29_v13 = vmul.f32 %v22_v9, %v15_v5  ;;  %v30_v14 = vmul.f32 %v26_v10, %v16_v6 }
   0xa   :  { %v43_v15 = vadd.f32 %v36_v11, %v29_v13  ;;  %v44_v16 = vadd.f32 %v40_v12, %v30_v14 }
   0xc   :  { %vm45_vm0 = vcmp.ge.f32.partialorder %v43_v15, 0.0  ;;  %vm46_vm1 = vcmp.ge.f32.partialorder %v44_v16, 0.0  ;;  %v47_v17 = vmul.f32 0.2, %v43_v15  ;;  %v48_v18 = vmul.f32 0.2, %v44_v16 }
   0xe   :  { %v49_v19 = vsel %vm45_vm0, %v43_v15, %v47_v17  ;;  %v50_v20 = vsel %vm46_vm1, %v44_v16, %v48_v18 }
   0xf   :  { %v65_v21 = vpack.c.bf16 %v50_v20, %v49_v19 }
  0x11   :  { %59 = vst [vmem:[%s101_s3] sm:$0xff] %v65_v21 }

// kernel: discriminator_forward.11
= control target key start
LH: loop header
LB: loop body
LE: loop exit
PB: predicated region body
PF: predicated region fallthrough
CT: control target
= control target key end

     0   :  { %s1898_s15 = smov 0   ;;  %s1900_s16 = smov 0   ;;  %s2094_s0 = inlined_call_operand.vmem [shape: bf16[8,2048], index: 0, kind: input, shape index: {}]   ;;  %s2095_s1 = inlined_call_operand.vmem [shape: bf16[2048,256], index: 1, kind: input, shape index: {}]   ;;  %s2096_s2 = inlined_call_operand.vmem [shape: bf16[8,256], index: 2, kind: output, shape index: {0}]   ;;  %s2097_s3 = inlined_call_operand.vmem [shape: f32[1,1,256], index: 3, kind: output, shape index: {1}]   ;;  %s2098_s4 = inlined_call_operand.vmem [shape: f32[1,1,256], index: 4, kind: output, shape index: {2}]  }
   0x1   :  { %s1902_s17 = smov 0  }
   0x2 LB: > { %s24_s18 = sadd.s32 1, %s1865_s16  ;;  %p1469_p0 = scmp.ge.s32.totalorder %s1869_s17, 1  ;;  %s1869_s17 = sphi %s1902_s17, %s15_s17   ;;  %s1865_s16 = sphi %s1900_s16, %s2100_s16   ;;  %s1861_s15 = sphi %s1898_s15, %s2099_s15  }
   0x3   : > { %p25_p1 = scmp.ge.s32.totalorder %s24_s18, 2  ;;  %p198_p2 = scmp.lt.s32.totalorder %s1869_s17, 3 }
   0x5   : > { %s2102_s18 = smov (%p25_p1, %s24_s18), 0  ;;  %p199_p3 = pnand %p1469_p0, %p198_p2 }
   0x6   : > { %s1470_s19 = sshll.u32 (!%p199_p3), %s1861_s15, 3  ;;  %s1472_s20 = sshll.u32 (!%p199_p3), %s1861_s15, 7 }
   0x7   : > { %202 = sbr.rel (%p199_p3) target bundleno = 401 (0x191), region = 28  ;;  %p245_p4 = scmp.lt.s32.totalorder (!%p199_p3), %s1470_s19, 15 }
   0x8   : > { %p253_p5 = scmp.lt.s32.totalorder (!%p199_p3), %s1472_s20, 255  ;;  %p1475_p6 = scmp.ne.s32.totalorder (!%p199_p3), %s1861_s15, 0 }
   0xe   : > { %s2104_s19 = smov (!%p245_p4, %s1470_s19), 15  ;;  %s2106_s20 = smov (!%p253_p5, %s1472_s20), 255 }
   0xf   : > { %s1471_s21 = sshll.u32 %s2104_s19, 2  ;;  %s1619_s25 = sshll.u32 %s2106_s20, 3  ;;  %v1871_v0 = vmov (!%p1475_p6), 0.0  }
  0x10   : > { %s1923_s24 = scalar_lea.vmem %s2094_s0, %s1471_s21  ;;  %s1928_s28 = scalar_lea.vmem %s2095_s1, %s1619_s25  ;;  %276 = vst [vmem:[#allocation2] sm:$0xff] (!%p1475_p6), %v1871_v0  ;;  %277 = vst [vmem:[#allocation2 + $0x8] sm:$0xff] (!%p1475_p6), %v1871_v0 }
  0x11   : > { %275 = sbr.rel (%p1475_p6) target bundleno = 24 (0x18), region = 32 }
  0x18 PF: > { %v1647_v1 = vld [vmem:[%s1928_s28 + $0x4] ss:$8 sps:$4 sm:$0xff]   ;;  %v1651_v3 = vld [vmem:[%s1928_s28] ss:$8 sps:$4 sm:$0xff]   ;;  %v1653_v5 = vld [vmem:[%s1928_s28 + $0x14] ss:$8 sps:$4 sm:$0xff]  }
  0x19   : > { %v1649_v2 = vld [vmem:[%s1928_s28 + $0x104] ss:$8 sps:$4 sm:$0xff]   ;;  %1080 = vmatprep.subr.bf16.mxu0 %v1647_v1  ;;  %v1652_v4 = vld [vmem:[%s1928_s28 + $0x100] ss:$8 sps:$4 sm:$0xff]   ;;  %v1655_v6 = vld [vmem:[%s1928_s28 + $0x114] ss:$8 sps:$4 sm:$0xff]  }
  0x1a   : > { %1121 = vmatprep.subr.bf16.mxu1 %v1649_v2  ;;  %1081 = vmatpush1.bf16.msra.mxu0 %v1651_v3  ;;  %v1657_v7 = vld [vmem:[%s1928_s28 + $0x10] ss:$8 sps:$4 sm:$0xff]   ;;  %v1659_v9 = vld [vmem:[%s1928_s28 + $0x24] ss:$8 sps:$4 sm:$0xff]   ;;  %v1663_v11 = vld [vmem:[%s1928_s28 + $0x20] ss:$8 sps:$4 sm:$0xff]  }
  0x1b   : > { %1122 = vmatpush1.bf16.msra.mxu1 %v1652_v4  ;;  %1082 = vmatprep.subr.bf16.mxu0 %v1653_v5  ;;  %v1658_v8 = vld [vmem:[%s1928_s28 + $0x110] ss:$8 sps:$4 sm:$0xff]   ;;  %v1661_v10 = vld [vmem:[%s1928_s28 + $0x124] ss:$8 sps:$4 sm:$0xff]   ;;  %v1664_v12 = vld [vmem:[%s1928_s28 + $0x120] ss:$8 sps:$4 sm:$0xff]  }
  0x1c   : > { %1123 = vmatprep.subr.bf16.mxu1 %v1655_v6  ;;  %v1665_v13 = vld [vmem:[%s1928_s28 + $0x34] ss:$8 sps:$4 sm:$0xff]   ;;  %v1669_v15 = vld [vmem:[%s1928_s28 + $0x30] ss:$8 sps:$4 sm:$0xff]   ;;  %v1671_v17 = vld [vmem:[%s1928_s28 + $0x44] ss:$8 sps:$4 sm:$0xff]  }
  0x1d   : > { %v1667_v14 = vld [vmem:[%s1928_s28 + $0x134] ss:$8 sps:$4 sm:$0xff]   ;;  %v1670_v16 = vld [vmem:[%s1928_s28 + $0x130] ss:$8 sps:$4 sm:$0xff]   ;;  %v1673_v18 = vld [vmem:[%s1928_s28 + $0x144] ss:$8 sps:$4 sm:$0xff]  }
  0x1e   : > { %1083 = vmatpush1.bf16.msra.mxu0 %v1657_v7  ;;  %v1675_v19 = vld [vmem:[%s1928_s28 + $0x40] ss:$8 sps:$4 sm:$0xff]   ;;  %v1677_v21 = vld [vmem:[%s1928_s28 + $0x54] ss:$8 sps:$4 sm:$0xff]   ;;  %v1681_v23 = vld [vmem:[%s1928_s28 + $0x50] ss:$8 sps:$4 sm:$0xff]  }
  0x1f   : > { %1124 = vmatpush1.bf16.msra.mxu1 %v1658_v8  ;;  %1084 = vmatprep.subr.bf16.mxu0 %v1659_v9  ;;  %v1676_v20 = vld [vmem:[%s1928_s28 + $0x140] ss:$8 sps:$4 sm:$0xff]   ;;  %v1679_v22 = vld [vmem:[%s1928_s28 + $0x154] ss:$8 sps:$4 sm:$0xff]   ;;  %v1682_v24 = vld [vmem:[%s1928_s28 + $0x150] ss:$8 sps:$4 sm:$0xff]  }
  0x20   : > { %1125 = vmatprep.subr.bf16.mxu1 %v1661_v10  ;;  %v1683_v25 = vld [vmem:[%s1928_s28 + $0x64] ss:$8 sps:$4 sm:$0xff]   ;;  %v1687_v27 = vld [vmem:[%s1928_s28 + $0x60] ss:$8 sps:$4 sm:$0xff]   ;;  %v1689_v29 = vld [vmem:[%s1928_s28 + $0x74] ss:$8 sps:$4 sm:$0xff]  }
  0x21   : > { %v1685_v26 = vld [vmem:[%s1928_s28 + $0x164] ss:$8 sps:$4 sm:$0xff]   ;;  %v1688_v28 = vld [vmem:[%s1928_s28 + $0x160] ss:$8 sps:$4 sm:$0xff]   ;;  %v1691_v30 = vld [vmem:[%s1928_s28 + $0x174] ss:$8 sps:$4 sm:$0xff]  }
  0x22   : > { %1085 = vmatpush1.bf16.msra.mxu0 %v1663_v11  ;;  %v1693_v31 = vld [vmem:[%s1928_s28 + $0x70] ss:$8 sps:$4 sm:$0xff]   ;;  %v1695_v33 = vld [vmem:[%s1928_s28 + $0x84] ss:$8 sps:$4 sm:$0xff]   ;;  %v1699_v35 = vld [vmem:[%s1928_s28 + $0x80] ss:$8 sps:$4 sm:$0xff]  }
  0x23   : > { %1126 = vmatpush1.bf16.msra.mxu1 %v1664_v12  ;;  %1086 = vmatprep.subr.bf16.mxu0 %v1665_v13  ;;  %v1694_v32 = vld [vmem:[%s1928_s28 + $0x170] ss:$8 sps:$4 sm:$0xff]   ;;  %v1697_v34 = vld [vmem:[%s1928_s28 + $0x184] ss:$8 sps:$4 sm:$0xff]   ;;  %v1700_v36 = vld [vmem:[%s1928_s28 + $0x180] ss:$8 sps:$4 sm:$0xff]  }
  0x24   : > { %1127 = vmatprep.subr.bf16.mxu1 %v1667_v14  ;;  %v1701_v37 = vld [vmem:[%s1928_s28 + $0x94] ss:$8 sps:$4 sm:$0xff]   ;;  %v1705_v39 = vld [vmem:[%s1928_s28 + $0x90] ss:$8 sps:$4 sm:$0xff]   ;;  %v1707_v41 = vld [vmem:[%s1928_s28 + $0xa4] ss:$8 sps:$4 sm:$0xff]  }
  0x25   : > { %v1703_v38 = vld [vmem:[%s1928_s28 + $0x194] ss:$8 sps:$4 sm:$0xff]   ;;  %v1706_v40 = vld [vmem:[%s1928_s28 + $0x190] ss:$8 sps:$4 sm:$0xff]   ;;  %v1709_v42 = vld [vmem:[%s1928_s28 + $0x1a4] ss:$8 sps:$4 sm:$0xff]  }
  0x26   : > { %1087 = vmatpush1.bf16.msra.mxu0 %v1669_v15  ;;  %v1711_v43 = vld [vmem:[%s1928_s28 + $0xa0] ss:$8 sps:$4 sm:$0xff]   ;;  %v1713_v45 = vld [vmem:[%s1928_s28 + $0xb4] ss:$8 sps:$4 sm:$0xff]   ;;  %v1717_v50 = vld [vmem:[%s1928_s28 + $0xb0] ss:$8 sps:$4 sm:$0xff]  }
  0x27   : > { %1128 = vmatpush1.bf16.msra.mxu1 %v1670_v16  ;;  %1088 = vmatprep.subr.bf16.mxu0 %v1671_v17  ;;  %v1712_v44 = vld [vmem:[%s1928_s28 + $0x1a0] ss:$8 sps:$4 sm:$0xff]   ;;  %v1715_v46 = vld [vmem:[%s1928_s28 + $0x1b4] ss:$8 sps:$4 sm:$0xff]   ;;  %v1718_v51 = vld [vmem:[%s1928_s28 + $0x1b0] ss:$8 sps:$4 sm:$0xff]  }
  0x28   : > { %1129 = vmatprep.subr.bf16.mxu1 %v1673_v18  ;;  %v280_v47 = vld [vmem:[%s1923_s24] sm:$0xff]  ;;  %v281_v49 = vld [vmem:[%s1923_s24 + $0x8] sm:$0xff]  ;;  %v1725_v57 = vld [vmem:[%s1928_s28 + $0xd4] ss:$8 sps:$4 sm:$0xff]   ;;  %p1612_p7 = scmp.ne.s32.totalorder %s1861_s15, 1 }
  0x29   : > { %v1477_v48 = vcombine.high %v280_v47, %v280_v47  ;;  %v1479_v52 = vcombine.high %v281_v49, %v281_v49  ;;  %v1719_v53 = vld [vmem:[%s1928_s28 + $0xc4] ss:$8 sps:$4 sm:$0xff]   ;;  %v1723_v55 = vld [vmem:[%s1928_s28 + $0xc0] ss:$8 sps:$4 sm:$0xff]   ;;  %v1727_v58 = vld [vmem:[%s1928_s28 + $0x1d4] ss:$8 sps:$4 sm:$0xff]   ;;  %v1476_v7 = vcombine.low %v280_v47, %v280_v47  ;;  %v1478_v8 = vcombine.low %v281_v49, %v281_v49 }
  0x2a   : > { %1089 = vmatpush1.bf16.msra.mxu0 %v1675_v19  ;;  %v1721_v54 = vld [vmem:[%s1928_s28 + $0x1c4] ss:$8 sps:$4 sm:$0xff]   ;;  %v1724_v56 = vld [vmem:[%s1928_s28 + $0x1c0] ss:$8 sps:$4 sm:$0xff]   ;;  %v1729_v59 = vld [vmem:[%s1928_s28 + $0xd0] ss:$8 sps:$4 sm:$0xff]  }
  0x2b   : > { %1130 = vmatpush1.bf16.msra.mxu1 %v1676_v20  ;;  %1090 = vmatprep.subr.bf16.mxu0 %v1677_v21  ;;  %v1730_v60 = vld [vmem:[%s1928_s28 + $0x1d0] ss:$8 sps:$4 sm:$0xff]   ;;  %v1731_v61 = vld [vmem:[%s1928_s28 + $0xe4] ss:$8 sps:$4 sm:$0xff]   ;;  %v1735_v63 = vld [vmem:[%s1928_s28 + $0xe0] ss:$8 sps:$4 sm:$0xff]  }
  0x2c   : > { %1131 = vmatprep.subr.bf16.mxu1 %v1679_v22  ;;  %1112 = vmatprep.mubr.bf16.mxu0 %v1477_v48  ;;  %v1733_v62 = vld [vmem:[%s1928_s28 + $0x1e4] ss:$8 sps:$4 sm:$0xff]   ;;  %v1736_v0 = vld [vmem:[%s1928_s28 + $0x1e0] ss:$8 sps:$4 sm:$0xff]   ;;  %v1737_v1 = vld [vmem:[%s1928_s28 + $0xf4] ss:$8 sps:$4 sm:$0xff]  }
  0x2d   : > { %1153 = vmatprep.mubr.bf16.mxu1 %v1479_v52  ;;  %v1739_v2 = vld [vmem:[%s1928_s28 + $0x1f4] ss:$8 sps:$4 sm:$0xff]   ;;  %v1741_v3 = vld [vmem:[%s1928_s28 + $0xf0] ss:$8 sps:$4 sm:$0xff]   ;;  %v1749_v5 = vld [vmem:[%s1928_s28 + $0x204] ss:$8 sps:$4 sm:$0xff]  }
  0x2e   : > { %1091 = vmatpush1.bf16.msra.mxu0 %v1681_v23  ;;  %v1742_v4 = vld [vmem:[%s1928_s28 + $0x1f0] ss:$8 sps:$4 sm:$0xff]   ;;  %v1752_v6 = vld [vmem:[%s1928_s28 + $0x304] ss:$8 sps:$4 sm:$0xff]   ;;  %v1747_v9 = vld [vmem:[%s1928_s28 + $0x200] ss:$8 sps:$4 sm:$0xff]  }
  0x2f   : > { %1132 = vmatpush1.bf16.msra.mxu1 %v1682_v24  ;;  %1092 = vmatprep.subr.bf16.mxu0 %v1683_v25  ;;  %v1750_v10 = vld [vmem:[%s1928_s28 + $0x300] ss:$8 sps:$4 sm:$0xff]   ;;  %v1755_v11 = vld [vmem:[%s1928_s28 + $0x214] ss:$8 sps:$4 sm:$0xff]   ;;  %v1753_v13 = vld [vmem:[%s1928_s28 + $0x210] ss:$8 sps:$4 sm:$0xff]  }
  0x30   : > { %1133 = vmatprep.subr.bf16.mxu1 %v1685_v26  ;;  %v1758_v12 = vld [vmem:[%s1928_s28 + $0x314] ss:$8 sps:$4 sm:$0xff]   ;;  %v1756_v14 = vld [vmem:[%s1928_s28 + $0x310] ss:$8 sps:$4 sm:$0xff]   ;;  %v1761_v15 = vld [vmem:[%s1928_s28 + $0x224] ss:$8 sps:$4 sm:$0xff]  }
  0x31   : > { %v1764_v16 = vld [vmem:[%s1928_s28 + $0x324] ss:$8 sps:$4 sm:$0xff]   ;;  %v1759_v17 = vld [vmem:[%s1928_s28 + $0x220] ss:$8 sps:$4 sm:$0xff]   ;;  %v1767_v19 = vld [vmem:[%s1928_s28 + $0x234] ss:$8 sps:$4 sm:$0xff]  }
  0x32   : > { %1093 = vmatpush1.bf16.msra.mxu0 %v1687_v27  ;;  %v1762_v18 = vld [vmem:[%s1928_s28 + $0x320] ss:$8 sps:$4 sm:$0xff]   ;;  %v1770_v20 = vld [vmem:[%s1928_s28 + $0x334] ss:$8 sps:$4 sm:$0xff]   ;;  %v1765_v21 = vld [vmem:[%s1928_s28 + $0x230] ss:$8 sps:$4 sm:$0xff]  }
  0x33   : > { %1134 = vmatpush1.bf16.msra.mxu1 %v1688_v28  ;;  %1094 = vmatprep.subr.bf16.mxu0 %v1689_v29  ;;  %v1768_v22 = vld [vmem:[%s1928_s28 + $0x330] ss:$8 sps:$4 sm:$0xff]   ;;  %v1773_v23 = vld [vmem:[%s1928_s28 + $0x244] ss:$8 sps:$4 sm:$0xff]   ;;  %v1771_v25 = vld [vmem:[%s1928_s28 + $0x240] ss:$8 sps:$4 sm:$0xff]  }
  0x34   : > { %1135 = vmatprep.subr.bf16.mxu1 %v1691_v30  ;;  %v1776_v24 = vld [vmem:[%s1928_s28 + $0x344] ss:$8 sps:$4 sm:$0xff]   ;;  %v1774_v26 = vld [vmem:[%s1928_s28 + $0x340] ss:$8 sps:$4 sm:$0xff]   ;;  %v1779_v27 = vld [vmem:[%s1928_s28 + $0x254] ss:$8 sps:$4 sm:$0xff]  }
  0x35   : > { %v1782_v28 = vld [vmem:[%s1928_s28 + $0x354] ss:$8 sps:$4 sm:$0xff]   ;;  %v1777_v29 = vld [vmem:[%s1928_s28 + $0x250] ss:$8 sps:$4 sm:$0xff]   ;;  %v1812_v52 = vld [vmem:[%s1928_s28 + $0x3a4] ss:$8 sps:$4 sm:$0xff]  }
  0x36   : > { %1095 = vmatpush1.bf16.msra.mxu0 %v1693_v31  ;;  %v1780_v30 = vld [vmem:[%s1928_s28 + $0x350] ss:$8 sps:$4 sm:$0xff]   ;;  %v1785_v31 = vld [vmem:[%s1928_s28 + $0x264] ss:$8 sps:$4 sm:$0xff]   ;;  %v1803_v47 = vld [vmem:[%s1928_s28 + $0x294] ss:$8 sps:$4 sm:$0xff]  }
  0x37   : > { %1136 = vmatpush1.bf16.msra.mxu1 %v1694_v32  ;;  %1096 = vmatprep.subr.bf16.mxu0 %v1695_v33  ;;  %v1788_v32 = vld [vmem:[%s1928_s28 + $0x364] ss:$8 sps:$4 sm:$0xff]   ;;  %v2024_v33 = vld [vmem:[%s1923_s24 + $0x10] sm:$0xff] }
  0x38   : > { %1137 = vmatprep.subr.bf16.mxu1 %v1697_v34  ;;  %v2027_v34 = vld [vmem:[%s1923_s24 + $0x18] sm:$0xff] }
  0x39   : > { %v1806_v48 = vld [vmem:[%s1928_s28 + $0x394] ss:$8 sps:$4 sm:$0xff]   ;;  %v1801_v49 = vld [vmem:[%s1928_s28 + $0x290] ss:$8 sps:$4 sm:$0xff]  }
  0x3a   : > { %1097 = vmatpush1.bf16.msra.mxu0 %v1699_v35  ;;  %v1481_v35 = vcombine.high %v2024_v33, %v2024_v33 }
  0x3b   : > { %1138 = vmatpush1.bf16.msra.mxu1 %v1700_v36  ;;  %1098 = vmatprep.subr.bf16.mxu0 %v1701_v37  ;;  %v1483_v36 = vcombine.high %v2027_v34, %v2027_v34  ;;  %v1783_v37 = vld [vmem:[%s1928_s28 + $0x260] ss:$8 sps:$4 sm:$0xff]  }
  0x3c   : > { %1139 = vmatprep.subr.bf16.mxu1 %v1703_v38  ;;  %v1786_v38 = vld [vmem:[%s1928_s28 + $0x360] ss:$8 sps:$4 sm:$0xff]  }
  0x3e   : > { %1099 = vmatpush1.bf16.msra.mxu0 %v1705_v39  ;;  %v1791_v39 = vld [vmem:[%s1928_s28 + $0x274] ss:$8 sps:$4 sm:$0xff]  }
  0x3f   : > { %1140 = vmatpush1.bf16.msra.mxu1 %v1706_v40  ;;  %1100 = vmatprep.subr.bf16.mxu0 %v1707_v41  ;;  %v1794_v40 = vld [vmem:[%s1928_s28 + $0x374] ss:$8 sps:$4 sm:$0xff]   ;;  %v1789_v41 = vld [vmem:[%s1928_s28 + $0x270] ss:$8 sps:$4 sm:$0xff]  }
  0x40   : > { %1141 = vmatprep.subr.bf16.mxu1 %v1709_v42  ;;  %v1792_v42 = vld [vmem:[%s1928_s28 + $0x370] ss:$8 sps:$4 sm:$0xff]  }
  0x42   : > { %1101 = vmatpush1.bf16.msra.mxu0 %v1711_v43  ;;  %v1797_v43 = vld [vmem:[%s1928_s28 + $0x284] ss:$8 sps:$4 sm:$0xff]  }
  0x43   : > { %1142 = vmatpush1.bf16.msra.mxu1 %v1712_v44  ;;  %1102 = vmatprep.subr.bf16.mxu0 %v1713_v45  ;;  %v1800_v44 = vld [vmem:[%s1928_s28 + $0x384] ss:$8 sps:$4 sm:$0xff]   ;;  %v1795_v45 = vld [vmem:[%s1928_s28 + $0x280] ss:$8 sps:$4 sm:$0xff]  }
  0x44   : > { %1143 = vmatprep.subr.bf16.mxu1 %v1715_v46  ;;  %v1798_v46 = vld [vmem:[%s1928_s28 + $0x380] ss:$8 sps:$4 sm:$0xff]  }
  0x46   : > { %1103 = vmatpush1.bf16.msra.mxu0 %v1717_v50  ;;  %v1804_v50 = vld [vmem:[%s1928_s28 + $0x390] ss:$8 sps:$4 sm:$0xff]  }
  0x47   : > { %1144 = vmatpush1.bf16.msra.mxu1 %v1718_v51  ;;  %1104 = vmatprep.subr.bf16.mxu0 %v1719_v53  ;;  %v1809_v51 = vld [vmem:[%s1928_s28 + $0x2a4] ss:$8 sps:$4 sm:$0xff]   ;;  %v1807_v53 = vld [vmem:[%s1928_s28 + $0x2a0] ss:$8 sps:$4 sm:$0xff]  }
  0x48   : > { %1145 = vmatprep.subr.bf16.mxu1 %v1721_v54  ;;  %v1810_v54 = vld [vmem:[%s1928_s28 + $0x3a0] ss:$8 sps:$4 sm:$0xff]  }
  0x4a   : > { %1105 = vmatpush1.bf16.msra.mxu0 %v1723_v55  ;;  %v1815_v55 = vld [vmem:[%s1928_s28 + $0x2b4] ss:$8 sps:$4 sm:$0xff]  }
  0x4b   : > { %1146 = vmatpush1.bf16.msra.mxu1 %v1724_v56  ;;  %1106 = vmatprep.subr.bf16.mxu0 %v1725_v57  ;;  %v1818_v56 = vld [vmem:[%s1928_s28 + $0x3b4] ss:$8 sps:$4 sm:$0xff]   ;;  %v1813_v57 = vld [vmem:[%s1928_s28 + $0x2b0] ss:$8 sps:$4 sm:$0xff]  }
  0x4c   : > { %1147 = vmatprep.subr.bf16.mxu1 %v1727_v58  ;;  %v1816_v58 = vld [vmem:[%s1928_s28 + $0x3b0] ss:$8 sps:$4 sm:$0xff]  }
  0x4e   : > { %1107 = vmatpush1.bf16.msra.mxu0 %v1729_v59  ;;  %v1821_v59 = vld [vmem:[%s1928_s28 + $0x2c4] ss:$8 sps:$4 sm:$0xff]  }
  0x4f   : > { %1148 = vmatpush1.bf16.msra.mxu1 %v1730_v60  ;;  %1108 = vmatprep.subr.bf16.mxu0 %v1731_v61  ;;  %v1824_v60 = vld [vmem:[%s1928_s28 + $0x3c4] ss:$8 sps:$4 sm:$0xff]   ;;  %v1819_v61 = vld [vmem:[%s1928_s28 + $0x2c0] ss:$8 sps:$4 sm:$0xff]  }
  0x50   : > { %1149 = vmatprep.subr.bf16.mxu1 %v1733_v62  ;;  %v1822_v62 = vld [vmem:[%s1928_s28 + $0x3c0] ss:$8 sps:$4 sm:$0xff]  }
  0x52   : > { %1109 = vmatpush1.bf16.msra.mxu0 %v1735_v63  ;;  %v1827_v63 = vld [vmem:[%s1928_s28 + $0x2d4] ss:$8 sps:$4 sm:$0xff]  }
  0x53   : > { %1150 = vmatpush1.bf16.msra.mxu1 %v1736_v0  ;;  %1110 = vmatprep.subr.bf16.mxu0 %v1737_v1  ;;  %v1830_v0 = vld [vmem:[%s1928_s28 + $0x3d4] ss:$8 sps:$4 sm:$0xff]   ;;  %v1825_v1 = vld [vmem:[%s1928_s28 + $0x2d0] ss:$8 sps:$4 sm:$0xff]  }
  0x54   : > { %1151 = vmatprep.subr.bf16.mxu1 %v1739_v2  ;;  %v1828_v2 = vld [vmem:[%s1928_s28 + $0x3d0] ss:$8 sps:$4 sm:$0xff]  }
  0x56   : > { %1111 = vmatpush1.bf16.msra.mxu0 %v1741_v3  ;;  %v1833_v3 = vld [vmem:[%s1928_s28 + $0x2e4] ss:$8 sps:$4 sm:$0xff]  }
  0x57   : > { %1152 = vmatpush1.bf16.msra.mxu1 %v1742_v4  ;;  %1162 = vmatprep.subr.bf16.mxu0 %v1749_v5  ;;  %v1836_v4 = vld [vmem:[%s1928_s28 + $0x3e4] ss:$8 sps:$4 sm:$0xff]   ;;  %v1831_v5 = vld [vmem:[%s1928_s28 + $0x2e0] ss:$8 sps:$4 sm:$0xff]  }
  0x58   : > { %1203 = vmatprep.subr.bf16.mxu1 %v1752_v6  ;;  %v1834_v6 = vld [vmem:[%s1928_s28 + $0x3e0] ss:$8 sps:$4 sm:$0xff]  }
  0x59   : > { %1113 = vmatmul.mubr.bf16.vlgmr.msra.gmra.mrb[0].mxu0 %v1476_v7  ;;  %v1839_v7 = vld [vmem:[%s1928_s28 + $0x2f4] ss:$8 sps:$4 sm:$0xff]  }
  0x5a   : > { %1154 = vmatmul.mubr.bf16.vlgmr.msra.gmra.mrb[0].mxu1 %v1478_v8  ;;  %1163 = vmatpush1.bf16.msra.mxu0 %v1747_v9  ;;  %v1842_v8 = vld [vmem:[%s1928_s28 + $0x3f4] ss:$8 sps:$4 sm:$0xff]   ;;  %v1837_v9 = vld [vmem:[%s1928_s28 + $0x2f0] ss:$8 sps:$4 sm:$0xff]  }
  0x5b   : > { %1204 = vmatpush1.bf16.msra.mxu1 %v1750_v10  ;;  %1164 = vmatprep.subr.bf16.mxu0 %v1755_v11  ;;  %v1840_v10 = vld [vmem:[%s1928_s28 + $0x3f0] ss:$8 sps:$4 sm:$0xff]   ;;  %v1480_v11 = vcombine.low %v2024_v33, %v2024_v33  ;;  %v279_v33 = vld [vmem:[#allocation2 + $0x8] sm:$0xff] }
  0x5c   : > { %1205 = vmatprep.subr.bf16.mxu1 %v1758_v12  ;;  %1194 = vmatprep.mubr.bf16.mxu0 %v1481_v35  ;;  %v1482_v12 = vcombine.low %v2027_v34, %v2027_v34 }
  0x5d   : > { %1235 = vmatprep.mubr.bf16.mxu1 %v1483_v36 }
  0x5e   : > { %1165 = vmatpush1.bf16.msra.mxu0 %v1753_v13 }
  0x5f   : > { %1206 = vmatpush1.bf16.msra.mxu1 %v1756_v14  ;;  %1166 = vmatprep.subr.bf16.mxu0 %v1761_v15 }
  0x60   : > { %1207 = vmatprep.subr.bf16.mxu1 %v1764_v16 }
  0x62   : > { %1167 = vmatpush1.bf16.msra.mxu0 %v1759_v17 }
  0x63   : > { %1208 = vmatpush1.bf16.msra.mxu1 %v1762_v18  ;;  %1168 = vmatprep.subr.bf16.mxu0 %v1767_v19 }
  0x64   : > { %1209 = vmatprep.subr.bf16.mxu1 %v1770_v20 }
  0x66   : > { %1169 = vmatpush1.bf16.msra.mxu0 %v1765_v21 }
  0x67   : > { %1210 = vmatpush1.bf16.msra.mxu1 %v1768_v22  ;;  %1170 = vmatprep.subr.bf16.mxu0 %v1773_v23 }
  0x68   : > { %1211 = vmatprep.subr.bf16.mxu1 %v1776_v24 }
  0x6a   : > { %1171 = vmatpush1.bf16.msra.mxu0 %v1771_v25 }
  0x6b   : > { %1212 = vmatpush1.bf16.msra.mxu1 %v1774_v26  ;;  %1172 = vmatprep.subr.bf16.mxu0 %v1779_v27 }
  0x6c   : > { %1213 = vmatprep.subr.bf16.mxu1 %v1782_v28  ;;  %v278_v28 = vld [vmem:[#allocation2] sm:$0xff] }
  0x6e   : > { %1173 = vmatpush1.bf16.msra.mxu0 %v1777_v29 }
  0x6f   : > { %1214 = vmatpush1.bf16.msra.mxu1 %v1780_v30  ;;  %1174 = vmatprep.subr.bf16.mxu0 %v1785_v31 }
  0x70   : > { %1215 = vmatprep.subr.bf16.mxu1 %v1788_v32 }
  0x72   : > { %1175 = vmatpush1.bf16.msra.mxu0 %v1783_v37 }
  0x73   : > { %1216 = vmatpush1.bf16.msra.mxu1 %v1786_v38  ;;  %1176 = vmatprep.subr.bf16.mxu0 %v1791_v39 }
  0x74   : > { %1217 = vmatprep.subr.bf16.mxu1 %v1794_v40 }
  0x76   : > { %1177 = vmatpush1.bf16.msra.mxu0 %v1789_v41 }
  0x77   : > { %1218 = vmatpush1.bf16.msra.mxu1 %v1792_v42  ;;  %1178 = vmatprep.subr.bf16.mxu0 %v1797_v43 }
  0x78   : > { %1219 = vmatprep.subr.bf16.mxu1 %v1800_v44 }
  0x7a   : > { %1179 = vmatpush1.bf16.msra.mxu0 %v1795_v45 }
  0x7b   : > { %1220 = vmatpush1.bf16.msra.mxu1 %v1798_v46  ;;  %1180 = vmatprep.subr.bf16.mxu0 %v1803_v47  ;;  %v1281_v46 = vlaneseq (!%p1612_p7) }
  0x7c   : > { %1221 = vmatprep.subr.bf16.mxu1 %v1806_v48 }
  0x7d   : > { %vm1295_vm0 = vcmp.lt.s32.totalorder (!%p1612_p7), %v1281_v46, 256 }
  0x7e   : > { %1181 = vmatpush1.bf16.msra.mxu0 %v1801_v49 }
  0x7f   : > { %1222 = vmatpush1.bf16.msra.mxu1 %v1804_v50  ;;  %1182 = vmatprep.subr.bf16.mxu0 %v1809_v51  ;;  %v1872_v50 = vmov (!%p1612_p7), 1966171168  }
  0x80   : > { %1223 = vmatprep.subr.bf16.mxu1 %v1812_v52  ;;  %v1279_v51 = vunpack.c.l.s4 (!%p1612_p7), %v1872_v50 }
  0x82   : > { %1183 = vmatpush1.bf16.msra.mxu0 %v1807_v53 }
  0x83   : > { %1224 = vmatpush1.bf16.msra.mxu1 %v1810_v54  ;;  %1184 = vmatprep.subr.bf16.mxu0 %v1815_v55 }
  0x84   : > { %1225 = vmatprep.subr.bf16.mxu1 %v1818_v56 }
  0x86   : > { %1185 = vmatpush1.bf16.msra.mxu0 %v1813_v57  ;;  %v1282_v57 = vshrl.u32 (!%p1612_p7), %v1281_v46, 7 }
  0x87   : > { %1226 = vmatpush1.bf16.msra.mxu1 %v1816_v58  ;;  %1186 = vmatprep.subr.bf16.mxu0 %v1821_v59 }
  0x88   : > { %1227 = vmatprep.subr.bf16.mxu1 %v1824_v60  ;;  %v1280_v60 = vunpack.c.0.s8 (!%p1612_p7), %v1279_v51 }
  0x8a   : > { %1187 = vmatpush1.bf16.msra.mxu0 %v1819_v61 }
  0x8b   : > { %1228 = vmatpush1.bf16.msra.mxu1 %v1822_v62  ;;  %1188 = vmatprep.subr.bf16.mxu0 %v1827_v63 }
  0x8c   : > { %1229 = vmatprep.subr.bf16.mxu1 %v1830_v0 }
  0x8e   : > { %1189 = vmatpush1.bf16.msra.mxu0 %v1825_v1 }
  0x8f   : > { %1230 = vmatpush1.bf16.msra.mxu1 %v1828_v2  ;;  %1190 = vmatprep.subr.bf16.mxu0 %v1833_v3 }
  0x90   : > { %1231 = vmatprep.subr.bf16.mxu1 %v1836_v4 }
  0x92   : > { %1191 = vmatpush1.bf16.msra.mxu0 %v1831_v5  ;;  %v1283_v5 = vsub.s32 (!%p1612_p7), %v1280_v60, %v1282_v57 }
  0x93   : > { %1232 = vmatpush1.bf16.msra.mxu1 %v1834_v6  ;;  %1192 = vmatprep.subr.bf16.mxu0 %v1839_v7 }
  0x94   : > { %1233 = vmatprep.subr.bf16.mxu1 %v1842_v8 }
  0x96   : > { %1193 = vmatpush1.bf16.msra.mxu0 %v1837_v9 }
  0x97   : > { %1234 = vmatpush1.bf16.msra.mxu1 %v1840_v10 }
  0x99   : > { %1195 = vmatmul.mubr.bf16.vlgmr.msra.gmra.mrb[4].mxu0 %v1480_v11 }
  0x9a   : > { %1236 = vmatmul.mubr.bf16.vlgmr.msra.gmra.mrb[4].mxu1 %v1482_v12 }
 0x12c   : > { %v1114_v13 = vpop.f32.mrb[0].mxu0 }
 0x12d   : > { %v1155_v14 = vpop.f32.mrb[0].mxu1  ;;  %v1116_v16 = vpop.f32.mrb[1].mxu0 }
 0x12e   : > { %v1156_v15 = vadd.f32 %v1155_v14, %v1114_v13  ;;  %v1157_v17 = vpop.f32.mrb[1].mxu1  ;;  %v1118_v19 = vpop.f32.mrb[2].mxu0 }
 0x12f   : > { %v1158_v18 = vadd.f32 %v1157_v17, %v1116_v16  ;;  %v1159_v20 = vpop.f32.mrb[2].mxu1  ;;  %v1119_v21 = vpop.f32.mrb[3].mxu0 }
 0x130   : > { %v1160_v22 = vpop.f32.mrb[3].mxu1 }
 0x16c   : > { %v1196_v23 = vpop.f32.mrb[4].mxu0 }
 0x16d   : > { %v1237_v24 = vpop.f32.mrb[4].mxu1  ;;  %v1197_v25 = vadd.f32 %v1196_v23, %v1156_v15  ;;  %v1198_v26 = vpop.f32.mrb[5].mxu0 }
 0x16e   : > { %v1239_v27 = vpop.f32.mrb[5].mxu1  ;;  %v1199_v29 = vadd.f32 %v1198_v26, %v1158_v18  ;;  %v1200_v30 = vpop.f32.mrb[6].mxu0  ;;  %1251 = sbr.rel (%p1612_p7) target bundleno = 401 (0x191), region = 36 }
 0x16f   : > { %v1241_v31 = vpop.f32.mrb[6].mxu1  ;;  %v1238_v32 = vadd.f32 %v1237_v24, %v1197_v25  ;;  %v1201_v34 = vpop.f32.mrb[7].mxu0 }
 0x170   : > { %v1242_v35 = vpop.f32.mrb[7].mxu1  ;;  %v1240_v36 = vadd.f32 %v1239_v27, %v1199_v29 }
 0x171   : > { %v1244_v37 = vadd.f32 %v1238_v32, %v278_v28 }
 0x172   : > { %v1245_v38 = vadd.f32 %v1240_v36, %v279_v33 }
 0x173   : > { %1246 = vst [vmem:[#allocation2] sm:$0xff] %v1244_v37 }
 0x174   : > { %1247 = vst [vmem:[#allocation2 + $0x8] sm:$0xff] %v1245_v38 }
 0x17a   : > { %v1252_v39 = vld [vmem:[#allocation2] sm:$0xff] }
 0x17b   : > { %v1253_v40 = vld [vmem:[#allocation2 + $0x8] sm:$0xff]  ;;  %v1263_v42 = vrot.slane %v1252_v39, 4  ;;  %v1298_v44 = vmul.f32 %v1252_v39, %v1252_v39 }
 0x17c   : > { %v1620_v41 = vpack.c.bf16 %v1253_v40, %v1252_v39  ;;  %v1269_v43 = vrot.slane %v1253_v40, 4  ;;  %v1299_v45 = vmul.f32 %v1253_v40, %v1253_v40 }
 0x17d   : > { %v1264_v47 = vadd.f32 %v1263_v42, %v1252_v39  ;;  %v1300_v49 = vrot.slane %v1298_v44, 4 }
 0x17e   : > { %1262 = vst [vmem:[%s2096_s2] sm:$0xff] %v1620_v41  ;;  %v1270_v48 = vadd.f32 %v1269_v43, %v1253_v40  ;;  %v1306_v52 = vrot.slane %v1299_v45, 4 }
 0x17f   : > { %v1265_v53 = vrot.slane %v1264_v47, 2  ;;  %v1301_v55 = vadd.f32 %v1300_v49, %v1298_v44 }
 0x180   : > { %v1271_v54 = vrot.slane %v1270_v48, 2  ;;  %v1307_v56 = vadd.f32 %v1306_v52, %v1299_v45 }
 0x181   : > { %v1266_v58 = vadd.f32 %v1265_v53, %v1264_v47  ;;  %v1302_v61 = vrot.slane %v1301_v55, 2 }
 0x182   : > { %v1272_v59 = vadd.f32 %v1271_v54, %v1270_v48  ;;  %v1308_v62 = vrot.slane %v1307_v56, 2 }
 0x183   : > { %v1267_v63 = vrot.slane %v1266_v58, 1  ;;  %v1303_v1 = vadd.f32 %v1302_v61, %v1301_v55 }
 0x184   : > { %v1273_v0 = vrot.slane %v1272_v59, 1  ;;  %v1309_v2 = vadd.f32 %v1308_v62, %v1307_v56 }
 0x185   : > { %v1268_v3 = vadd.f32 %v1267_v63, %v1266_v58  ;;  %v1304_v6 = vrot.slane %v1303_v1, 1 }
 0x186   : > { %v1274_v4 = vadd.f32 %v1273_v0, %v1272_v59  ;;  %v1310_v7 = vrot.slane %v1309_v2, 1 }
 0x187   : > { %v1305_v9 = vadd.f32 %v1304_v6, %v1303_v1 }
 0x188   : > { %v1277_v8 = vcombine.low %v1268_v3, %v1274_v4  ;;  %v1311_v10 = vadd.f32 %v1310_v7, %v1309_v2 }
 0x18a   : > { %v1284_v11 = vrot.slane %v1277_v8, %v1283_v5  ;;  %v1314_v12 = vcombine.low %v1305_v9, %v1311_v10 }
 0x18c   : > { %v1291_v13 = vrot.slane %v1284_v11, %v1283_v5  ;;  %v1321_v14 = vrot.slane %v1314_v12, %v1283_v5 }
 0x18e   : > { %1297 = vst.msk [vmem:[%s2097_s3] sm:$0x3] %vm1295_vm0, %v1291_v13  ;;  %v1328_v15 = vrot.slane %v1321_v14, %v1283_v5 }
 0x190   : > { %1330 = vst.msk [vmem:[%s2098_s4] sm:$0x3] %vm1295_vm0, %v1328_v15 }
 0x191 PF: > { %s15_s17 = sadd.s32 1, %s1869_s17   ;;  %s2099_s15 = smov %s1865_s16 }
 0x192   : > { %p12_p8 = scmp.ge.s32.totalorder %s15_s17, 4   ;;  %s2100_s16 = smov %s2102_s18 }
 0x194   :  { %14 = sbr.rel (!%p12_p8) target bundleno = 2 (0x2), region = 93 }

// kernel: discriminator_forward.14
= control target key start
LH: loop header
LB: loop body
LE: loop exit
PB: predicated region body
PF: predicated region fallthrough
CT: control target
= control target key end

     0   :  { %v18_v0 = vlaneseq  ;;  %v158_v1 = vmov 1983009808   ;;  %v159_v33 = vmov 1966171168   ;;  %s192_s1 = inlined_call_operand.vmem [shape: f32[1,512], index: 1, kind: input, shape index: {}]   ;;  %s193_s2 = inlined_call_operand.vmem [shape: f32[1,512], index: 2, kind: input, shape index: {}]   ;;  %s194_s0 = inlined_call_operand.vmem [shape: bf16[2,512], index: 0, kind: input, shape index: {}]   ;;  %s195_s3 = inlined_call_operand.vmem [shape: bf16[2,512], index: 3, kind: output, shape index: {}]  }
   0x1   :  { %v37_v2 = vunpack.c.l.s4 %v158_v1  ;;  %v16_v4 = vld [vmem:[%s192_s1] sm:$0xf]  ;;  %v126_v34 = vunpack.c.l.s4 %v159_v33 }
   0x2   :  { %v19_v3 = vshrl.u32 %v18_v0, 7  ;;  %v53_v10 = vld [vmem:[%s193_s2] sm:$0xf] }
   0x3   :  { %v38_v5 = vunpack.c.0.s8 %v37_v2  ;;  %v14_v16 = vld [vmem:[%s194_s0] sm:$0xf]  ;;  %v127_v37 = vunpack.c.0.s8 %v126_v34 }
   0x4   :  { %v20_v6 = vsub.s32 0, %v19_v3  ;;  %v24_v7 = vsub.s32 1, %v19_v3  ;;  %v28_v8 = vsub.s32 2, %v19_v3  ;;  %v32_v9 = vsub.s32 3, %v19_v3 }
   0x5   :  { %v41_v11 = vsub.s32 %v38_v5, %v19_v3  ;;  %v15_v25 = vunpack.c.l.bf16 %v14_v16  ;;  %v130_v43 = vsub.s32 %v127_v37, %v19_v3 }
   0x6   :  { %v21_v12 = vrot.slane %v16_v4, %v20_v6  ;;  %v25_v13 = vrot.slane %v16_v4, %v24_v7  ;;  %v29_v14 = vrot.slane %v16_v4, %v28_v8  ;;  %v33_v15 = vrot.slane %v16_v4, %v32_v9 }
   0x7   :  { %v58_v17 = vrot.slane %v53_v10, %v20_v6  ;;  %v62_v18 = vrot.slane %v53_v10, %v24_v7  ;;  %v66_v19 = vrot.slane %v53_v10, %v28_v8  ;;  %v70_v20 = vrot.slane %v53_v10, %v32_v9 }
   0x8   :  { %v34_v21 = vcombine.low %v21_v12, %v25_v13  ;;  %v35_v22 = vcombine.low %v29_v14, %v33_v15 }
   0x9   :  { %v71_v23 = vcombine.low %v58_v17, %v62_v18  ;;  %v72_v24 = vcombine.low %v66_v19, %v70_v20 }
   0xa   :  { %v42_v26 = vrot.slane %v34_v21, %v41_v11  ;;  %v49_v27 = vrot.slane %v35_v22, %v41_v11 }
   0xb   :  { %v79_v28 = vrot.slane %v71_v23, %v41_v11  ;;  %v86_v29 = vrot.slane %v72_v24, %v41_v11 }
   0xc   :  { %v50_v30 = vcombine.low %v42_v26, %v49_v27 }
   0xd   :  { %v87_v31 = vcombine.low %v79_v28, %v86_v29 }
   0xe   :  { %v52_v32 = vmul.f32 %v50_v30, %v15_v25 }
  0x10   :  { %v89_v35 = vadd.f32 %v87_v31, %v52_v32 }
  0x12   :  { %vm90_vm0 = vcmp.ge.f32.partialorder %v89_v35, 0.0  ;;  %v91_v36 = vmul.f32 0.2, %v89_v35 }
  0x14   :  { %v92_v38 = vsel %vm90_vm0, %v89_v35, %v91_v36 }
  0x15   :  { %v94_v39 = vcombine.high %v92_v38, %v92_v38  ;;  %v101_v40 = vrot.slane %v92_v38, %v41_v11 }
  0x17   :  { %v108_v41 = vrot.slane %v94_v39, %v41_v11  ;;  %v109_v42 = vcombine.high %v101_v40, %v101_v40 }
  0x19   :  { %v110_v44 = vcombine.high %v108_v41, %v108_v41  ;;  %v153_v45 = vpack.c.bf16 %v109_v42, %v101_v40 }
  0x1b   :  { %v154_v46 = vpack.c.bf16 %v110_v44, %v108_v41  ;;  %v131_v47 = vrot.slane %v153_v45, %v130_v43 }
  0x1d   :  { %v138_v48 = vrot.slane %v154_v46, %v130_v43 }
  0x1f   :  { %v139_v49 = vcombine.low %v131_v47, %v138_v48 }
  0x21   :  { %155 = vst.sshfl [vmem:[%s195_s3] sm:$0x55 pattern:$0x73625140] %v139_v49 }

// kernel: discriminator_forward.13
= control target key start
LH: loop header
LB: loop body
LE: loop exit
PB: predicated region body
PF: predicated region fallthrough
CT: control target
= control target key end

     0   :  { %s3319_s15 = smov 0   ;;  %s3321_s16 = smov 0   ;;  %s3681_s0 = inlined_call_operand.vmem [shape: bf16[2,4096], index: 0, kind: input, shape index: {}]   ;;  %s3682_s1 = inlined_call_operand.vmem [shape: bf16[4096,512], index: 1, kind: input, shape index: {}]   ;;  %s3683_s2 = inlined_call_operand.vmem [shape: bf16[2,512], index: 2, kind: output, shape index: {0}]   ;;  %s3684_s3 = inlined_call_operand.vmem [shape: f32[1,1,512], index: 3, kind: output, shape index: {1}]   ;;  %s3685_s4 = inlined_call_operand.vmem [shape: f32[1,1,512], index: 4, kind: output, shape index: {2}]  }
   0x1   :  { %s3323_s17 = smov 0  }
   0x2 LB: > { %s24_s18 = sadd.s32 1, %s3285_s16  ;;  %p2558_p0 = scmp.ge.s32.totalorder %s3289_s17, 1  ;;  %s3289_s17 = sphi %s3323_s17, %s15_s17   ;;  %s3285_s16 = sphi %s3321_s16, %s3687_s16   ;;  %s3281_s15 = sphi %s3319_s15, %s3686_s15  }
   0x3   : > { %p25_p1 = scmp.ge.s32.totalorder %s24_s18, 4  ;;  %p197_p2 = scmp.lt.s32.totalorder %s3289_s17, 5 }
   0x5   : > { %s3689_s18 = smov (%p25_p1, %s24_s18), 0  ;;  %p198_p3 = pnand %p2558_p0, %p197_p2 }
   0x6   : > { %s2559_s19 = sshll.u32 (!%p198_p3), %s3281_s15, 3  ;;  %s2560_s20 = sshll.u32 (!%p198_p3), %s3281_s15, 7 }
   0x7   : > { %201 = sbr.rel (%p198_p3) target bundleno = 544 (0x220), region = 28  ;;  %p242_p4 = scmp.lt.s32.totalorder (!%p198_p3), %s2559_s19, 31 }
   0x8   : > { %p249_p5 = scmp.lt.s32.totalorder (!%p198_p3), %s2560_s20, 511  ;;  %p2563_p6 = scmp.ne.s32.totalorder (!%p198_p3), %s3281_s15, 0 }
   0xe   : > { %s3691_s19 = smov (!%p242_p4, %s2559_s19), 31  ;;  %s3693_s20 = smov (!%p249_p5, %s2560_s20), 511 }
   0xf   : > { %s246_s23 = scalar_lea.vmem %s3681_s0, %s3691_s19  ;;  %s2829_s24 = sshll.u32 %s3693_s20, 4  ;;  %v3291_v0 = vmov (!%p2563_p6), 0.0  }
  0x10   : > { %s3350_s27 = scalar_lea.vmem %s3682_s1, %s2829_s24  ;;  %270 = sbr.rel (%p2563_p6) target bundleno = 23 (0x17), region = 32  ;;  %271 = vst [vmem:[#allocation2] sm:$0xff] (!%p2563_p6), %v3291_v0 }
  0x17 PF: > { %v2881_v1 = vld [vmem:[%s3350_s27 + $0x4] ss:$16 sps:$4 sm:$0xff]   ;;  %v2883_v2 = vld [vmem:[%s3350_s27 + $0xc] ss:$16 sps:$4 sm:$0xff]   ;;  %v2885_v3 = vld [vmem:[%s3350_s27] ss:$16 sps:$4 sm:$0xff]   ;;  %v535_v39 = vlaneseq }
  0x18   : > { %1868 = vmatprep.subr.bf16.mxu0 %v2881_v1  ;;  %v2886_v4 = vld [vmem:[%s3350_s27 + $0x8] ss:$16 sps:$4 sm:$0xff]   ;;  %2032 = vmatprep.subr.bf16.mxu1 %v2883_v2  ;;  %v2887_v5 = vld [vmem:[%s3350_s27 + $0x24] ss:$16 sps:$4 sm:$0xff]   ;;  %v2889_v6 = vld [vmem:[%s3350_s27 + $0x2c] ss:$16 sps:$4 sm:$0xff]  }
  0x19   : > { %1869 = vmatpush1.bf16.msra.mxu0 %v2885_v3  ;;  %2033 = vmatpush1.bf16.msra.mxu1 %v2886_v4  ;;  %v2891_v7 = vld [vmem:[%s3350_s27 + $0x20] ss:$16 sps:$4 sm:$0xff]   ;;  %v2892_v8 = vld [vmem:[%s3350_s27 + $0x28] ss:$16 sps:$4 sm:$0xff]   ;;  %v2893_v9 = vld [vmem:[%s3350_s27 + $0x44] ss:$16 sps:$4 sm:$0xff]  }
  0x1a   : > { %1870 = vmatprep.subr.bf16.mxu0 %v2887_v5  ;;  %2034 = vmatprep.subr.bf16.mxu1 %v2889_v6  ;;  %v2895_v10 = vld [vmem:[%s3350_s27 + $0x4c] ss:$16 sps:$4 sm:$0xff]   ;;  %v2897_v11 = vld [vmem:[%s3350_s27 + $0x40] ss:$16 sps:$4 sm:$0xff]   ;;  %v2898_v12 = vld [vmem:[%s3350_s27 + $0x48] ss:$16 sps:$4 sm:$0xff]  }
  0x1b   : > { %v2899_v13 = vld [vmem:[%s3350_s27 + $0x64] ss:$16 sps:$4 sm:$0xff]   ;;  %v2901_v14 = vld [vmem:[%s3350_s27 + $0x6c] ss:$16 sps:$4 sm:$0xff]   ;;  %v2903_v15 = vld [vmem:[%s3350_s27 + $0x60] ss:$16 sps:$4 sm:$0xff]  }
  0x1c   : > { %v2904_v16 = vld [vmem:[%s3350_s27 + $0x68] ss:$16 sps:$4 sm:$0xff]   ;;  %v2905_v17 = vld [vmem:[%s3350_s27 + $0x84] ss:$16 sps:$4 sm:$0xff]   ;;  %v2907_v18 = vld [vmem:[%s3350_s27 + $0x8c] ss:$16 sps:$4 sm:$0xff]  }
  0x1d   : > { %1871 = vmatpush1.bf16.msra.mxu0 %v2891_v7  ;;  %2035 = vmatpush1.bf16.msra.mxu1 %v2892_v8  ;;  %v2909_v19 = vld [vmem:[%s3350_s27 + $0x80] ss:$16 sps:$4 sm:$0xff]   ;;  %v2910_v20 = vld [vmem:[%s3350_s27 + $0x88] ss:$16 sps:$4 sm:$0xff]   ;;  %v2911_v21 = vld [vmem:[%s3350_s27 + $0xa4] ss:$16 sps:$4 sm:$0xff]  }
  0x1e   : > { %1872 = vmatprep.subr.bf16.mxu0 %v2893_v9  ;;  %2036 = vmatprep.subr.bf16.mxu1 %v2895_v10  ;;  %v2913_v22 = vld [vmem:[%s3350_s27 + $0xac] ss:$16 sps:$4 sm:$0xff]   ;;  %v2915_v23 = vld [vmem:[%s3350_s27 + $0xa0] ss:$16 sps:$4 sm:$0xff]   ;;  %v2916_v24 = vld [vmem:[%s3350_s27 + $0xa8] ss:$16 sps:$4 sm:$0xff]  }
  0x1f   : > { %v2917_v25 = vld [vmem:[%s3350_s27 + $0xc4] ss:$16 sps:$4 sm:$0xff]   ;;  %v2919_v26 = vld [vmem:[%s3350_s27 + $0xcc] ss:$16 sps:$4 sm:$0xff]   ;;  %v2921_v27 = vld [vmem:[%s3350_s27 + $0xc0] ss:$16 sps:$4 sm:$0xff]  }
  0x20   : > { %v2922_v28 = vld [vmem:[%s3350_s27 + $0xc8] ss:$16 sps:$4 sm:$0xff]   ;;  %v2923_v29 = vld [vmem:[%s3350_s27 + $0xe4] ss:$16 sps:$4 sm:$0xff]   ;;  %v2925_v30 = vld [vmem:[%s3350_s27 + $0xec] ss:$16 sps:$4 sm:$0xff]  }
  0x21   : > { %1873 = vmatpush1.bf16.msra.mxu0 %v2897_v11  ;;  %2037 = vmatpush1.bf16.msra.mxu1 %v2898_v12  ;;  %v2927_v31 = vld [vmem:[%s3350_s27 + $0xe0] ss:$16 sps:$4 sm:$0xff]   ;;  %v2928_v32 = vld [vmem:[%s3350_s27 + $0xe8] ss:$16 sps:$4 sm:$0xff]   ;;  %v2929_v33 = vld [vmem:[%s3350_s27 + $0x104] ss:$16 sps:$4 sm:$0xff]  }
  0x22   : > { %1874 = vmatprep.subr.bf16.mxu0 %v2899_v13  ;;  %2038 = vmatprep.subr.bf16.mxu1 %v2901_v14  ;;  %v2931_v34 = vld [vmem:[%s3350_s27 + $0x10c] ss:$16 sps:$4 sm:$0xff]   ;;  %v2933_v35 = vld [vmem:[%s3350_s27 + $0x100] ss:$16 sps:$4 sm:$0xff]   ;;  %v2934_v36 = vld [vmem:[%s3350_s27 + $0x108] ss:$16 sps:$4 sm:$0xff]  }
  0x23   : > { %v3292_v37 = vmov 1966171168   ;;  %v2935_v40 = vld [vmem:[%s3350_s27 + $0x124] ss:$16 sps:$4 sm:$0xff]   ;;  %v2937_v41 = vld [vmem:[%s3350_s27 + $0x12c] ss:$16 sps:$4 sm:$0xff]  }
  0x24   : > { %v533_v38 = vunpack.c.l.s4 %v3292_v37  ;;  %v2939_v42 = vld [vmem:[%s3350_s27 + $0x120] ss:$16 sps:$4 sm:$0xff]   ;;  %v3393_v44 = vshrl.u32 %v535_v39, 7  ;;  %v2940_v45 = vld [vmem:[%s3350_s27 + $0x128] ss:$16 sps:$4 sm:$0xff]   ;;  %p2820_p7 = scmp.ne.s32.totalorder %s3281_s15, 3 }
  0x25   : > { %1875 = vmatpush1.bf16.msra.mxu0 %v2903_v15  ;;  %2039 = vmatpush1.bf16.msra.mxu1 %v2904_v16  ;;  %v2941_v46 = vld [vmem:[%s3350_s27 + $0x144] ss:$16 sps:$4 sm:$0xff]   ;;  %v2943_v47 = vld [vmem:[%s3350_s27 + $0x14c] ss:$16 sps:$4 sm:$0xff]   ;;  %v2945_v48 = vld [vmem:[%s3350_s27 + $0x140] ss:$16 sps:$4 sm:$0xff]  }
  0x26   : > { %1876 = vmatprep.subr.bf16.mxu0 %v2905_v17  ;;  %2040 = vmatprep.subr.bf16.mxu1 %v2907_v18  ;;  %v534_v43 = vunpack.c.0.s8 %v533_v38  ;;  %v2946_v49 = vld [vmem:[%s3350_s27 + $0x148] ss:$16 sps:$4 sm:$0xff]   ;;  %v2947_v51 = vld [vmem:[%s3350_s27 + $0x164] ss:$16 sps:$4 sm:$0xff]   ;;  %v2949_v52 = vld [vmem:[%s3350_s27 + $0x16c] ss:$16 sps:$4 sm:$0xff]  }
  0x27   : > { %v273_v53 = vld [vmem:[%s246_s23] sm:$0xff]  ;;  %v2952_v56 = vld [vmem:[%s3350_s27 + $0x168] ss:$16 sps:$4 sm:$0xff]   ;;  %v2955_v58 = vld [vmem:[%s3350_s27 + $0x18c] ss:$16 sps:$4 sm:$0xff]   ;;  %vm2281_vm0 = vcmask (!%p2820_p7), 1041408  }
  0x28   : > { %v3401_v50 = vsub.s32 %v534_v43, %v3393_v44  ;;  %v2951_v54 = vld [vmem:[%s3350_s27 + $0x160] ss:$16 sps:$4 sm:$0xff]   ;;  %v2953_v57 = vld [vmem:[%s3350_s27 + $0x184] ss:$16 sps:$4 sm:$0xff]   ;;  %v2958_v62 = vld [vmem:[%s3350_s27 + $0x188] ss:$16 sps:$4 sm:$0xff]   ;;  %v531_v10 = vcombine.high %v273_v53, %v273_v53 }
  0x29   : > { %1877 = vmatpush1.bf16.msra.mxu0 %v2909_v19  ;;  %2041 = vmatpush1.bf16.msra.mxu1 %v2910_v20  ;;  %v2957_v60 = vld [vmem:[%s3350_s27 + $0x180] ss:$16 sps:$4 sm:$0xff]   ;;  %v2959_v63 = vld [vmem:[%s3350_s27 + $0x1a4] ss:$16 sps:$4 sm:$0xff]   ;;  %v2961_v0 = vld [vmem:[%s3350_s27 + $0x1ac] ss:$16 sps:$4 sm:$0xff]  }
  0x2a   : > { %1878 = vmatprep.subr.bf16.mxu0 %v2911_v21  ;;  %2042 = vmatprep.subr.bf16.mxu1 %v2913_v22  ;;  %v538_v55 = vrot.slane %v273_v53, %v3401_v50  ;;  %v2963_v1 = vld [vmem:[%s3350_s27 + $0x1a0] ss:$16 sps:$4 sm:$0xff]   ;;  %v2964_v2 = vld [vmem:[%s3350_s27 + $0x1a8] ss:$16 sps:$4 sm:$0xff]   ;;  %v2965_v3 = vld [vmem:[%s3350_s27 + $0x1c4] ss:$16 sps:$4 sm:$0xff]   ;;  %v545_v14 = vrot.slane %v531_v10, %v3401_v50 }
  0x2b   : > { %v2967_v4 = vld [vmem:[%s3350_s27 + $0x1cc] ss:$16 sps:$4 sm:$0xff]   ;;  %v2969_v5 = vld [vmem:[%s3350_s27 + $0x1c0] ss:$16 sps:$4 sm:$0xff]   ;;  %v2970_v6 = vld [vmem:[%s3350_s27 + $0x1c8] ss:$16 sps:$4 sm:$0xff]  }
  0x2c   : > { %v546_v59 = vcombine.high %v538_v55, %v538_v55  ;;  %v2971_v7 = vld [vmem:[%s3350_s27 + $0x1e4] ss:$16 sps:$4 sm:$0xff]   ;;  %v2973_v8 = vld [vmem:[%s3350_s27 + $0x1ec] ss:$16 sps:$4 sm:$0xff]   ;;  %v2975_v9 = vld [vmem:[%s3350_s27 + $0x1e0] ss:$16 sps:$4 sm:$0xff]   ;;  %v3435_v16 = vrot.slane %v538_v55, %v3401_v50  ;;  %v547_v17 = vcombine.high %v545_v14, %v545_v14  ;;  %v3444_v22 = vrot.slane %v545_v14, %v3401_v50 }
  0x2d   : > { %1879 = vmatpush1.bf16.msra.mxu0 %v2915_v23  ;;  %2043 = vmatpush1.bf16.msra.mxu1 %v2916_v24  ;;  %v2976_v11 = vld [vmem:[%s3350_s27 + $0x1e8] ss:$16 sps:$4 sm:$0xff]   ;;  %v2979_v12 = vld [vmem:[%s3350_s27 + $0x204] ss:$16 sps:$4 sm:$0xff]   ;;  %v2982_v13 = vld [vmem:[%s3350_s27 + $0x20c] ss:$16 sps:$4 sm:$0xff]  }
  0x2e   : > { %1880 = vmatprep.subr.bf16.mxu0 %v2917_v25  ;;  %2044 = vmatprep.subr.bf16.mxu1 %v2919_v26  ;;  %v568_v61 = vrot.slane %v546_v59, %v3401_v50  ;;  %v2977_v15 = vld [vmem:[%s3350_s27 + $0x200] ss:$16 sps:$4 sm:$0xff]   ;;  %v2980_v18 = vld [vmem:[%s3350_s27 + $0x208] ss:$16 sps:$4 sm:$0xff]   ;;  %v2985_v19 = vld [vmem:[%s3350_s27 + $0x224] ss:$16 sps:$4 sm:$0xff]   ;;  %v3441_v21 = vrot.slane %v547_v17, %v3401_v50 }
  0x2f   : > { %v2988_v20 = vld [vmem:[%s3350_s27 + $0x22c] ss:$16 sps:$4 sm:$0xff]   ;;  %v2983_v24 = vld [vmem:[%s3350_s27 + $0x220] ss:$16 sps:$4 sm:$0xff]   ;;  %v2986_v25 = vld [vmem:[%s3350_s27 + $0x228] ss:$16 sps:$4 sm:$0xff]  }
  0x30   : > { %1900 = vmatprep.mubr.bf16.mxu0 %v568_v61  ;;  %2064 = vmatprep.mubr.bf16.mxu1 %v568_v61  ;;  %v578_v23 = vcombine.high %v568_v61, %v568_v61  ;;  %v2991_v26 = vld [vmem:[%s3350_s27 + $0x244] ss:$16 sps:$4 sm:$0xff]   ;;  %v3004_v37 = vld [vmem:[%s3350_s27 + $0x288] ss:$16 sps:$4 sm:$0xff]   ;;  %v3025_v55 = vld [vmem:[%s3350_s27 + $0x300] ss:$16 sps:$4 sm:$0xff]  }
  0x31   : > { %1881 = vmatpush1.bf16.msra.mxu0 %v2921_v27  ;;  %2045 = vmatpush1.bf16.msra.mxu1 %v2922_v28  ;;  %v2994_v27 = vld [vmem:[%s3350_s27 + $0x24c] ss:$16 sps:$4 sm:$0xff]   ;;  %v2989_v28 = vld [vmem:[%s3350_s27 + $0x240] ss:$16 sps:$4 sm:$0xff]   ;;  %v3009_v38 = vld [vmem:[%s3350_s27 + $0x2a4] ss:$16 sps:$4 sm:$0xff]  }
  0x32   : > { %1882 = vmatprep.subr.bf16.mxu0 %v2923_v29  ;;  %2046 = vmatprep.subr.bf16.mxu1 %v2925_v30  ;;  %v2992_v29 = vld [vmem:[%s3350_s27 + $0x248] ss:$16 sps:$4 sm:$0xff]   ;;  %v2997_v30 = vld [vmem:[%s3350_s27 + $0x264] ss:$16 sps:$4 sm:$0xff]   ;;  %v3031_v59 = vld [vmem:[%s3350_s27 + $0x320] ss:$16 sps:$4 sm:$0xff]  }
  0x33   : > { %v3015_v43 = vld [vmem:[%s3350_s27 + $0x2c4] ss:$16 sps:$4 sm:$0xff]   ;;  %v3060_v10 = vld [vmem:[%s3350_s27 + $0x3ac] ss:$16 sps:$4 sm:$0xff]   ;;  %v3064_v17 = vld [vmem:[%s3350_s27 + $0x3c8] ss:$16 sps:$4 sm:$0xff]  }
  0x34   : > { %v3027_v53 = vld [vmem:[%s3350_s27 + $0x304] ss:$16 sps:$4 sm:$0xff]   ;;  %v3066_v14 = vld [vmem:[%s3350_s27 + $0x3cc] ss:$16 sps:$4 sm:$0xff]   ;;  %vm2341_vm1 = vcmp.lt.s32.totalorder (!%p2820_p7), %v535_v39, 512 }
  0x35   : > { %1883 = vmatpush1.bf16.msra.mxu0 %v2927_v31  ;;  %2047 = vmatpush1.bf16.msra.mxu1 %v2928_v32  ;;  %v3000_v31 = vld [vmem:[%s3350_s27 + $0x26c] ss:$16 sps:$4 sm:$0xff]   ;;  %v2995_v32 = vld [vmem:[%s3350_s27 + $0x260] ss:$16 sps:$4 sm:$0xff]   ;;  %v3039_v61 = vld [vmem:[%s3350_s27 + $0x344] ss:$16 sps:$4 sm:$0xff]  }
  0x36   : > { %1884 = vmatprep.subr.bf16.mxu0 %v2929_v33  ;;  %2048 = vmatprep.subr.bf16.mxu1 %v2931_v34  ;;  %v2998_v33 = vld [vmem:[%s3350_s27 + $0x268] ss:$16 sps:$4 sm:$0xff]   ;;  %v3003_v34 = vld [vmem:[%s3350_s27 + $0x284] ss:$16 sps:$4 sm:$0xff]  }
  0x39   : > { %1885 = vmatpush1.bf16.msra.mxu0 %v2933_v35  ;;  %2049 = vmatpush1.bf16.msra.mxu1 %v2934_v36  ;;  %v3006_v35 = vld [vmem:[%s3350_s27 + $0x28c] ss:$16 sps:$4 sm:$0xff]   ;;  %v3001_v36 = vld [vmem:[%s3350_s27 + $0x280] ss:$16 sps:$4 sm:$0xff]  }
  0x3a   : > { %1886 = vmatprep.subr.bf16.mxu0 %v2935_v40  ;;  %2050 = vmatprep.subr.bf16.mxu1 %v2937_v41  ;;  %v3012_v40 = vld [vmem:[%s3350_s27 + $0x2ac] ss:$16 sps:$4 sm:$0xff]   ;;  %v3007_v41 = vld [vmem:[%s3350_s27 + $0x2a0] ss:$16 sps:$4 sm:$0xff]  }
  0x3d   : > { %1887 = vmatpush1.bf16.msra.mxu0 %v2939_v42  ;;  %2051 = vmatpush1.bf16.msra.mxu1 %v2940_v45  ;;  %v3010_v42 = vld [vmem:[%s3350_s27 + $0x2a8] ss:$16 sps:$4 sm:$0xff]   ;;  %v3018_v45 = vld [vmem:[%s3350_s27 + $0x2cc] ss:$16 sps:$4 sm:$0xff]  }
  0x3e   : > { %1888 = vmatprep.subr.bf16.mxu0 %v2941_v46  ;;  %2052 = vmatprep.subr.bf16.mxu1 %v2943_v47  ;;  %v3013_v46 = vld [vmem:[%s3350_s27 + $0x2c0] ss:$16 sps:$4 sm:$0xff]   ;;  %v3016_v47 = vld [vmem:[%s3350_s27 + $0x2c8] ss:$16 sps:$4 sm:$0xff]  }
  0x41   : > { %1889 = vmatpush1.bf16.msra.mxu0 %v2945_v48  ;;  %2053 = vmatpush1.bf16.msra.mxu1 %v2946_v49  ;;  %v3021_v48 = vld [vmem:[%s3350_s27 + $0x2e4] ss:$16 sps:$4 sm:$0xff]   ;;  %v3024_v49 = vld [vmem:[%s3350_s27 + $0x2ec] ss:$16 sps:$4 sm:$0xff]  }
  0x42   : > { %1890 = vmatprep.subr.bf16.mxu0 %v2947_v51  ;;  %2054 = vmatprep.subr.bf16.mxu1 %v2949_v52  ;;  %v3019_v51 = vld [vmem:[%s3350_s27 + $0x2e0] ss:$16 sps:$4 sm:$0xff]   ;;  %v3022_v52 = vld [vmem:[%s3350_s27 + $0x2e8] ss:$16 sps:$4 sm:$0xff]  }
  0x45   : > { %1891 = vmatpush1.bf16.msra.mxu0 %v2951_v54  ;;  %2055 = vmatpush1.bf16.msra.mxu1 %v2952_v56  ;;  %v3030_v54 = vld [vmem:[%s3350_s27 + $0x30c] ss:$16 sps:$4 sm:$0xff]   ;;  %v3028_v56 = vld [vmem:[%s3350_s27 + $0x308] ss:$16 sps:$4 sm:$0xff]  }
  0x46   : > { %1892 = vmatprep.subr.bf16.mxu0 %v2953_v57  ;;  %2056 = vmatprep.subr.bf16.mxu1 %v2955_v58  ;;  %v3033_v57 = vld [vmem:[%s3350_s27 + $0x324] ss:$16 sps:$4 sm:$0xff]   ;;  %v3036_v58 = vld [vmem:[%s3350_s27 + $0x32c] ss:$16 sps:$4 sm:$0xff]  }
  0x49   : > { %1893 = vmatpush1.bf16.msra.mxu0 %v2957_v60  ;;  %2057 = vmatpush1.bf16.msra.mxu1 %v2958_v62  ;;  %v3034_v60 = vld [vmem:[%s3350_s27 + $0x328] ss:$16 sps:$4 sm:$0xff]   ;;  %v3042_v62 = vld [vmem:[%s3350_s27 + $0x34c] ss:$16 sps:$4 sm:$0xff]  }
  0x4a   : > { %1894 = vmatprep.subr.bf16.mxu0 %v2959_v63  ;;  %2058 = vmatprep.subr.bf16.mxu1 %v2961_v0  ;;  %v3037_v63 = vld [vmem:[%s3350_s27 + $0x340] ss:$16 sps:$4 sm:$0xff]   ;;  %v3040_v0 = vld [vmem:[%s3350_s27 + $0x348] ss:$16 sps:$4 sm:$0xff]  }
  0x4d   : > { %1895 = vmatpush1.bf16.msra.mxu0 %v2963_v1  ;;  %2059 = vmatpush1.bf16.msra.mxu1 %v2964_v2  ;;  %v3045_v1 = vld [vmem:[%s3350_s27 + $0x364] ss:$16 sps:$4 sm:$0xff]   ;;  %v3048_v2 = vld [vmem:[%s3350_s27 + $0x36c] ss:$16 sps:$4 sm:$0xff]  }
  0x4e   : > { %1896 = vmatprep.subr.bf16.mxu0 %v2965_v3  ;;  %2060 = vmatprep.subr.bf16.mxu1 %v2967_v4  ;;  %v3043_v3 = vld [vmem:[%s3350_s27 + $0x360] ss:$16 sps:$4 sm:$0xff]   ;;  %v3046_v4 = vld [vmem:[%s3350_s27 + $0x368] ss:$16 sps:$4 sm:$0xff]  }
  0x51   : > { %1897 = vmatpush1.bf16.msra.mxu0 %v2969_v5  ;;  %2061 = vmatpush1.bf16.msra.mxu1 %v2970_v6  ;;  %v3051_v5 = vld [vmem:[%s3350_s27 + $0x384] ss:$16 sps:$4 sm:$0xff]   ;;  %v3054_v6 = vld [vmem:[%s3350_s27 + $0x38c] ss:$16 sps:$4 sm:$0xff]  }
  0x52   : > { %1898 = vmatprep.subr.bf16.mxu0 %v2971_v7  ;;  %2062 = vmatprep.subr.bf16.mxu1 %v2973_v8  ;;  %v3049_v7 = vld [vmem:[%s3350_s27 + $0x380] ss:$16 sps:$4 sm:$0xff]   ;;  %v3052_v8 = vld [vmem:[%s3350_s27 + $0x388] ss:$16 sps:$4 sm:$0xff]  }
  0x55   : > { %1899 = vmatpush1.bf16.msra.mxu0 %v2975_v9  ;;  %2063 = vmatpush1.bf16.msra.mxu1 %v2976_v11  ;;  %v3057_v9 = vld [vmem:[%s3350_s27 + $0x3a4] ss:$16 sps:$4 sm:$0xff]   ;;  %v3055_v11 = vld [vmem:[%s3350_s27 + $0x3a0] ss:$16 sps:$4 sm:$0xff]  }
  0x56   : > { %1909 = vmatprep.subr.bf16.mxu0 %v2979_v12  ;;  %2073 = vmatprep.subr.bf16.mxu1 %v2982_v13  ;;  %v3058_v12 = vld [vmem:[%s3350_s27 + $0x3a8] ss:$16 sps:$4 sm:$0xff]   ;;  %v3063_v13 = vld [vmem:[%s3350_s27 + $0x3c4] ss:$16 sps:$4 sm:$0xff]  }
  0x58   : > { %1901 = vmatmul.mubr.bf16.vlgmr.msra.gmra.mrb[0].mxu0 %v3435_v16  ;;  %2065 = vmatmul.mubr.bf16.vlgmr.msra.gmra.mrb[0].mxu1 %v3435_v16 }
  0x59   : > { %1910 = vmatpush1.bf16.msra.mxu0 %v2977_v15  ;;  %2074 = vmatpush1.bf16.msra.mxu1 %v2980_v18  ;;  %v3061_v15 = vld [vmem:[%s3350_s27 + $0x3c0] ss:$16 sps:$4 sm:$0xff]   ;;  %v3069_v18 = vld [vmem:[%s3350_s27 + $0x3e4] ss:$16 sps:$4 sm:$0xff]  }
  0x5a   : > { %1911 = vmatprep.subr.bf16.mxu0 %v2985_v19  ;;  %2075 = vmatprep.subr.bf16.mxu1 %v2988_v20  ;;  %v3072_v19 = vld [vmem:[%s3350_s27 + $0x3ec] ss:$16 sps:$4 sm:$0xff]   ;;  %v3067_v20 = vld [vmem:[%s3350_s27 + $0x3e0] ss:$16 sps:$4 sm:$0xff]  }
  0x5b   : > { %1941 = vmatprep.mubr.bf16.mxu0 %v578_v23  ;;  %2105 = vmatprep.mubr.bf16.mxu1 %v578_v23  ;;  %v3070_v23 = vld [vmem:[%s3350_s27 + $0x3e8] ss:$16 sps:$4 sm:$0xff]  }
  0x5d   : > { %1912 = vmatpush1.bf16.msra.mxu0 %v2983_v24  ;;  %2076 = vmatpush1.bf16.msra.mxu1 %v2986_v25  ;;  %v3075_v24 = vld [vmem:[%s3350_s27 + $0x404] ss:$16 sps:$4 sm:$0xff]   ;;  %v3078_v25 = vld [vmem:[%s3350_s27 + $0x40c] ss:$16 sps:$4 sm:$0xff]  }
  0x5e   : > { %1913 = vmatprep.subr.bf16.mxu0 %v2991_v26  ;;  %2077 = vmatprep.subr.bf16.mxu1 %v2994_v27  ;;  %v3073_v26 = vld [vmem:[%s3350_s27 + $0x400] ss:$16 sps:$4 sm:$0xff]   ;;  %v576_v27 = vcombine.high %v3435_v16, %v3435_v16  ;;  %v3082_v16 = vld [vmem:[%s3350_s27 + $0x428] ss:$16 sps:$4 sm:$0xff]  }
  0x61   : > { %1914 = vmatpush1.bf16.msra.mxu0 %v2989_v28  ;;  %2078 = vmatpush1.bf16.msra.mxu1 %v2992_v29  ;;  %v3076_v28 = vld [vmem:[%s3350_s27 + $0x408] ss:$16 sps:$4 sm:$0xff]   ;;  %v3081_v29 = vld [vmem:[%s3350_s27 + $0x424] ss:$16 sps:$4 sm:$0xff]  }
  0x62   : > { %1915 = vmatprep.subr.bf16.mxu0 %v2997_v30  ;;  %2079 = vmatprep.subr.bf16.mxu1 %v3000_v31  ;;  %v3084_v30 = vld [vmem:[%s3350_s27 + $0x42c] ss:$16 sps:$4 sm:$0xff]   ;;  %v3079_v31 = vld [vmem:[%s3350_s27 + $0x420] ss:$16 sps:$4 sm:$0xff]  }
  0x65   : > { %1916 = vmatpush1.bf16.msra.mxu0 %v2995_v32  ;;  %2080 = vmatpush1.bf16.msra.mxu1 %v2998_v33  ;;  %v3087_v32 = vld [vmem:[%s3350_s27 + $0x444] ss:$16 sps:$4 sm:$0xff]   ;;  %v3090_v33 = vld [vmem:[%s3350_s27 + $0x44c] ss:$16 sps:$4 sm:$0xff]  }
  0x66   : > { %1917 = vmatprep.subr.bf16.mxu0 %v3003_v34  ;;  %2081 = vmatprep.subr.bf16.mxu1 %v3006_v35  ;;  %v3085_v34 = vld [vmem:[%s3350_s27 + $0x440] ss:$16 sps:$4 sm:$0xff]   ;;  %v3088_v35 = vld [vmem:[%s3350_s27 + $0x448] ss:$16 sps:$4 sm:$0xff]  }
  0x69   : > { %1918 = vmatpush1.bf16.msra.mxu0 %v3001_v36  ;;  %2082 = vmatpush1.bf16.msra.mxu1 %v3004_v37  ;;  %v3093_v36 = vld [vmem:[%s3350_s27 + $0x464] ss:$16 sps:$4 sm:$0xff]   ;;  %v3096_v37 = vld [vmem:[%s3350_s27 + $0x46c] ss:$16 sps:$4 sm:$0xff]  }
  0x6a   : > { %1919 = vmatprep.subr.bf16.mxu0 %v3009_v38  ;;  %2083 = vmatprep.subr.bf16.mxu1 %v3012_v40  ;;  %v3091_v38 = vld [vmem:[%s3350_s27 + $0x460] ss:$16 sps:$4 sm:$0xff]   ;;  %v3094_v40 = vld [vmem:[%s3350_s27 + $0x468] ss:$16 sps:$4 sm:$0xff]  }
  0x6d   : > { %1920 = vmatpush1.bf16.msra.mxu0 %v3007_v41  ;;  %2084 = vmatpush1.bf16.msra.mxu1 %v3010_v42  ;;  %v3099_v41 = vld [vmem:[%s3350_s27 + $0x484] ss:$16 sps:$4 sm:$0xff]   ;;  %v3102_v42 = vld [vmem:[%s3350_s27 + $0x48c] ss:$16 sps:$4 sm:$0xff]  }
  0x6e   : > { %1921 = vmatprep.subr.bf16.mxu0 %v3015_v43  ;;  %2085 = vmatprep.subr.bf16.mxu1 %v3018_v45  ;;  %v3097_v43 = vld [vmem:[%s3350_s27 + $0x480] ss:$16 sps:$4 sm:$0xff]   ;;  %v3100_v45 = vld [vmem:[%s3350_s27 + $0x488] ss:$16 sps:$4 sm:$0xff]  }
  0x71   : > { %1922 = vmatpush1.bf16.msra.mxu0 %v3013_v46  ;;  %2086 = vmatpush1.bf16.msra.mxu1 %v3016_v47  ;;  %v3105_v46 = vld [vmem:[%s3350_s27 + $0x4a4] ss:$16 sps:$4 sm:$0xff]   ;;  %v3108_v47 = vld [vmem:[%s3350_s27 + $0x4ac] ss:$16 sps:$4 sm:$0xff]  }
  0x72   : > { %1923 = vmatprep.subr.bf16.mxu0 %v3021_v48  ;;  %2087 = vmatprep.subr.bf16.mxu1 %v3024_v49  ;;  %v3103_v48 = vld [vmem:[%s3350_s27 + $0x4a0] ss:$16 sps:$4 sm:$0xff]   ;;  %v3106_v49 = vld [vmem:[%s3350_s27 + $0x4a8] ss:$16 sps:$4 sm:$0xff]  }
  0x75   : > { %1924 = vmatpush1.bf16.msra.mxu0 %v3019_v51  ;;  %2088 = vmatpush1.bf16.msra.mxu1 %v3022_v52  ;;  %v3111_v51 = vld [vmem:[%s3350_s27 + $0x4c4] ss:$16 sps:$4 sm:$0xff]   ;;  %v3114_v52 = vld [vmem:[%s3350_s27 + $0x4cc] ss:$16 sps:$4 sm:$0xff]  }
  0x76   : > { %1925 = vmatprep.subr.bf16.mxu0 %v3027_v53  ;;  %2089 = vmatprep.subr.bf16.mxu1 %v3030_v54  ;;  %v3109_v53 = vld [vmem:[%s3350_s27 + $0x4c0] ss:$16 sps:$4 sm:$0xff]   ;;  %v3112_v54 = vld [vmem:[%s3350_s27 + $0x4c8] ss:$16 sps:$4 sm:$0xff]  }
  0x79   : > { %1926 = vmatpush1.bf16.msra.mxu0 %v3025_v55  ;;  %2090 = vmatpush1.bf16.msra.mxu1 %v3028_v56  ;;  %v3117_v55 = vld [vmem:[%s3350_s27 + $0x4e4] ss:$16 sps:$4 sm:$0xff]   ;;  %v3120_v56 = vld [vmem:[%s3350_s27 + $0x4ec] ss:$16 sps:$4 sm:$0xff]  }
  0x7a   : > { %1927 = vmatprep.subr.bf16.mxu0 %v3033_v57  ;;  %2091 = vmatprep.subr.bf16.mxu1 %v3036_v58  ;;  %v3115_v57 = vld [vmem:[%s3350_s27 + $0x4e0] ss:$16 sps:$4 sm:$0xff]   ;;  %v3118_v58 = vld [vmem:[%s3350_s27 + $0x4e8] ss:$16 sps:$4 sm:$0xff]  }
  0x7d   : > { %1928 = vmatpush1.bf16.msra.mxu0 %v3031_v59  ;;  %2092 = vmatpush1.bf16.msra.mxu1 %v3034_v60  ;;  %v3123_v59 = vld [vmem:[%s3350_s27 + $0x504] ss:$16 sps:$4 sm:$0xff]   ;;  %v3126_v60 = vld [vmem:[%s3350_s27 + $0x50c] ss:$16 sps:$4 sm:$0xff]  }
  0x7e   : > { %1929 = vmatprep.subr.bf16.mxu0 %v3039_v61  ;;  %2093 = vmatprep.subr.bf16.mxu1 %v3042_v62  ;;  %v3121_v61 = vld [vmem:[%s3350_s27 + $0x500] ss:$16 sps:$4 sm:$0xff]   ;;  %v3124_v62 = vld [vmem:[%s3350_s27 + $0x508] ss:$16 sps:$4 sm:$0xff]  }
  0x81   : > { %1930 = vmatpush1.bf16.msra.mxu0 %v3037_v63  ;;  %2094 = vmatpush1.bf16.msra.mxu1 %v3040_v0  ;;  %v3129_v63 = vld [vmem:[%s3350_s27 + $0x524] ss:$16 sps:$4 sm:$0xff]   ;;  %v3132_v0 = vld [vmem:[%s3350_s27 + $0x52c] ss:$16 sps:$4 sm:$0xff]  }
  0x82   : > { %1931 = vmatprep.subr.bf16.mxu0 %v3045_v1  ;;  %2095 = vmatprep.subr.bf16.mxu1 %v3048_v2  ;;  %v3127_v1 = vld [vmem:[%s3350_s27 + $0x520] ss:$16 sps:$4 sm:$0xff]   ;;  %v3130_v2 = vld [vmem:[%s3350_s27 + $0x528] ss:$16 sps:$4 sm:$0xff]  }
  0x85   : > { %1932 = vmatpush1.bf16.msra.mxu0 %v3043_v3  ;;  %2096 = vmatpush1.bf16.msra.mxu1 %v3046_v4  ;;  %v3135_v3 = vld [vmem:[%s3350_s27 + $0x544] ss:$16 sps:$4 sm:$0xff]   ;;  %v3138_v4 = vld [vmem:[%s3350_s27 + $0x54c] ss:$16 sps:$4 sm:$0xff]  }
  0x86   : > { %1933 = vmatprep.subr.bf16.mxu0 %v3051_v5  ;;  %2097 = vmatprep.subr.bf16.mxu1 %v3054_v6  ;;  %v3133_v5 = vld [vmem:[%s3350_s27 + $0x540] ss:$16 sps:$4 sm:$0xff]   ;;  %v3136_v6 = vld [vmem:[%s3350_s27 + $0x548] ss:$16 sps:$4 sm:$0xff]  }
  0x89   : > { %1934 = vmatpush1.bf16.msra.mxu0 %v3049_v7  ;;  %2098 = vmatpush1.bf16.msra.mxu1 %v3052_v8  ;;  %v3141_v7 = vld [vmem:[%s3350_s27 + $0x564] ss:$16 sps:$4 sm:$0xff]   ;;  %v3144_v8 = vld [vmem:[%s3350_s27 + $0x56c] ss:$16 sps:$4 sm:$0xff]  }
  0x8a   : > { %1935 = vmatprep.subr.bf16.mxu0 %v3057_v9  ;;  %2099 = vmatprep.subr.bf16.mxu1 %v3060_v10  ;;  %v3139_v9 = vld [vmem:[%s3350_s27 + $0x560] ss:$16 sps:$4 sm:$0xff]   ;;  %v3142_v10 = vld [vmem:[%s3350_s27 + $0x568] ss:$16 sps:$4 sm:$0xff]  }
  0x8d   : > { %1936 = vmatpush1.bf16.msra.mxu0 %v3055_v11  ;;  %2100 = vmatpush1.bf16.msra.mxu1 %v3058_v12  ;;  %v3147_v11 = vld [vmem:[%s3350_s27 + $0x584] ss:$16 sps:$4 sm:$0xff]   ;;  %v3150_v12 = vld [vmem:[%s3350_s27 + $0x58c] ss:$16 sps:$4 sm:$0xff]  }
  0x8e   : > { %1937 = vmatprep.subr.bf16.mxu0 %v3063_v13  ;;  %2101 = vmatprep.subr.bf16.mxu1 %v3066_v14  ;;  %v3145_v13 = vld [vmem:[%s3350_s27 + $0x580] ss:$16 sps:$4 sm:$0xff]   ;;  %v3148_v14 = vld [vmem:[%s3350_s27 + $0x588] ss:$16 sps:$4 sm:$0xff]  }
  0x91   : > { %1938 = vmatpush1.bf16.msra.mxu0 %v3061_v15  ;;  %2102 = vmatpush1.bf16.msra.mxu1 %v3064_v17  ;;  %v3153_v15 = vld [vmem:[%s3350_s27 + $0x5a4] ss:$16 sps:$4 sm:$0xff]   ;;  %v3156_v17 = vld [vmem:[%s3350_s27 + $0x5ac] ss:$16 sps:$4 sm:$0xff]  }
  0x92   : > { %1939 = vmatprep.subr.bf16.mxu0 %v3069_v18  ;;  %2103 = vmatprep.subr.bf16.mxu1 %v3072_v19  ;;  %v3151_v18 = vld [vmem:[%s3350_s27 + $0x5a0] ss:$16 sps:$4 sm:$0xff]   ;;  %v3154_v19 = vld [vmem:[%s3350_s27 + $0x5a8] ss:$16 sps:$4 sm:$0xff]  }
  0x95   : > { %1940 = vmatpush1.bf16.msra.mxu0 %v3067_v20  ;;  %2104 = vmatpush1.bf16.msra.mxu1 %v3070_v23  ;;  %v3159_v20 = vld [vmem:[%s3350_s27 + $0x5c4] ss:$16 sps:$4 sm:$0xff]   ;;  %v3162_v23 = vld [vmem:[%s3350_s27 + $0x5cc] ss:$16 sps:$4 sm:$0xff]  }
  0x96   : > { %1950 = vmatprep.subr.bf16.mxu0 %v3075_v24  ;;  %2114 = vmatprep.subr.bf16.mxu1 %v3078_v25  ;;  %v3157_v24 = vld [vmem:[%s3350_s27 + $0x5c0] ss:$16 sps:$4 sm:$0xff]   ;;  %v3160_v25 = vld [vmem:[%s3350_s27 + $0x5c8] ss:$16 sps:$4 sm:$0xff]  }
  0x98   : > { %1942 = vmatmul.mubr.bf16.vlgmr.msra.gmra.mrb[0].mxu0 %v576_v27  ;;  %2106 = vmatmul.mubr.bf16.vlgmr.msra.gmra.mrb[0].mxu1 %v576_v27  ;;  %v3168_v27 = vld [vmem:[%s3350_s27 + $0x5ec] ss:$16 sps:$4 sm:$0xff]  }
  0x99   : > { %1951 = vmatpush1.bf16.msra.mxu0 %v3073_v26  ;;  %2115 = vmatpush1.bf16.msra.mxu1 %v3076_v28  ;;  %v3165_v26 = vld [vmem:[%s3350_s27 + $0x5e4] ss:$16 sps:$4 sm:$0xff]   ;;  %v3163_v28 = vld [vmem:[%s3350_s27 + $0x5e0] ss:$16 sps:$4 sm:$0xff]  }
  0x9a   : > { %1952 = vmatprep.subr.bf16.mxu0 %v3081_v29  ;;  %2116 = vmatprep.subr.bf16.mxu1 %v3084_v30  ;;  %v3166_v29 = vld [vmem:[%s3350_s27 + $0x5e8] ss:$16 sps:$4 sm:$0xff]   ;;  %v3172_v30 = vld [vmem:[%s3350_s27 + $0x604] ss:$16 sps:$4 sm:$0xff]  }
  0x9b   : > { %1982 = vmatprep.mubr.bf16.mxu0 %v3441_v21  ;;  %2146 = vmatprep.mubr.bf16.mxu1 %v3441_v21 }
  0x9d   : > { %1953 = vmatpush1.bf16.msra.mxu0 %v3079_v31  ;;  %2117 = vmatpush1.bf16.msra.mxu1 %v3082_v16  ;;  %v3175_v31 = vld [vmem:[%s3350_s27 + $0x60c] ss:$16 sps:$4 sm:$0xff]   ;;  %v3170_v16 = vld [vmem:[%s3350_s27 + $0x600] ss:$16 sps:$4 sm:$0xff]  }
  0x9e   : > { %1954 = vmatprep.subr.bf16.mxu0 %v3087_v32  ;;  %2118 = vmatprep.subr.bf16.mxu1 %v3090_v33  ;;  %v3173_v32 = vld [vmem:[%s3350_s27 + $0x608] ss:$16 sps:$4 sm:$0xff]   ;;  %v3178_v33 = vld [vmem:[%s3350_s27 + $0x624] ss:$16 sps:$4 sm:$0xff]  }
  0xa1   : > { %1955 = vmatpush1.bf16.msra.mxu0 %v3085_v34  ;;  %2119 = vmatpush1.bf16.msra.mxu1 %v3088_v35  ;;  %v3181_v34 = vld [vmem:[%s3350_s27 + $0x62c] ss:$16 sps:$4 sm:$0xff]   ;;  %v579_v35 = vcombine.high %v3441_v21, %v3441_v21  ;;  %v3182_v21 = vld [vmem:[%s3350_s27 + $0x640] ss:$16 sps:$4 sm:$0xff]  }
  0xa2   : > { %1956 = vmatprep.subr.bf16.mxu0 %v3093_v36  ;;  %2120 = vmatprep.subr.bf16.mxu1 %v3096_v37  ;;  %v3176_v36 = vld [vmem:[%s3350_s27 + $0x620] ss:$16 sps:$4 sm:$0xff]   ;;  %v3179_v37 = vld [vmem:[%s3350_s27 + $0x628] ss:$16 sps:$4 sm:$0xff]  }
  0xa5   : > { %1957 = vmatpush1.bf16.msra.mxu0 %v3091_v38  ;;  %2121 = vmatpush1.bf16.msra.mxu1 %v3094_v40  ;;  %v3184_v38 = vld [vmem:[%s3350_s27 + $0x644] ss:$16 sps:$4 sm:$0xff]   ;;  %v3187_v40 = vld [vmem:[%s3350_s27 + $0x64c] ss:$16 sps:$4 sm:$0xff]  }
  0xa6   : > { %1958 = vmatprep.subr.bf16.mxu0 %v3099_v41  ;;  %2122 = vmatprep.subr.bf16.mxu1 %v3102_v42  ;;  %v3185_v41 = vld [vmem:[%s3350_s27 + $0x648] ss:$16 sps:$4 sm:$0xff]   ;;  %v3190_v42 = vld [vmem:[%s3350_s27 + $0x664] ss:$16 sps:$4 sm:$0xff]  }
  0xa9   : > { %1959 = vmatpush1.bf16.msra.mxu0 %v3097_v43  ;;  %2123 = vmatpush1.bf16.msra.mxu1 %v3100_v45  ;;  %v3193_v43 = vld [vmem:[%s3350_s27 + $0x66c] ss:$16 sps:$4 sm:$0xff]   ;;  %v3188_v45 = vld [vmem:[%s3350_s27 + $0x660] ss:$16 sps:$4 sm:$0xff]  }
  0xaa   : > { %1960 = vmatprep.subr.bf16.mxu0 %v3105_v46  ;;  %2124 = vmatprep.subr.bf16.mxu1 %v3108_v47  ;;  %v3191_v46 = vld [vmem:[%s3350_s27 + $0x668] ss:$16 sps:$4 sm:$0xff]   ;;  %v3196_v47 = vld [vmem:[%s3350_s27 + $0x684] ss:$16 sps:$4 sm:$0xff]  }
  0xad   : > { %1961 = vmatpush1.bf16.msra.mxu0 %v3103_v48  ;;  %2125 = vmatpush1.bf16.msra.mxu1 %v3106_v49  ;;  %v3199_v48 = vld [vmem:[%s3350_s27 + $0x68c] ss:$16 sps:$4 sm:$0xff]   ;;  %v3194_v49 = vld [vmem:[%s3350_s27 + $0x680] ss:$16 sps:$4 sm:$0xff]  }
  0xae   : > { %1962 = vmatprep.subr.bf16.mxu0 %v3111_v51  ;;  %2126 = vmatprep.subr.bf16.mxu1 %v3114_v52  ;;  %v3197_v51 = vld [vmem:[%s3350_s27 + $0x688] ss:$16 sps:$4 sm:$0xff]   ;;  %v3202_v52 = vld [vmem:[%s3350_s27 + $0x6a4] ss:$16 sps:$4 sm:$0xff]  }
  0xb1   : > { %1963 = vmatpush1.bf16.msra.mxu0 %v3109_v53  ;;  %2127 = vmatpush1.bf16.msra.mxu1 %v3112_v54  ;;  %v3205_v53 = vld [vmem:[%s3350_s27 + $0x6ac] ss:$16 sps:$4 sm:$0xff]   ;;  %v3200_v54 = vld [vmem:[%s3350_s27 + $0x6a0] ss:$16 sps:$4 sm:$0xff]  }
  0xb2   : > { %1964 = vmatprep.subr.bf16.mxu0 %v3117_v55  ;;  %2128 = vmatprep.subr.bf16.mxu1 %v3120_v56  ;;  %v3203_v55 = vld [vmem:[%s3350_s27 + $0x6a8] ss:$16 sps:$4 sm:$0xff]   ;;  %v3208_v56 = vld [vmem:[%s3350_s27 + $0x6c4] ss:$16 sps:$4 sm:$0xff]  }
  0xb5   : > { %1965 = vmatpush1.bf16.msra.mxu0 %v3115_v57  ;;  %2129 = vmatpush1.bf16.msra.mxu1 %v3118_v58  ;;  %v3211_v57 = vld [vmem:[%s3350_s27 + $0x6cc] ss:$16 sps:$4 sm:$0xff]   ;;  %v3206_v58 = vld [vmem:[%s3350_s27 + $0x6c0] ss:$16 sps:$4 sm:$0xff]  }
  0xb6   : > { %1966 = vmatprep.subr.bf16.mxu0 %v3123_v59  ;;  %2130 = vmatprep.subr.bf16.mxu1 %v3126_v60  ;;  %v3209_v59 = vld [vmem:[%s3350_s27 + $0x6c8] ss:$16 sps:$4 sm:$0xff]   ;;  %v3214_v60 = vld [vmem:[%s3350_s27 + $0x6e4] ss:$16 sps:$4 sm:$0xff]  }
  0xb9   : > { %1967 = vmatpush1.bf16.msra.mxu0 %v3121_v61  ;;  %2131 = vmatpush1.bf16.msra.mxu1 %v3124_v62  ;;  %v3217_v61 = vld [vmem:[%s3350_s27 + $0x6ec] ss:$16 sps:$4 sm:$0xff]   ;;  %v3212_v62 = vld [vmem:[%s3350_s27 + $0x6e0] ss:$16 sps:$4 sm:$0xff]  }
  0xba   : > { %1968 = vmatprep.subr.bf16.mxu0 %v3129_v63  ;;  %2132 = vmatprep.subr.bf16.mxu1 %v3132_v0  ;;  %v3215_v63 = vld [vmem:[%s3350_s27 + $0x6e8] ss:$16 sps:$4 sm:$0xff]   ;;  %v3220_v0 = vld [vmem:[%s3350_s27 + $0x704] ss:$16 sps:$4 sm:$0xff]  }
  0xbd   : > { %1969 = vmatpush1.bf16.msra.mxu0 %v3127_v1  ;;  %2133 = vmatpush1.bf16.msra.mxu1 %v3130_v2  ;;  %v3223_v1 = vld [vmem:[%s3350_s27 + $0x70c] ss:$16 sps:$4 sm:$0xff]   ;;  %v3218_v2 = vld [vmem:[%s3350_s27 + $0x700] ss:$16 sps:$4 sm:$0xff]  }
  0xbe   : > { %1970 = vmatprep.subr.bf16.mxu0 %v3135_v3  ;;  %2134 = vmatprep.subr.bf16.mxu1 %v3138_v4  ;;  %v3221_v3 = vld [vmem:[%s3350_s27 + $0x708] ss:$16 sps:$4 sm:$0xff]   ;;  %v3226_v4 = vld [vmem:[%s3350_s27 + $0x724] ss:$16 sps:$4 sm:$0xff]  }
  0xc1   : > { %1971 = vmatpush1.bf16.msra.mxu0 %v3133_v5  ;;  %2135 = vmatpush1.bf16.msra.mxu1 %v3136_v6  ;;  %v3229_v5 = vld [vmem:[%s3350_s27 + $0x72c] ss:$16 sps:$4 sm:$0xff]   ;;  %v3224_v6 = vld [vmem:[%s3350_s27 + $0x720] ss:$16 sps:$4 sm:$0xff]  }
  0xc2   : > { %1972 = vmatprep.subr.bf16.mxu0 %v3141_v7  ;;  %2136 = vmatprep.subr.bf16.mxu1 %v3144_v8  ;;  %v3227_v7 = vld [vmem:[%s3350_s27 + $0x728] ss:$16 sps:$4 sm:$0xff]   ;;  %v3232_v8 = vld [vmem:[%s3350_s27 + $0x744] ss:$16 sps:$4 sm:$0xff]  }
  0xc5   : > { %1973 = vmatpush1.bf16.msra.mxu0 %v3139_v9  ;;  %2137 = vmatpush1.bf16.msra.mxu1 %v3142_v10  ;;  %v3235_v9 = vld [vmem:[%s3350_s27 + $0x74c] ss:$16 sps:$4 sm:$0xff]   ;;  %v3230_v10 = vld [vmem:[%s3350_s27 + $0x740] ss:$16 sps:$4 sm:$0xff]  }
  0xc6   : > { %1974 = vmatprep.subr.bf16.mxu0 %v3147_v11  ;;  %2138 = vmatprep.subr.bf16.mxu1 %v3150_v12  ;;  %v3233_v11 = vld [vmem:[%s3350_s27 + $0x748] ss:$16 sps:$4 sm:$0xff]   ;;  %v3238_v12 = vld [vmem:[%s3350_s27 + $0x764] ss:$16 sps:$4 sm:$0xff]  }
  0xc9   : > { %1975 = vmatpush1.bf16.msra.mxu0 %v3145_v13  ;;  %2139 = vmatpush1.bf16.msra.mxu1 %v3148_v14  ;;  %v3241_v13 = vld [vmem:[%s3350_s27 + $0x76c] ss:$16 sps:$4 sm:$0xff]   ;;  %v3236_v14 = vld [vmem:[%s3350_s27 + $0x760] ss:$16 sps:$4 sm:$0xff]  }
  0xca   : > { %1976 = vmatprep.subr.bf16.mxu0 %v3153_v15  ;;  %2140 = vmatprep.subr.bf16.mxu1 %v3156_v17  ;;  %v3239_v15 = vld [vmem:[%s3350_s27 + $0x768] ss:$16 sps:$4 sm:$0xff]   ;;  %v3244_v17 = vld [vmem:[%s3350_s27 + $0x784] ss:$16 sps:$4 sm:$0xff]  }
  0xcd   : > { %1977 = vmatpush1.bf16.msra.mxu0 %v3151_v18  ;;  %2141 = vmatpush1.bf16.msra.mxu1 %v3154_v19  ;;  %v3247_v18 = vld [vmem:[%s3350_s27 + $0x78c] ss:$16 sps:$4 sm:$0xff]   ;;  %v3242_v19 = vld [vmem:[%s3350_s27 + $0x780] ss:$16 sps:$4 sm:$0xff]  }
  0xce   : > { %1978 = vmatprep.subr.bf16.mxu0 %v3159_v20  ;;  %2142 = vmatprep.subr.bf16.mxu1 %v3162_v23  ;;  %v3245_v20 = vld [vmem:[%s3350_s27 + $0x788] ss:$16 sps:$4 sm:$0xff]   ;;  %v3250_v23 = vld [vmem:[%s3350_s27 + $0x7a4] ss:$16 sps:$4 sm:$0xff]  }
  0xd1   : > { %1979 = vmatpush1.bf16.msra.mxu0 %v3157_v24  ;;  %2143 = vmatpush1.bf16.msra.mxu1 %v3160_v25  ;;  %v3253_v24 = vld [vmem:[%s3350_s27 + $0x7ac] ss:$16 sps:$4 sm:$0xff]   ;;  %v3248_v25 = vld [vmem:[%s3350_s27 + $0x7a0] ss:$16 sps:$4 sm:$0xff]  }
  0xd2   : > { %1980 = vmatprep.subr.bf16.mxu0 %v3165_v26  ;;  %2144 = vmatprep.subr.bf16.mxu1 %v3168_v27  ;;  %v3251_v26 = vld [vmem:[%s3350_s27 + $0x7a8] ss:$16 sps:$4 sm:$0xff]   ;;  %v3256_v27 = vld [vmem:[%s3350_s27 + $0x7c4] ss:$16 sps:$4 sm:$0xff]  }
  0xd5   : > { %1981 = vmatpush1.bf16.msra.mxu0 %v3163_v28  ;;  %2145 = vmatpush1.bf16.msra.mxu1 %v3166_v29  ;;  %v3259_v28 = vld [vmem:[%s3350_s27 + $0x7cc] ss:$16 sps:$4 sm:$0xff]   ;;  %v3254_v29 = vld [vmem:[%s3350_s27 + $0x7c0] ss:$16 sps:$4 sm:$0xff]  }
  0xd6   : > { %1991 = vmatprep.subr.bf16.mxu0 %v3172_v30  ;;  %2155 = vmatprep.subr.bf16.mxu1 %v3175_v31  ;;  %v3257_v30 = vld [vmem:[%s3350_s27 + $0x7c8] ss:$16 sps:$4 sm:$0xff]   ;;  %v3262_v31 = vld [vmem:[%s3350_s27 + $0x7e4] ss:$16 sps:$4 sm:$0xff]  }
  0xd8   : > { %1983 = vmatmul.mubr.bf16.vlgmr.msra.gmra.mrb[0].mxu0 %v3444_v22  ;;  %2147 = vmatmul.mubr.bf16.vlgmr.msra.gmra.mrb[0].mxu1 %v3444_v22 }
  0xd9   : > { %1992 = vmatpush1.bf16.msra.mxu0 %v3170_v16  ;;  %2156 = vmatpush1.bf16.msra.mxu1 %v3173_v32  ;;  %v3265_v16 = vld [vmem:[%s3350_s27 + $0x7ec] ss:$16 sps:$4 sm:$0xff]   ;;  %v3260_v32 = vld [vmem:[%s3350_s27 + $0x7e0] ss:$16 sps:$4 sm:$0xff]  }
  0xda   : > { %1993 = vmatprep.subr.bf16.mxu0 %v3178_v33  ;;  %2157 = vmatprep.subr.bf16.mxu1 %v3181_v34  ;;  %v3263_v33 = vld [vmem:[%s3350_s27 + $0x7e8] ss:$16 sps:$4 sm:$0xff]   ;;  %v577_v34 = vcombine.high %v3444_v22, %v3444_v22 }
  0xdb   : > { %2023 = vmatprep.mubr.bf16.mxu0 %v579_v35  ;;  %2187 = vmatprep.mubr.bf16.mxu1 %v579_v35  ;;  %v3293_v35 = vmov 1983009808  }
  0xdd   : > { %1994 = vmatpush1.bf16.msra.mxu0 %v3176_v36  ;;  %2158 = vmatpush1.bf16.msra.mxu1 %v3179_v37  ;;  %v2203_v36 = vunpack.c.l.s4 %v3293_v35 }
  0xde   : > { %1995 = vmatprep.subr.bf16.mxu0 %v3184_v38  ;;  %2159 = vmatprep.subr.bf16.mxu1 %v3187_v40 }
  0xdf   : > { %v2204_v37 = vunpack.c.0.s8 %v2203_v36 }
  0xe1   : > { %1996 = vmatpush1.bf16.msra.mxu0 %v3182_v21  ;;  %2160 = vmatpush1.bf16.msra.mxu1 %v3185_v41  ;;  %v2207_v21 = vsub.s32 %v2204_v37, %v3393_v44 }
  0xe2   : > { %1997 = vmatprep.subr.bf16.mxu0 %v3190_v42  ;;  %2161 = vmatprep.subr.bf16.mxu1 %v3193_v43 }
  0xe5   : > { %1998 = vmatpush1.bf16.msra.mxu0 %v3188_v45  ;;  %2162 = vmatpush1.bf16.msra.mxu1 %v3191_v46 }
  0xe6   : > { %1999 = vmatprep.subr.bf16.mxu0 %v3196_v47  ;;  %2163 = vmatprep.subr.bf16.mxu1 %v3199_v48 }
  0xe9   : > { %2000 = vmatpush1.bf16.msra.mxu0 %v3194_v49  ;;  %2164 = vmatpush1.bf16.msra.mxu1 %v3197_v51 }
  0xea   : > { %2001 = vmatprep.subr.bf16.mxu0 %v3202_v52  ;;  %2165 = vmatprep.subr.bf16.mxu1 %v3205_v53  ;;  %v272_v52 = vld [vmem:[#allocation2] sm:$0xff] }
  0xed   : > { %2002 = vmatpush1.bf16.msra.mxu0 %v3200_v54  ;;  %2166 = vmatpush1.bf16.msra.mxu1 %v3203_v55 }
  0xee   : > { %2003 = vmatprep.subr.bf16.mxu0 %v3208_v56  ;;  %2167 = vmatprep.subr.bf16.mxu1 %v3211_v57 }
  0xf1   : > { %2004 = vmatpush1.bf16.msra.mxu0 %v3206_v58  ;;  %2168 = vmatpush1.bf16.msra.mxu1 %v3209_v59 }
  0xf2   : > { %2005 = vmatprep.subr.bf16.mxu0 %v3214_v60  ;;  %2169 = vmatprep.subr.bf16.mxu1 %v3217_v61 }
  0xf5   : > { %2006 = vmatpush1.bf16.msra.mxu0 %v3212_v62  ;;  %2170 = vmatpush1.bf16.msra.mxu1 %v3215_v63 }
  0xf6   : > { %2007 = vmatprep.subr.bf16.mxu0 %v3220_v0  ;;  %2171 = vmatprep.subr.bf16.mxu1 %v3223_v1 }
  0xf9   : > { %2008 = vmatpush1.bf16.msra.mxu0 %v3218_v2  ;;  %2172 = vmatpush1.bf16.msra.mxu1 %v3221_v3 }
  0xfa   : > { %2009 = vmatprep.subr.bf16.mxu0 %v3226_v4  ;;  %2173 = vmatprep.subr.bf16.mxu1 %v3229_v5 }
  0xfd   : > { %2010 = vmatpush1.bf16.msra.mxu0 %v3224_v6  ;;  %2174 = vmatpush1.bf16.msra.mxu1 %v3227_v7 }
  0xfe   : > { %2011 = vmatprep.subr.bf16.mxu0 %v3232_v8  ;;  %2175 = vmatprep.subr.bf16.mxu1 %v3235_v9 }
 0x101   : > { %2012 = vmatpush1.bf16.msra.mxu0 %v3230_v10  ;;  %2176 = vmatpush1.bf16.msra.mxu1 %v3233_v11 }
 0x102   : > { %2013 = vmatprep.subr.bf16.mxu0 %v3238_v12  ;;  %2177 = vmatprep.subr.bf16.mxu1 %v3241_v13 }
 0x105   : > { %2014 = vmatpush1.bf16.msra.mxu0 %v3236_v14  ;;  %2178 = vmatpush1.bf16.msra.mxu1 %v3239_v15 }
 0x106   : > { %2015 = vmatprep.subr.bf16.mxu0 %v3244_v17  ;;  %2179 = vmatprep.subr.bf16.mxu1 %v3247_v18 }
 0x109   : > { %2016 = vmatpush1.bf16.msra.mxu0 %v3242_v19  ;;  %2180 = vmatpush1.bf16.msra.mxu1 %v3245_v20 }
 0x10a   : > { %2017 = vmatprep.subr.bf16.mxu0 %v3250_v23  ;;  %2181 = vmatprep.subr.bf16.mxu1 %v3253_v24 }
 0x10d   : > { %2018 = vmatpush1.bf16.msra.mxu0 %v3248_v25  ;;  %2182 = vmatpush1.bf16.msra.mxu1 %v3251_v26 }
 0x10e   : > { %2019 = vmatprep.subr.bf16.mxu0 %v3256_v27  ;;  %2183 = vmatprep.subr.bf16.mxu1 %v3259_v28 }
 0x111   : > { %2020 = vmatpush1.bf16.msra.mxu0 %v3254_v29  ;;  %2184 = vmatpush1.bf16.msra.mxu1 %v3257_v30 }
 0x112   : > { %2021 = vmatprep.subr.bf16.mxu0 %v3262_v31  ;;  %2185 = vmatprep.subr.bf16.mxu1 %v3265_v16 }
 0x115   : > { %2022 = vmatpush1.bf16.msra.mxu0 %v3260_v32  ;;  %2186 = vmatpush1.bf16.msra.mxu1 %v3263_v33 }
 0x118   : > { %2024 = vmatmul.mubr.bf16.vlgmr.msra.gmra.mrb[0].mxu0 %v577_v34  ;;  %2188 = vmatmul.mubr.bf16.vlgmr.msra.gmra.mrb[0].mxu1 %v577_v34 }
 0x1eb   : > { %v2025_v38 = vpop.f32.mrb[0].mxu0  ;;  %v2189_v40 = vpop.f32.mrb[0].mxu1 }
 0x1ec   : > { %v2027_v41 = vpop.f32.mrb[1].mxu0  ;;  %v2191_v42 = vpop.f32.mrb[1].mxu1 }
 0x1ed   : > { %v2200_v43 = vcombine.low %v2025_v38, %v2027_v41  ;;  %v2201_v45 = vcombine.low %v2189_v40, %v2191_v42  ;;  %v2029_v46 = vpop.f32.mrb[2].mxu0  ;;  %v2193_v47 = vpop.f32.mrb[2].mxu1 }
 0x1ee   : > { %v2030_v48 = vpop.f32.mrb[3].mxu0  ;;  %v2194_v49 = vpop.f32.mrb[3].mxu1 }
 0x1ef   : > { %v2208_v22 = vrot.slane %v2200_v43, %v2207_v21  ;;  %v2215_v51 = vrot.slane %v2201_v45, %v2207_v21  ;;  %2223 = sbr.rel (%p2820_p7) target bundleno = 544 (0x220), region = 36 }
 0x1f1   : > { %v2216_v53 = vcombine.low %v2208_v22, %v2215_v51 }
 0x1f3   : > { %v2218_v54 = vadd.f32 %v2216_v53, %v272_v52 }
 0x1f5   : > { %2219 = vst [vmem:[#allocation2] sm:$0xff] %v2218_v54 }
 0x1fc   : > { %v2224_v55 = vld [vmem:[#allocation2] sm:$0xff] }
 0x1fd   : > { %v2226_v44 = vcombine.high %v2224_v55, %v2224_v55  ;;  %v2233_v56 = vrot.slane %v2224_v55, %v2207_v21  ;;  %v2344_v57 = vmul.f32 %v2224_v55, %v2224_v55 }
 0x1ff   : > { %v2240_v58 = vrot.slane %v2226_v44, %v2207_v21  ;;  %v2241_v59 = vcombine.high %v2233_v56, %v2233_v56  ;;  %v2346_v60 = vcombine.high %v2344_v57, %v2344_v57  ;;  %v2282_v61 = vsel %vm2281_vm0, %v2233_v56, 0.0 }
 0x200   : > { %v2283_v62 = vrot.slane %v2282_v61, 4  ;;  %v2353_v63 = vrot.slane %v2344_v57, %v2207_v21 }
 0x201   : > { %v2242_v0 = vcombine.high %v2240_v58, %v2240_v58  ;;  %v2821_v1 = vpack.c.bf16 %v2241_v59, %v2233_v56  ;;  %v2289_v2 = vsel %vm2281_vm0, %v2241_v59, 0.0  ;;  %v2296_v3 = vsel %vm2281_vm0, %v2240_v58, 0.0 }
 0x202   : > { %v2290_v4 = vrot.slane %v2289_v2, 4  ;;  %v2284_v5 = vadd.f32 %v2283_v62, %v2282_v61  ;;  %v2297_v6 = vrot.slane %v2296_v3, 4  ;;  %v2360_v7 = vrot.slane %v2346_v60, %v2207_v21 }
 0x203   : > { %v2822_v8 = vpack.c.bf16 %v2242_v0, %v2240_v58  ;;  %v2263_v9 = vrot.slane %v2821_v1, %v3401_v50  ;;  %v2303_v10 = vsel %vm2281_vm0, %v2242_v0, 0.0  ;;  %v2361_v11 = vcombine.high %v2353_v63, %v2353_v63 }
 0x204   : > { %v2291_v12 = vadd.f32 %v2290_v4, %v2289_v2  ;;  %v2304_v13 = vrot.slane %v2303_v10, 4  ;;  %v2285_v14 = vrot.slane %v2284_v5, 2  ;;  %v2298_v15 = vadd.f32 %v2297_v6, %v2296_v3 }
 0x205   : > { %v2270_v17 = vrot.slane %v2822_v8, %v3401_v50  ;;  %v2362_v18 = vcombine.high %v2360_v7, %v2360_v7  ;;  %v2367_v19 = vsel %vm2281_vm0, %v2353_v63, 0.0  ;;  %v2374_v20 = vsel %vm2281_vm0, %v2361_v11, 0.0 }
 0x206   : > { %v2292_v23 = vrot.slane %v2291_v12, 2  ;;  %v2305_v24 = vadd.f32 %v2304_v13, %v2303_v10  ;;  %v2286_v25 = vadd.f32 %v2285_v14, %v2284_v5  ;;  %v2299_v26 = vrot.slane %v2298_v15, 2 }
 0x207   : > { %v2271_v27 = vcombine.low %v2263_v9, %v2270_v17  ;;  %v2368_v28 = vrot.slane %v2367_v19, 4  ;;  %v2375_v29 = vrot.slane %v2374_v20, 4  ;;  %v2381_v30 = vsel %vm2281_vm0, %v2360_v7, 0.0 }
 0x208   : > { %v2306_v31 = vrot.slane %v2305_v24, 2  ;;  %v2287_v16 = vrot.slane %v2286_v25, 1  ;;  %v2293_v32 = vadd.f32 %v2292_v23, %v2291_v12  ;;  %v2300_v33 = vadd.f32 %v2299_v26, %v2298_v15 }
 0x209   : > { %2823 = vst.sshfl [vmem:[%s3683_s2] sm:$0x55 pattern:$0x73625140] %v2271_v27  ;;  %v2369_v34 = vadd.f32 %v2368_v28, %v2367_v19  ;;  %v2376_v35 = vadd.f32 %v2375_v29, %v2374_v20  ;;  %v2382_v36 = vrot.slane %v2381_v30, 4  ;;  %v2388_v37 = vsel %vm2281_vm0, %v2362_v18, 0.0 }
 0x20a   : > { %v2288_v38 = vadd.f32 %v2287_v16, %v2286_v25  ;;  %v2294_v40 = vrot.slane %v2293_v32, 1  ;;  %v2301_v21 = vrot.slane %v2300_v33, 1  ;;  %v2307_v41 = vadd.f32 %v2306_v31, %v2305_v24 }
 0x20b   : > { %v2370_v42 = vrot.slane %v2369_v34, 2  ;;  %v2377_v43 = vrot.slane %v2376_v35, 2  ;;  %v2383_v45 = vadd.f32 %v2382_v36, %v2381_v30  ;;  %v2389_v46 = vrot.slane %v2388_v37, 4 }
 0x20c   : > { %v2295_v47 = vadd.f32 %v2294_v40, %v2293_v32  ;;  %v2302_v48 = vadd.f32 %v2301_v21, %v2300_v33  ;;  %v2308_v49 = vrot.slane %v2307_v41, 1 }
 0x20d   : > { %v2371_v22 = vadd.f32 %v2370_v42, %v2369_v34  ;;  %v2378_v51 = vadd.f32 %v2377_v43, %v2376_v35  ;;  %v2384_v52 = vrot.slane %v2383_v45, 2  ;;  %v2390_v53 = vadd.f32 %v2389_v46, %v2388_v37 }
 0x20e   : > { %v2309_v54 = vadd.f32 %v2308_v49, %v2307_v41  ;;  %v2314_v55 = vcombine.low %v2288_v38, %v2295_v47 }
 0x20f   : > { %v2372_v44 = vrot.slane %v2371_v22, 1  ;;  %v2379_v56 = vrot.slane %v2378_v51, 1  ;;  %v2385_v57 = vadd.f32 %v2384_v52, %v2383_v45  ;;  %v2391_v58 = vrot.slane %v2390_v53, 2 }
 0x210   : > { %v2315_v59 = vcombine.low %v2302_v48, %v2309_v54  ;;  %v2322_v60 = vrot.slane %v2314_v55, %v3401_v50 }
 0x211   : > { %v2373_v61 = vadd.f32 %v2372_v44, %v2371_v22  ;;  %v2380_v62 = vadd.f32 %v2379_v56, %v2378_v51  ;;  %v2386_v63 = vrot.slane %v2385_v57, 1  ;;  %v2392_v0 = vadd.f32 %v2391_v58, %v2390_v53 }
 0x212   : > { %v2329_v1 = vrot.slane %v2315_v59, %v3401_v50 }
 0x213   : > { %v2387_v2 = vadd.f32 %v2386_v63, %v2385_v57  ;;  %v2393_v3 = vrot.slane %v2392_v0, 1  ;;  %v2399_v4 = vcombine.low %v2373_v61, %v2380_v62 }
 0x214   : > { %v2330_v5 = vcombine.low %v2322_v60, %v2329_v1 }
 0x215   : > { %v2394_v6 = vadd.f32 %v2393_v3, %v2392_v0  ;;  %v2407_v9 = vrot.slane %v2399_v4, %v3401_v50 }
 0x216   : > { %v2337_v7 = vrot.slane %v2330_v5, %v3401_v50 }
 0x217   : > { %v2400_v8 = vcombine.low %v2387_v2, %v2394_v6 }
 0x218   : > { %2343 = vst.msk [vmem:[%s3684_s3] sm:$0xf] %vm2341_vm1, %v2337_v7 }
 0x219   : > { %v2414_v10 = vrot.slane %v2400_v8, %v3401_v50 }
 0x21b   : > { %v2415_v11 = vcombine.low %v2407_v9, %v2414_v10 }
 0x21d   : > { %v2422_v12 = vrot.slane %v2415_v11, %v3401_v50 }
 0x21f   : > { %2424 = vst.msk [vmem:[%s3685_s4] sm:$0xf] %vm2341_vm1, %v2422_v12 }
 0x220 PF: > { %s15_s17 = sadd.s32 1, %s3289_s17   ;;  %s3686_s15 = smov %s3285_s16 }
 0x221   : > { %p12_p8 = scmp.ge.s32.totalorder %s15_s17, 6   ;;  %s3687_s16 = smov %s3689_s18 }
 0x223   :  { %14 = sbr.rel (!%p12_p8) target bundleno = 2 (0x2), region = 93 }

// kernel: discriminator_forward.15
= control target key start
LH: loop header
LB: loop body
LE: loop exit
PB: predicated region body
PF: predicated region fallthrough
CT: control target
= control target key end

     0   :  { %s1350_s12 = smov 0   ;;  %s1352_s13 = smov 0   ;;  %s1467_s0 = inlined_call_operand.vmem [shape: bf16[8,2048], index: 0, kind: input, shape index: {}]   ;;  %s1468_s1 = inlined_call_operand.vmem [shape: bf16[2048,128], index: 1, kind: input, shape index: {}]   ;;  %s1469_s2 = inlined_call_operand.vmem [shape: f32[1,128], index: 2, kind: input, shape index: {}]   ;;  %s1470_s3 = inlined_call_operand.vmem [shape: f32[8,128], index: 3, kind: output, shape index: {}]  }
   0x1   :  { %s1354_s14 = smov 0  }
   0x2 LB: > { %s22_s15 = sadd.s32 1, %s1323_s13  ;;  %p1032_p0 = scmp.ge.s32.totalorder %s1327_s14, 1  ;;  %s1327_s14 = sphi %s1354_s14, %s13_s14   ;;  %s1323_s13 = sphi %s1352_s13, %s1472_s13   ;;  %s1319_s12 = sphi %s1350_s12, %s1471_s12  }
   0x3   : > { %p23_p1 = scmp.ge.s32.totalorder %s22_s15, 2  ;;  %p167_p2 = scmp.lt.s32.totalorder %s1327_s14, 3 }
   0x5   : > { %s1474_s15 = smov (%p23_p1, %s22_s15), 0  ;;  %p168_p3 = pnand %p1032_p0, %p167_p2 }
   0x6   : > { %s1033_s16 = sshll.u32 (!%p168_p3), %s1319_s12, 3  ;;  %s1035_s17 = sshll.u32 (!%p168_p3), %s1319_s12, 7 }
   0x7   : > { %171 = sbr.rel (%p168_p3) target bundleno = 348 (0x15c), region = 32  ;;  %p202_p4 = scmp.lt.s32.totalorder (!%p168_p3), %s1033_s16, 15 }
   0x8   : > { %p210_p5 = scmp.lt.s32.totalorder (!%p168_p3), %s1035_s17, 255  ;;  %p1037_p6 = scmp.ne.s32.totalorder (!%p168_p3), %s1319_s12, 0 }
   0xe   : > { %s1476_s16 = smov (!%p202_p4, %s1033_s16), 15  ;;  %s1478_s17 = smov (!%p210_p5, %s1035_s17), 255 }
   0xf   : > { %s1034_s18 = sshll.u32 %s1476_s16, 2  ;;  %s1036_s22 = sshll.u32 %s1478_s17, 2  ;;  %v1329_v0 = vmov (!%p1037_p6), 0.0  }
  0x10   : > { %s1375_s21 = scalar_lea.vmem %s1467_s0, %s1034_s18  ;;  %s1380_s25 = scalar_lea.vmem %s1468_s1, %s1036_s22  ;;  %224 = vst [vmem:[#allocation2] sm:$0xff] (!%p1037_p6), %v1329_v0 }
  0x11   : > { %223 = sbr.rel (%p1037_p6) target bundleno = 24 (0x18), region = 36 }
  0x18 PF: > { %v1229_v1 = vld [vmem:[%s1380_s25 + $0x40] sm:$0xff]   ;;  %v1233_v5 = vld [vmem:[%s1380_s25 + $0x48] sm:$0xff]   ;;  %v1237_v9 = vld [vmem:[%s1380_s25 + $0x50] sm:$0xff]   ;;  %p1110_p7 = scmp.ne.s32.totalorder %s1319_s12, 1 }
  0x19   : > { %v1230_v2 = vld [vmem:[%s1380_s25 + $0xc0] sm:$0xff]   ;;  %1116 = vmatprep.subr.bf16.mxu0 %v1229_v1  ;;  %v1234_v6 = vld [vmem:[%s1380_s25 + $0xc8] sm:$0xff]   ;;  %v1238_v10 = vld [vmem:[%s1380_s25 + $0xd0] sm:$0xff]  }
  0x1a   : > { %v1231_v3 = vld [vmem:[%s1380_s25] sm:$0xff]   ;;  %1138 = vmatprep.subr.bf16.mxu1 %v1230_v2  ;;  %v1235_v7 = vld [vmem:[%s1380_s25 + $0x8] sm:$0xff]   ;;  %v1239_v11 = vld [vmem:[%s1380_s25 + $0x10] sm:$0xff]  }
  0x1b   : > { %v1232_v4 = vld [vmem:[%s1380_s25 + $0x80] sm:$0xff]   ;;  %1117 = vmatpush3.bf16.msra.mxu0 %v1231_v3  ;;  %v1236_v8 = vld [vmem:[%s1380_s25 + $0x88] sm:$0xff]   ;;  %v1240_v12 = vld [vmem:[%s1380_s25 + $0x90] sm:$0xff]  }
  0x1c   : > { %1139 = vmatpush3.bf16.msra.mxu1 %v1232_v4  ;;  %1118 = vmatprep.subr.bf16.mxu0 %v1233_v5  ;;  %v1241_v13 = vld [vmem:[%s1380_s25 + $0x58] sm:$0xff]   ;;  %v1245_v17 = vld [vmem:[%s1380_s25 + $0x60] sm:$0xff]   ;;  %v1249_v21 = vld [vmem:[%s1380_s25 + $0x68] sm:$0xff]  }
  0x1d   : > { %1140 = vmatprep.subr.bf16.mxu1 %v1234_v6  ;;  %v1242_v14 = vld [vmem:[%s1380_s25 + $0xd8] sm:$0xff]   ;;  %v1246_v18 = vld [vmem:[%s1380_s25 + $0xe0] sm:$0xff]   ;;  %v1250_v22 = vld [vmem:[%s1380_s25 + $0xe8] sm:$0xff]  }
  0x1e   : > { %v1243_v15 = vld [vmem:[%s1380_s25 + $0x18] sm:$0xff]   ;;  %v1247_v19 = vld [vmem:[%s1380_s25 + $0x20] sm:$0xff]   ;;  %v1251_v23 = vld [vmem:[%s1380_s25 + $0x28] sm:$0xff]  }
  0x1f   : > { %1119 = vmatpush3.bf16.msra.mxu0 %v1235_v7  ;;  %v1244_v16 = vld [vmem:[%s1380_s25 + $0x98] sm:$0xff]   ;;  %v1248_v20 = vld [vmem:[%s1380_s25 + $0xa0] sm:$0xff]   ;;  %v1252_v24 = vld [vmem:[%s1380_s25 + $0xa8] sm:$0xff]  }
  0x20   : > { %1141 = vmatpush3.bf16.msra.mxu1 %v1236_v8  ;;  %1120 = vmatprep.subr.bf16.mxu0 %v1237_v9  ;;  %v1253_v25 = vld [vmem:[%s1380_s25 + $0x70] sm:$0xff]   ;;  %v1257_v29 = vld [vmem:[%s1380_s25 + $0x78] sm:$0xff]   ;;  %v226_v33 = vld [vmem:[%s1375_s21] sm:$0xff] }
  0x21   : > { %1142 = vmatprep.subr.bf16.mxu1 %v1238_v10  ;;  %v1254_v26 = vld [vmem:[%s1380_s25 + $0xf0] sm:$0xff]   ;;  %v1258_v30 = vld [vmem:[%s1380_s25 + $0xf8] sm:$0xff]   ;;  %v227_v34 = vld [vmem:[%s1375_s21 + $0x8] sm:$0xff]  ;;  %v1038_v35 = vcombine.low %v226_v33, %v226_v33  ;;  %v1039_v36 = vcombine.high %v226_v33, %v226_v33 }
  0x22   : > { %v1255_v27 = vld [vmem:[%s1380_s25 + $0x30] sm:$0xff]   ;;  %v1259_v31 = vld [vmem:[%s1380_s25 + $0x38] sm:$0xff]   ;;  %v1040_v37 = vcombine.low %v227_v34, %v227_v34  ;;  %v1041_v38 = vcombine.high %v227_v34, %v227_v34  ;;  %v1265_v39 = vld [vmem:[%s1380_s25 + $0x140] sm:$0xff]  }
  0x23   : > { %1121 = vmatpush3.bf16.msra.mxu0 %v1239_v11  ;;  %v1256_v28 = vld [vmem:[%s1380_s25 + $0xb0] sm:$0xff]   ;;  %v1260_v32 = vld [vmem:[%s1380_s25 + $0xb8] sm:$0xff]   ;;  %v1266_v40 = vld [vmem:[%s1380_s25 + $0x1c0] sm:$0xff]   ;;  %802 = vmatprep.mubr.bf16.mxu0 %v1039_v36 }
  0x24   : > { %1143 = vmatpush3.bf16.msra.mxu1 %v1240_v12  ;;  %1122 = vmatprep.subr.bf16.mxu0 %v1241_v13  ;;  %v1267_v41 = vld [vmem:[%s1380_s25 + $0x100] sm:$0xff]   ;;  %v1269_v43 = vld [vmem:[%s1380_s25 + $0x148] sm:$0xff]   ;;  %v1273_v47 = vld [vmem:[%s1380_s25 + $0x150] sm:$0xff]  }
  0x25   : > { %1144 = vmatprep.subr.bf16.mxu1 %v1242_v14  ;;  %842 = vmatprep.mubr.bf16.mxu1 %v1041_v38  ;;  %v1268_v42 = vld [vmem:[%s1380_s25 + $0x180] sm:$0xff]   ;;  %v1270_v44 = vld [vmem:[%s1380_s25 + $0x1c8] sm:$0xff]   ;;  %v1274_v48 = vld [vmem:[%s1380_s25 + $0x1d0] sm:$0xff]  }
  0x26   : > { %v1271_v45 = vld [vmem:[%s1380_s25 + $0x108] sm:$0xff]   ;;  %v1275_v49 = vld [vmem:[%s1380_s25 + $0x110] sm:$0xff]   ;;  %v1277_v51 = vld [vmem:[%s1380_s25 + $0x158] sm:$0xff]  }
  0x27   : > { %1123 = vmatpush3.bf16.msra.mxu0 %v1243_v15  ;;  %v1272_v46 = vld [vmem:[%s1380_s25 + $0x188] sm:$0xff]   ;;  %v1276_v50 = vld [vmem:[%s1380_s25 + $0x190] sm:$0xff]   ;;  %v1278_v52 = vld [vmem:[%s1380_s25 + $0x1d8] sm:$0xff]  }
  0x28   : > { %1145 = vmatpush3.bf16.msra.mxu1 %v1244_v16  ;;  %1124 = vmatprep.subr.bf16.mxu0 %v1245_v17  ;;  %v1279_v53 = vld [vmem:[%s1380_s25 + $0x118] sm:$0xff]   ;;  %v1281_v55 = vld [vmem:[%s1380_s25 + $0x160] sm:$0xff]   ;;  %v1285_v59 = vld [vmem:[%s1380_s25 + $0x168] sm:$0xff]  }
  0x29   : > { %1146 = vmatprep.subr.bf16.mxu1 %v1246_v18  ;;  %v1280_v54 = vld [vmem:[%s1380_s25 + $0x198] sm:$0xff]   ;;  %v1282_v56 = vld [vmem:[%s1380_s25 + $0x1e0] sm:$0xff]   ;;  %v1286_v60 = vld [vmem:[%s1380_s25 + $0x1e8] sm:$0xff]  }
  0x2a   : > { %v1283_v57 = vld [vmem:[%s1380_s25 + $0x120] sm:$0xff]   ;;  %v1287_v61 = vld [vmem:[%s1380_s25 + $0x128] sm:$0xff]   ;;  %v1289_v63 = vld [vmem:[%s1380_s25 + $0x170] sm:$0xff]  }
  0x2b   : > { %1125 = vmatpush3.bf16.msra.mxu0 %v1247_v19  ;;  %v1284_v58 = vld [vmem:[%s1380_s25 + $0x1a0] sm:$0xff]   ;;  %v1288_v62 = vld [vmem:[%s1380_s25 + $0x1a8] sm:$0xff]   ;;  %v1290_v0 = vld [vmem:[%s1380_s25 + $0x1f0] sm:$0xff]  }
  0x2c   : > { %1147 = vmatpush3.bf16.msra.mxu1 %v1248_v20  ;;  %1126 = vmatprep.subr.bf16.mxu0 %v1249_v21  ;;  %v1291_v1 = vld [vmem:[%s1380_s25 + $0x130] sm:$0xff]   ;;  %v1293_v3 = vld [vmem:[%s1380_s25 + $0x178] sm:$0xff]  }
  0x2d   : > { %1148 = vmatprep.subr.bf16.mxu1 %v1250_v22  ;;  %v1292_v2 = vld [vmem:[%s1380_s25 + $0x1b0] sm:$0xff]   ;;  %v1294_v4 = vld [vmem:[%s1380_s25 + $0x1f8] sm:$0xff]  }
  0x2e   : > { %v1295_v5 = vld [vmem:[%s1380_s25 + $0x138] sm:$0xff]   ;;  %v228_v7 = vld [vmem:[%s1375_s21 + $0x10] sm:$0xff] }
  0x2f   : > { %1127 = vmatpush3.bf16.msra.mxu0 %v1251_v23  ;;  %v1296_v6 = vld [vmem:[%s1380_s25 + $0x1b8] sm:$0xff]   ;;  %v1042_v8 = vcombine.low %v228_v7, %v228_v7  ;;  %v1043_v9 = vcombine.high %v228_v7, %v228_v7 }
  0x30   : > { %1149 = vmatpush3.bf16.msra.mxu1 %v1252_v24  ;;  %1128 = vmatprep.subr.bf16.mxu0 %v1253_v25  ;;  %v229_v10 = vld [vmem:[%s1375_s21 + $0x18] sm:$0xff] }
  0x31   : > { %1150 = vmatprep.subr.bf16.mxu1 %v1254_v26  ;;  %v1044_v11 = vcombine.low %v229_v10, %v229_v10  ;;  %v1045_v12 = vcombine.high %v229_v10, %v229_v10 }
  0x33   : > { %1129 = vmatpush3.bf16.msra.mxu0 %v1255_v27 }
  0x34   : > { %1151 = vmatpush3.bf16.msra.mxu1 %v1256_v28  ;;  %1130 = vmatprep.subr.bf16.mxu0 %v1257_v29 }
  0x35   : > { %1152 = vmatprep.subr.bf16.mxu1 %v1258_v30 }
  0x37   : > { %1131 = vmatpush3.bf16.msra.mxu0 %v1259_v31 }
  0x38   : > { %1153 = vmatpush3.bf16.msra.mxu1 %v1260_v32  ;;  %1160 = vmatprep.subr.bf16.mxu0 %v1265_v39  ;;  %v1111_v39 = vld [vmem:[%s1469_s2] ss:$0 sm:$0xff] (!%p1110_p7) }
  0x39   : > { %1182 = vmatprep.subr.bf16.mxu1 %v1266_v40 }
  0x3a   : > { %803 = vmatmul.mubr.bf16.vlgmr.msra.gmra.mrb[0].mxu0 %v1038_v35  ;;  %v225_v35 = vld [vmem:[#allocation2] sm:$0xff] }
  0x3b   : > { %843 = vmatmul.mubr.bf16.vlgmr.msra.gmra.mrb[0].mxu1 %v1040_v37  ;;  %1161 = vmatpush3.bf16.msra.mxu0 %v1267_v41 }
  0x3c   : > { %1183 = vmatpush3.bf16.msra.mxu1 %v1268_v42  ;;  %1162 = vmatprep.subr.bf16.mxu0 %v1269_v43 }
  0x3d   : > { %1184 = vmatprep.subr.bf16.mxu1 %v1270_v44  ;;  %882 = vmatprep.mubr.bf16.mxu0 %v1043_v9 }
  0x3e   : > { %922 = vmatprep.mubr.bf16.mxu1 %v1045_v12 }
  0x3f   : > { %1163 = vmatpush3.bf16.msra.mxu0 %v1271_v45 }
  0x40   : > { %1185 = vmatpush3.bf16.msra.mxu1 %v1272_v46  ;;  %1164 = vmatprep.subr.bf16.mxu0 %v1273_v47 }
  0x41   : > { %1186 = vmatprep.subr.bf16.mxu1 %v1274_v48 }
  0x43   : > { %1165 = vmatpush3.bf16.msra.mxu0 %v1275_v49 }
  0x44   : > { %1187 = vmatpush3.bf16.msra.mxu1 %v1276_v50  ;;  %1166 = vmatprep.subr.bf16.mxu0 %v1277_v51 }
  0x45   : > { %1188 = vmatprep.subr.bf16.mxu1 %v1278_v52 }
  0x47   : > { %1167 = vmatpush3.bf16.msra.mxu0 %v1279_v53 }
  0x48   : > { %1189 = vmatpush3.bf16.msra.mxu1 %v1280_v54  ;;  %1168 = vmatprep.subr.bf16.mxu0 %v1281_v55 }
  0x49   : > { %1190 = vmatprep.subr.bf16.mxu1 %v1282_v56 }
  0x4b   : > { %1169 = vmatpush3.bf16.msra.mxu0 %v1283_v57 }
  0x4c   : > { %1191 = vmatpush3.bf16.msra.mxu1 %v1284_v58  ;;  %1170 = vmatprep.subr.bf16.mxu0 %v1285_v59 }
  0x4d   : > { %1192 = vmatprep.subr.bf16.mxu1 %v1286_v60 }
  0x4f   : > { %1171 = vmatpush3.bf16.msra.mxu0 %v1287_v61 }
  0x50   : > { %1193 = vmatpush3.bf16.msra.mxu1 %v1288_v62  ;;  %1172 = vmatprep.subr.bf16.mxu0 %v1289_v63 }
  0x51   : > { %1194 = vmatprep.subr.bf16.mxu1 %v1290_v0 }
  0x53   : > { %1173 = vmatpush3.bf16.msra.mxu0 %v1291_v1 }
  0x54   : > { %1195 = vmatpush3.bf16.msra.mxu1 %v1292_v2  ;;  %1174 = vmatprep.subr.bf16.mxu0 %v1293_v3 }
  0x55   : > { %1196 = vmatprep.subr.bf16.mxu1 %v1294_v4 }
  0x57   : > { %1175 = vmatpush3.bf16.msra.mxu0 %v1295_v5 }
  0x58   : > { %1197 = vmatpush3.bf16.msra.mxu1 %v1296_v6 }
  0x5a   : > { %883 = vmatmul.mubr.bf16.vlgmr.msra.gmra.mrb[4].mxu0 %v1042_v8 }
  0x5b   : > { %923 = vmatmul.mubr.bf16.vlgmr.msra.gmra.mrb[4].mxu1 %v1044_v11 }
 0x10d   : > { %v1132_v13 = vpop.f32.mrb[0].mxu0 }
 0x10e   : > { %v1154_v14 = vpop.f32.mrb[0].mxu1  ;;  %v1133_v15 = vpop.f32.mrb[1].mxu0 }
 0x10f   : > { %v1155_v16 = vpop.f32.mrb[1].mxu1  ;;  %v1134_v17 = vadd.f32 %v1133_v15, %v1132_v13  ;;  %v1135_v19 = vpop.f32.mrb[2].mxu0 }
 0x110   : > { %v1156_v18 = vadd.f32 %v1155_v16, %v1154_v14  ;;  %v1157_v20 = vpop.f32.mrb[2].mxu1  ;;  %v1136_v21 = vpop.f32.mrb[3].mxu0 }
 0x111   : > { %v1158_v22 = vpop.f32.mrb[3].mxu1 }
 0x112   : > { %v845_v23 = vadd.f32 %v1156_v18, %v1134_v17 }
 0x12d   : > { %v1176_v24 = vpop.f32.mrb[4].mxu0 }
 0x12e   : > { %v1198_v25 = vpop.f32.mrb[4].mxu1  ;;  %v1177_v26 = vpop.f32.mrb[5].mxu0 }
 0x12f   : > { %v1199_v27 = vpop.f32.mrb[5].mxu1  ;;  %v1178_v28 = vadd.f32 %v1177_v26, %v1176_v24  ;;  %v1179_v30 = vpop.f32.mrb[6].mxu0 }
 0x130   : > { %v1200_v29 = vadd.f32 %v1199_v27, %v1198_v25  ;;  %v1201_v31 = vpop.f32.mrb[6].mxu1  ;;  %v1180_v32 = vpop.f32.mrb[7].mxu0 }
 0x131   : > { %v1202_v33 = vpop.f32.mrb[7].mxu1  ;;  %v885_v34 = vadd.f32 %v1178_v28, %v845_v23  ;;  %935 = sbr.rel (%p1110_p7) target bundleno = 348 (0x15c), region = 40 }
 0x133   : > { %v925_v36 = vadd.f32 %v1200_v29, %v885_v34 }
 0x135   : > { %v930_v37 = vadd.f32 %v925_v36, %v225_v35 }
 0x137   : > { %931 = vst [vmem:[#allocation2] sm:$0xff] %v930_v37 }
 0x13e   : > { %v936_v38 = vld [vmem:[#allocation2] sm:$0xff] }
 0x13f   : > { %v944_v40 = vadd.f32 %v1111_v39, %v936_v38 }
 0x141   : > { %v1112_v41 = vmul.f32 -1.442695, %v944_v40 }
 0x143   : > { %1301 = vpow2.f32 %v1112_v41 }
 0x14d   : > { %v1302_v42 = vpop.eup %1301 }
 0x14e   : > { %v948_v43 = vadd.f32 1.0, %v1302_v42 }
 0x150   : > { %1303 = vrcp.f32 %v948_v43 }
 0x15a   : > { %v1304_v44 = vpop.eup %1303 }
 0x15b   : > { %951 = vst [vmem:[%s1470_s3] sm:$0xff] %v1304_v44 }
 0x15c PF: > { %s13_s14 = sadd.s32 1, %s1327_s14   ;;  %s1471_s12 = smov %s1323_s13 }
 0x15d   : > { %p10_p8 = scmp.ge.s32.totalorder %s13_s14, 4   ;;  %s1472_s13 = smov %s1474_s15 }
 0x15f   :  { %12 = sbr.rel (!%p10_p8) target bundleno = 2 (0x2), region = 73 }

</bundles_post_ra>
